<compile_context>
chip_gen: v5e
topology: v5e:2x2
jax: 0.10.0
libtpu: 0.0.40
codegen_flags: <defaults>
</compile_context>

<pallas_src>
import jax
import jax.numpy as jnp
from jax import lax
from jax.experimental import pallas as pl
from jax.experimental.pallas import tpu as pltpu


def _sigmoid(v):
    # plain exp-based sigmoid (EUP); values here are O(1) so this is safe.
    return 1.0 / (1.0 + jnp.exp(-v))


def bottleneck_cbam_kernel(x_ref, bsh_ref,
                           w1_ref, b1_ref, w2_ref, b2_ref, w3_ref, b3_ref,
                           wm1_ref, bm1_ref, wm2_ref, bm2_ref,
                           a0_ref, a1_ref, bs_ref,
                           o_ref):
    """One grid step = one batch image, channel-major (C, HW) layout.

    x_ref:    (C_in, HW)      the image, channels on sublanes, pixels on lanes.
    bsh_ref:  (9, HW, HW)     per-tap spatial shift + zero-pad-mask operators
                              for the 3x3 conv (0/1 matrices).
    w1_ref:   (width, C_in)   conv1 1x1 weight, BN1 scale folded in.
    b1_ref:   (width, 1)      BN1 bias (column).
    w2_ref:   (9, width, width) conv2 3x3 weight per tap (out, in), BN2 folded.
    b2_ref:   (width, 1)      BN2 bias.
    w3_ref:   (C_out, width)  conv3 1x1 weight, BN3 scale folded in.
    b3_ref:   (C_out, 1)      BN3 bias.
    wm1/bm1/wm2/bm2:          CBAM channel-gate MLP (shared for avg & max),
                              applied to pooled column vectors.
    a0_ref/a1_ref: (HW, HW)   CBAM spatial-gate 7x7 conv as dense right-
                              operators on the channel-max / channel-mean rows.
    bs_ref:   (1, 1)          spatial-gate BN bias.
    o_ref:    (C_out, HW)     lane-dense output block (HW is a multiple of 128).
    """
    f32 = jnp.float32
    x = x_ref[...]                                   # (C_in, HW)
    hw = x.shape[1]
    n_taps = w2_ref.shape[0]
    width = w2_ref.shape[1]

    # ---- conv1 (1x1) + BN1 + ReLU, computed once ----
    h = jnp.maximum(
        jnp.dot(w1_ref[...], x, preferred_element_type=f32) + b1_ref[...], 0.0)

    # ---- conv2 (3x3): shift+mask h per tap via its (HW, HW) operator (MXU),
    #      then contract with that tap's weight ----
    acc = jnp.zeros((width, hw), f32)
    for t in range(n_taps):
        h_sh = jnp.dot(h, bsh_ref[t], preferred_element_type=f32)   # (width, HW)
        acc = acc + jnp.dot(w2_ref[t], h_sh, preferred_element_type=f32)
    out2 = jnp.maximum(acc + b2_ref[...], 0.0)                       # BN2 + ReLU

    # ---- conv3 (1x1) + BN3 ----
    out3 = jnp.dot(w3_ref[...], out2, preferred_element_type=f32) + b3_ref[...]

    # ---- CBAM channel gate: global avg/max pool -> shared MLP -> sigmoid ----
    wm1 = wm1_ref[...]
    bm1 = bm1_ref[...]
    wm2 = wm2_ref[...]
    bm2 = bm2_ref[...]

    def mlp(v):                                      # v: (C_out, 1) column
        hh = jnp.maximum(jnp.dot(wm1, v, preferred_element_type=f32) + bm1, 0.0)
        return jnp.dot(wm2, hh, preferred_element_type=f32) + bm2

    avg_p = jnp.mean(out3, axis=1, keepdims=True)    # (C_out, 1)
    max_p = jnp.max(out3, axis=1, keepdims=True)     # (C_out, 1)
    ch_scale = _sigmoid(mlp(avg_p) + mlp(max_p))     # (C_out, 1)
    x_cg = out3 * ch_scale

    # ---- CBAM spatial gate: channel max/mean -> 7x7 conv (dense operator)
    #      + BN -> sigmoid ----
    c_max = jnp.max(x_cg, axis=0, keepdims=True)     # (1, HW)
    c_mean = jnp.mean(x_cg, axis=0, keepdims=True)   # (1, HW)
    sp = (jnp.dot(c_max, a0_ref[...], preferred_element_type=f32)
          + jnp.dot(c_mean, a1_ref[...], preferred_element_type=f32)
          + bs_ref[...])                             # (1, HW)
    x_sg = x_cg * _sigmoid(sp)

    # ---- residual add (downsample=None => identity == x) + ReLU ----
    o_ref[...] = jnp.maximum(x_sg + x, 0.0).astype(o_ref.dtype)


def _fold_bn(gamma, beta, mean, var, eps):
    scale = gamma / jnp.sqrt(var + eps)
    return scale, beta - mean * scale


def bottleneck_cbam(x_nchw, p, *, eps=1e-5):
    """Forward of Bottleneck(in_ch, out_ch, stride=1, downsample=None) + CBAM.

    Eval-mode BatchNorm.  Requires in_ch == out_ch * expansion (identity path).
    """
    N, C_in, H, W = x_nchw.shape
    width = p["conv1_w"].shape[0]
    C_out = p["conv3_w"].shape[0]
    assert C_in == C_out, "identity residual requires in_ch == out_ch*expansion"
    HW = H * W
    K = 3
    f32 = jnp.float32

    # channel-major, spatially-flattened input: a free NCHW reshape, no
    # transposes and no im2col materialisation in HBM.
    xT = x_nchw.reshape(N, C_in, HW).astype(f32)

    # ---- fold eval-mode BN scales into the conv weights ----
    s1, t1 = _fold_bn(p["bn1_g"], p["bn1_b"], p["bn1_m"], p["bn1_v"], eps)
    s2, t2 = _fold_bn(p["bn2_g"], p["bn2_b"], p["bn2_m"], p["bn2_v"], eps)
    s3, t3 = _fold_bn(p["bn3_g"], p["bn3_b"], p["bn3_m"], p["bn3_v"], eps)
    ss, ts = _fold_bn(p["bns_g"], p["bns_b"], p["bns_m"], p["bns_v"], eps)

    w1 = (p["conv1_w"][:, :, 0, 0] * s1[:, None]).astype(f32)     # (width, Cin)
    w2 = jnp.transpose(p["conv2_w"] * s2[:, None, None, None],
                       (2, 3, 0, 1)).reshape(K * K, width, width).astype(f32)
    w3 = (p["conv3_w"][:, :, 0, 0] * s3[:, None]).astype(f32)     # (Cout, width)
    b1 = t1.reshape(width, 1).astype(f32)
    b2 = t2.reshape(width, 1).astype(f32)
    b3 = t3.reshape(C_out, 1).astype(f32)

    # ---- per-tap spatial shift + zero-pad-mask operators for the 3x3 conv ----
    # bsh[t, q, p] == 1 iff output pixel p's tap t reads real input pixel q;
    # all-zero columns encode conv2's zero padding (so no separate mask).
    pp = jnp.arange(HW)
    rr, cc = pp // W, pp % W
    qq = jnp.arange(HW)[:, None]
    tap_ops = []
    for kh in range(K):
        for kw in range(K):
            src_r, src_c = rr + kh - 1, cc + kw - 1
            valid = (src_r >= 0) & (src_r < H) & (src_c >= 0) & (src_c < W)
            src = src_r * W + src_c
            tap_ops.append(((qq == src[None, :]) & valid[None, :]).astype(f32))
    bsh = jnp.stack(tap_ops, axis=0)                               # (9, HW, HW)

    # CBAM channel-gate MLP (PyTorch Linear applied to pooled column vectors)
    wm1 = p["lin1_w"].astype(f32)                                  # (hid, Cout)
    bm1 = p["lin1_b"].reshape(-1, 1).astype(f32)
    wm2 = p["lin2_w"].astype(f32)                                  # (Cout, hid)
    bm2 = p["lin2_b"].reshape(-1, 1).astype(f32)
    hid = wm1.shape[0]

    # CBAM spatial-gate 7x7 conv as dense (HW, HW) right-operators
    # (BN scale folded); channel 0 acts on per-pixel max, 1 on per-pixel mean.
    ws = p["convs_w"] * ss.reshape(-1, 1, 1, 1)                    # (1, 2, 7, 7)
    eye_imgs = jnp.eye(HW, dtype=f32).reshape(HW, 1, H, W)

    def conv_operator_t(w_1ch):
        cols = lax.conv_general_dilated(
            eye_imgs, w_1ch, (1, 1), ((3, 3), (3, 3)),
            dimension_numbers=("NCHW", "OIHW", "NCHW"),
            precision=lax.Precision.HIGHEST)
        return cols.reshape(HW, HW)          # [q, p] = response at p to delta q

    a0t = conv_operator_t(ws[:, 0:1])
    a1t = conv_operator_t(ws[:, 1:2])
    bs = ts.reshape(1, 1).astype(f32)

    out_flat = pl.pallas_call(
        bottleneck_cbam_kernel,
        out_shape=jax.ShapeDtypeStruct((N, C_out, HW), f32),
        grid=(N,),
        in_specs=[
            pl.BlockSpec((None, C_in, HW), lambda n: (n, 0, 0)),
            pl.BlockSpec((K * K, HW, HW), lambda n: (0, 0, 0)),
            pl.BlockSpec((width, C_in), lambda n: (0, 0)),
            pl.BlockSpec((width, 1), lambda n: (0, 0)),
            pl.BlockSpec((K * K, width, width), lambda n: (0, 0, 0)),
            pl.BlockSpec((width, 1), lambda n: (0, 0)),
            pl.BlockSpec((C_out, width), lambda n: (0, 0)),
            pl.BlockSpec((C_out, 1), lambda n: (0, 0)),
            pl.BlockSpec((hid, C_out), lambda n: (0, 0)),
            pl.BlockSpec((hid, 1), lambda n: (0, 0)),
            pl.BlockSpec((C_out, hid), lambda n: (0, 0)),
            pl.BlockSpec((C_out, 1), lambda n: (0, 0)),
            pl.BlockSpec((HW, HW), lambda n: (0, 0)),
            pl.BlockSpec((HW, HW), lambda n: (0, 0)),
            pl.BlockSpec((1, 1), lambda n: (0, 0)),
        ],
        out_specs=pl.BlockSpec((None, C_out, HW), lambda n: (n, 0, 0)),
        compiler_params=pltpu.CompilerParams(
            dimension_semantics=("parallel",)),
    )(xT, bsh, w1, b1, w2, b2, w3, b3, wm1, bm1, wm2, bm2, a0t, a1t, bs)

    return out_flat.reshape(N, C_out, H, W)


def _reference(x, p, eps=1e-5):
    """Pure-JAX reference (same adapted semantics, high precision)."""
    P = lax.Precision.HIGHEST

    def conv(v, w, pad):
        return lax.conv_general_dilated(
            v, w, (1, 1), ((pad, pad), (pad, pad)),
            dimension_numbers=("NCHW", "OIHW", "NCHW"), precision=P)

    def bn(v, g, b, m, var):
        s = g / jnp.sqrt(var + eps)
        return v * s.reshape(1, -1, 1, 1) + (b - m * s).reshape(1, -1, 1, 1)

    relu = lambda v: jnp.maximum(v, 0.0)

    out = relu(bn(conv(x, p["conv1_w"], 0),
                  p["bn1_g"], p["bn1_b"], p["bn1_m"], p["bn1_v"]))
    out = relu(bn(conv(out, p["conv2_w"], 1),
                  p["bn2_g"], p["bn2_b"], p["bn2_m"], p["bn2_v"]))
    out = bn(conv(out, p["conv3_w"], 0),
             p["bn3_g"], p["bn3_b"], p["bn3_m"], p["bn3_v"])

    # CBAM channel gate
    avgp = out.mean(axis=(2, 3))
    maxp = out.max(axis=(2, 3))

    def mlp(v):
        h = relu(jnp.dot(v, p["lin1_w"].T, precision=P) + p["lin1_b"])
        return jnp.dot(h, p["lin2_w"].T, precision=P) + p["lin2_b"]

    cscale = jax.nn.sigmoid(mlp(avgp) + mlp(maxp))[:, :, None, None]
    xcg = out * cscale

    # CBAM spatial gate
    cmax = xcg.max(axis=1, keepdims=True)
    cmean = xcg.mean(axis=1, keepdims=True)
    comp = jnp.concatenate([cmax, cmean], axis=1)
    sp = bn(conv(comp, p["convs_w"], 3),
            p["bns_g"], p["bns_b"], p["bns_m"], p["bns_v"])
    xsg = xcg * jax.nn.sigmoid(sp)
    return relu(xsg + x)


if __name__ == "__main__":
    # Bottleneck(in_channel=128, out_channel=32, stride=1, downsample=None):
    #   width = 32, conv3 output = out_channel*4 = 128 == in_channel.
    N, H, W = 2, 16, 16
    out_channel, expansion = 32, 4
    width = out_channel
    C3 = out_channel * expansion
    C_in = C3
    reduction = 16
    hid = C3 // reduction
    f32 = jnp.float32

    key = jax.random.PRNGKey(0)
    keys = jax.random.split(key, 8)
    x = jax.random.normal(keys[0], (N, C_in, H, W), dtype=f32)

    def bn_params(c, shift):
        i = jnp.arange(c, dtype=f32)
        return (1.0 + 0.05 * ((i + shift) % 7),      # gamma
                0.02 * ((i + shift) % 5) - 0.03,     # beta
                0.01 * ((i + shift) % 3) - 0.01,     # running_mean
                1.0 + 0.04 * ((i + shift) % 6))      # running_var

    p = dict(
        conv1_w=0.1 * jax.random.normal(keys[1], (width, C_in, 1, 1), f32),
        conv2_w=0.1 * jax.random.normal(keys[2], (width, width, 3, 3), f32),
        conv3_w=0.1 * jax.random.normal(keys[3], (C3, width, 1, 1), f32),
        convs_w=0.1 * jax.random.normal(keys[4], (1, 2, 7, 7), f32),
        lin1_w=0.1 * jax.random.normal(keys[5], (hid, C3), f32),
        lin1_b=0.01 * jnp.arange(hid, dtype=f32),
        lin2_w=0.1 * jax.random.normal(keys[6], (C3, hid), f32),
        lin2_b=0.01 * jnp.arange(C3, dtype=f32) - 0.5,
    )
    for name, c, shift in (("bn1", width, 0), ("bn2", width, 1),
                           ("bn3", C3, 2), ("bns", 1, 3)):
        g, b, m, v = bn_params(c, shift)
        p[f"{name}_g"], p[f"{name}_b"] = g, b
        p[f"{name}_m"], p[f"{name}_v"] = m, v

    out = jax.jit(bottleneck_cbam)(x, p)
    out = jax.block_until_ready(out)

    ref = _reference(x, p)
    assert out.shape == (N, C3, H, W), out.shape
    max_err = float(jnp.max(jnp.abs(out - ref)))
    assert jnp.allclose(out, ref, atol=2e-3, rtol=2e-3), max_err

    print("KERNEL_OK")
</pallas_src>

<mosaic_0001>
module attributes {stable_mosaic.version = 11 : i64} {
  func.func @bottleneck_cbam_kernel(%arg0: i32, %arg1: memref<1x128x256xf32, #tpu.memory_space<vmem>>, %arg2: memref<9x256x256xf32, #tpu.memory_space<vmem>>, %arg3: memref<32x128xf32, #tpu.memory_space<vmem>>, %arg4: memref<32x1xf32, #tpu.memory_space<vmem>>, %arg5: memref<9x32x32xf32, #tpu.memory_space<vmem>>, %arg6: memref<32x1xf32, #tpu.memory_space<vmem>>, %arg7: memref<128x32xf32, #tpu.memory_space<vmem>>, %arg8: memref<128x1xf32, #tpu.memory_space<vmem>>, %arg9: memref<8x128xf32, #tpu.memory_space<vmem>>, %arg10: memref<8x1xf32, #tpu.memory_space<vmem>>, %arg11: memref<128x8xf32, #tpu.memory_space<vmem>>, %arg12: memref<128x1xf32, #tpu.memory_space<vmem>>, %arg13: memref<256x256xf32, #tpu.memory_space<vmem>>, %arg14: memref<256x256xf32, #tpu.memory_space<vmem>>, %arg15: memref<1x1xf32, #tpu.memory_space<vmem>>, %arg16: memref<1x128x256xf32, #tpu.memory_space<vmem>>) attributes {dimension_semantics = [#tpu.dimension_semantics<parallel>], iteration_bounds = array<i64: 2>, scalar_prefetch = 0 : i64, scratch_operands = 0 : i64, tpu.core_type = #tpu.core_type<tc>, window_params = [{transform_indices = @transform_0, window_bounds = array<i64: 1, 128, 256>}, {pipeline_mode = #tpu.pipeline_mode<synchronous>, transform_indices = @transform_1, window_bounds = array<i64: 9, 256, 256>}, {pipeline_mode = #tpu.pipeline_mode<synchronous>, transform_indices = @transform_2, window_bounds = array<i64: 32, 128>}, {pipeline_mode = #tpu.pipeline_mode<synchronous>, transform_indices = @transform_3, window_bounds = array<i64: 32, 1>}, {pipeline_mode = #tpu.pipeline_mode<synchronous>, transform_indices = @transform_4, window_bounds = array<i64: 9, 32, 32>}, {pipeline_mode = #tpu.pipeline_mode<synchronous>, transform_indices = @transform_5, window_bounds = array<i64: 32, 1>}, {pipeline_mode = #tpu.pipeline_mode<synchronous>, transform_indices = @transform_6, window_bounds = array<i64: 128, 32>}, {pipeline_mode = #tpu.pipeline_mode<synchronous>, transform_indices = @transform_7, window_bounds = array<i64: 128, 1>}, {pipeline_mode = #tpu.pipeline_mode<synchronous>, transform_indices = @transform_8, window_bounds = array<i64: 8, 128>}, {pipeline_mode = #tpu.pipeline_mode<synchronous>, transform_indices = @transform_9, window_bounds = array<i64: 8, 1>}, {pipeline_mode = #tpu.pipeline_mode<synchronous>, transform_indices = @transform_10, window_bounds = array<i64: 128, 8>}, {pipeline_mode = #tpu.pipeline_mode<synchronous>, transform_indices = @transform_11, window_bounds = array<i64: 128, 1>}, {pipeline_mode = #tpu.pipeline_mode<synchronous>, transform_indices = @transform_12, window_bounds = array<i64: 256, 256>}, {pipeline_mode = #tpu.pipeline_mode<synchronous>, transform_indices = @transform_13, window_bounds = array<i64: 256, 256>}, {pipeline_mode = #tpu.pipeline_mode<synchronous>, transform_indices = @transform_14, window_bounds = array<i64: 1, 1>}, {transform_indices = @transform_15, window_bounds = array<i64: 1, 128, 256>}]} {
    %c0 = arith.constant 0 : index
    %c0_0 = arith.constant 0 : index
    %c0_1 = arith.constant 0 : index
    %0 = vector.load %arg1[%c0, %c0_0, %c0_1] : memref<1x128x256xf32, #tpu.memory_space<vmem>>, vector<1x128x256xf32>
    %1 = vector.shape_cast %0 : vector<1x128x256xf32> to vector<128x256xf32>
    %c0_2 = arith.constant 0 : index
    %c0_3 = arith.constant 0 : index
    %2 = vector.load %arg3[%c0_2, %c0_3] : memref<32x128xf32, #tpu.memory_space<vmem>>, vector<32x128xf32>
    %cst = arith.constant dense<0.000000e+00> : vector<32x256xf32>
    %3 = tpu.matmul %2, %1, %cst {dimension_numbers = #tpu.dot_dimension_numbers<[1], [0], [0], [1], [0, 0, 1, 1], [], []>} : vector<32x128xf32>, vector<128x256xf32>, vector<32x256xf32> -> vector<32x256xf32>
    %c0_4 = arith.constant 0 : index
    %c0_5 = arith.constant 0 : index
    %4 = vector.load %arg4[%c0_4, %c0_5] : memref<32x1xf32, #tpu.memory_space<vmem>>, vector<32x1xf32>
    %5 = vector.broadcast %4 : vector<32x1xf32> to vector<32x256xf32>
    %6 = arith.addf %3, %5 : vector<32x256xf32>
    %cst_6 = arith.constant 0.000000e+00 : f32
    %7 = vector.broadcast %cst_6 : f32 to vector<32x256xf32>
    %8 = arith.maximumf %6, %7 : vector<32x256xf32>
    %cst_7 = arith.constant 0.000000e+00 : f32
    %9 = vector.broadcast %cst_7 : f32 to vector<32x256xf32>
    %c0_8 = arith.constant 0 : index
    %c0_9 = arith.constant 0 : index
    %c0_10 = arith.constant 0 : index
    %10 = vector.load %arg2[%c0_8, %c0_9, %c0_10] : memref<9x256x256xf32, #tpu.memory_space<vmem>>, vector<1x256x256xf32>
    %11 = vector.shape_cast %10 : vector<1x256x256xf32> to vector<256x256xf32>
    %cst_11 = arith.constant dense<0.000000e+00> : vector<32x256xf32>
    %12 = tpu.matmul %8, %11, %cst_11 {dimension_numbers = #tpu.dot_dimension_numbers<[1], [0], [0], [1], [0, 0, 1, 1], [], []>} : vector<32x256xf32>, vector<256x256xf32>, vector<32x256xf32> -> vector<32x256xf32>
    %c0_12 = arith.constant 0 : index
    %c0_13 = arith.constant 0 : index
    %c0_14 = arith.constant 0 : index
    %13 = vector.load %arg5[%c0_12, %c0_13, %c0_14] : memref<9x32x32xf32, #tpu.memory_space<vmem>>, vector<1x32x32xf32>
    %14 = vector.shape_cast %13 : vector<1x32x32xf32> to vector<32x32xf32>
    %cst_15 = arith.constant dense<0.000000e+00> : vector<32x256xf32>
    %15 = tpu.matmul %14, %12, %cst_15 {dimension_numbers = #tpu.dot_dimension_numbers<[1], [0], [0], [1], [0, 0, 1, 1], [], []>} : vector<32x32xf32>, vector<32x256xf32>, vector<32x256xf32> -> vector<32x256xf32>
    %16 = arith.addf %9, %15 : vector<32x256xf32>
    %c1 = arith.constant 1 : index
    %c0_16 = arith.constant 0 : index
    %c0_17 = arith.constant 0 : index
    %17 = vector.load %arg2[%c1, %c0_16, %c0_17] : memref<9x256x256xf32, #tpu.memory_space<vmem>>, vector<1x256x256xf32>
    %18 = vector.shape_cast %17 : vector<1x256x256xf32> to vector<256x256xf32>
    %cst_18 = arith.constant dense<0.000000e+00> : vector<32x256xf32>
    %19 = tpu.matmul %8, %18, %cst_18 {dimension_numbers = #tpu.dot_dimension_numbers<[1], [0], [0], [1], [0, 0, 1, 1], [], []>} : vector<32x256xf32>, vector<256x256xf32>, vector<32x256xf32> -> vector<32x256xf32>
    %c1_19 = arith.constant 1 : index
    %c0_20 = arith.constant 0 : index
    %c0_21 = arith.constant 0 : index
    %20 = vector.load %arg5[%c1_19, %c0_20, %c0_21] : memref<9x32x32xf32, #tpu.memory_space<vmem>>, vector<1x32x32xf32>
    %21 = vector.shape_cast %20 : vector<1x32x32xf32> to vector<32x32xf32>
    %cst_22 = arith.constant dense<0.000000e+00> : vector<32x256xf32>
    %22 = tpu.matmul %21, %19, %cst_22 {dimension_numbers = #tpu.dot_dimension_numbers<[1], [0], [0], [1], [0, 0, 1, 1], [], []>} : vector<32x32xf32>, vector<32x256xf32>, vector<32x256xf32> -> vector<32x256xf32>
    %23 = arith.addf %16, %22 : vector<32x256xf32>
    %c2 = arith.constant 2 : index
    %c0_23 = arith.constant 0 : index
    %c0_24 = arith.constant 0 : index
    %24 = vector.load %arg2[%c2, %c0_23, %c0_24] : memref<9x256x256xf32, #tpu.memory_space<vmem>>, vector<1x256x256xf32>
    %25 = vector.shape_cast %24 : vector<1x256x256xf32> to vector<256x256xf32>
    %cst_25 = arith.constant dense<0.000000e+00> : vector<32x256xf32>
    %26 = tpu.matmul %8, %25, %cst_25 {dimension_numbers = #tpu.dot_dimension_numbers<[1], [0], [0], [1], [0, 0, 1, 1], [], []>} : vector<32x256xf32>, vector<256x256xf32>, vector<32x256xf32> -> vector<32x256xf32>
    %c2_26 = arith.constant 2 : index
    %c0_27 = arith.constant 0 : index
    %c0_28 = arith.constant 0 : index
    %27 = vector.load %arg5[%c2_26, %c0_27, %c0_28] : memref<9x32x32xf32, #tpu.memory_space<vmem>>, vector<1x32x32xf32>
    %28 = vector.shape_cast %27 : vector<1x32x32xf32> to vector<32x32xf32>
    %cst_29 = arith.constant dense<0.000000e+00> : vector<32x256xf32>
    %29 = tpu.matmul %28, %26, %cst_29 {dimension_numbers = #tpu.dot_dimension_numbers<[1], [0], [0], [1], [0, 0, 1, 1], [], []>} : vector<32x32xf32>, vector<32x256xf32>, vector<32x256xf32> -> vector<32x256xf32>
    %30 = arith.addf %23, %29 : vector<32x256xf32>
    %c3 = arith.constant 3 : index
    %c0_30 = arith.constant 0 : index
    %c0_31 = arith.constant 0 : index
    %31 = vector.load %arg2[%c3, %c0_30, %c0_31] : memref<9x256x256xf32, #tpu.memory_space<vmem>>, vector<1x256x256xf32>
    %32 = vector.shape_cast %31 : vector<1x256x256xf32> to vector<256x256xf32>
    %cst_32 = arith.constant dense<0.000000e+00> : vector<32x256xf32>
    %33 = tpu.matmul %8, %32, %cst_32 {dimension_numbers = #tpu.dot_dimension_numbers<[1], [0], [0], [1], [0, 0, 1, 1], [], []>} : vector<32x256xf32>, vector<256x256xf32>, vector<32x256xf32> -> vector<32x256xf32>
    %c3_33 = arith.constant 3 : index
    %c0_34 = arith.constant 0 : index
    %c0_35 = arith.constant 0 : index
    %34 = vector.load %arg5[%c3_33, %c0_34, %c0_35] : memref<9x32x32xf32, #tpu.memory_space<vmem>>, vector<1x32x32xf32>
    %35 = vector.shape_cast %34 : vector<1x32x32xf32> to vector<32x32xf32>
    %cst_36 = arith.constant dense<0.000000e+00> : vector<32x256xf32>
    %36 = tpu.matmul %35, %33, %cst_36 {dimension_numbers = #tpu.dot_dimension_numbers<[1], [0], [0], [1], [0, 0, 1, 1], [], []>} : vector<32x32xf32>, vector<32x256xf32>, vector<32x256xf32> -> vector<32x256xf32>
    %37 = arith.addf %30, %36 : vector<32x256xf32>
    %c4 = arith.constant 4 : index
    %c0_37 = arith.constant 0 : index
    %c0_38 = arith.constant 0 : index
    %38 = vector.load %arg2[%c4, %c0_37, %c0_38] : memref<9x256x256xf32, #tpu.memory_space<vmem>>, vector<1x256x256xf32>
    %39 = vector.shape_cast %38 : vector<1x256x256xf32> to vector<256x256xf32>
    %cst_39 = arith.constant dense<0.000000e+00> : vector<32x256xf32>
    %40 = tpu.matmul %8, %39, %cst_39 {dimension_numbers = #tpu.dot_dimension_numbers<[1], [0], [0], [1], [0, 0, 1, 1], [], []>} : vector<32x256xf32>, vector<256x256xf32>, vector<32x256xf32> -> vector<32x256xf32>
    %c4_40 = arith.constant 4 : index
    %c0_41 = arith.constant 0 : index
    %c0_42 = arith.constant 0 : index
    %41 = vector.load %arg5[%c4_40, %c0_41, %c0_42] : memref<9x32x32xf32, #tpu.memory_space<vmem>>, vector<1x32x32xf32>
    %42 = vector.shape_cast %41 : vector<1x32x32xf32> to vector<32x32xf32>
    %cst_43 = arith.constant dense<0.000000e+00> : vector<32x256xf32>
    %43 = tpu.matmul %42, %40, %cst_43 {dimension_numbers = #tpu.dot_dimension_numbers<[1], [0], [0], [1], [0, 0, 1, 1], [], []>} : vector<32x32xf32>, vector<32x256xf32>, vector<32x256xf32> -> vector<32x256xf32>
    %44 = arith.addf %37, %43 : vector<32x256xf32>
    %c5 = arith.constant 5 : index
    %c0_44 = arith.constant 0 : index
    %c0_45 = arith.constant 0 : index
    %45 = vector.load %arg2[%c5, %c0_44, %c0_45] : memref<9x256x256xf32, #tpu.memory_space<vmem>>, vector<1x256x256xf32>
    %46 = vector.shape_cast %45 : vector<1x256x256xf32> to vector<256x256xf32>
    %cst_46 = arith.constant dense<0.000000e+00> : vector<32x256xf32>
    %47 = tpu.matmul %8, %46, %cst_46 {dimension_numbers = #tpu.dot_dimension_numbers<[1], [0], [0], [1], [0, 0, 1, 1], [], []>} : vector<32x256xf32>, vector<256x256xf32>, vector<32x256xf32> -> vector<32x256xf32>
    %c5_47 = arith.constant 5 : index
    %c0_48 = arith.constant 0 : index
    %c0_49 = arith.constant 0 : index
    %48 = vector.load %arg5[%c5_47, %c0_48, %c0_49] : memref<9x32x32xf32, #tpu.memory_space<vmem>>, vector<1x32x32xf32>
    %49 = vector.shape_cast %48 : vector<1x32x32xf32> to vector<32x32xf32>
    %cst_50 = arith.constant dense<0.000000e+00> : vector<32x256xf32>
    %50 = tpu.matmul %49, %47, %cst_50 {dimension_numbers = #tpu.dot_dimension_numbers<[1], [0], [0], [1], [0, 0, 1, 1], [], []>} : vector<32x32xf32>, vector<32x256xf32>, vector<32x256xf32> -> vector<32x256xf32>
    %51 = arith.addf %44, %50 : vector<32x256xf32>
    %c6 = arith.constant 6 : index
    %c0_51 = arith.constant 0 : index
    %c0_52 = arith.constant 0 : index
    %52 = vector.load %arg2[%c6, %c0_51, %c0_52] : memref<9x256x256xf32, #tpu.memory_space<vmem>>, vector<1x256x256xf32>
    %53 = vector.shape_cast %52 : vector<1x256x256xf32> to vector<256x256xf32>
    %cst_53 = arith.constant dense<0.000000e+00> : vector<32x256xf32>
    %54 = tpu.matmul %8, %53, %cst_53 {dimension_numbers = #tpu.dot_dimension_numbers<[1], [0], [0], [1], [0, 0, 1, 1], [], []>} : vector<32x256xf32>, vector<256x256xf32>, vector<32x256xf32> -> vector<32x256xf32>
    %c6_54 = arith.constant 6 : index
    %c0_55 = arith.constant 0 : index
    %c0_56 = arith.constant 0 : index
    %55 = vector.load %arg5[%c6_54, %c0_55, %c0_56] : memref<9x32x32xf32, #tpu.memory_space<vmem>>, vector<1x32x32xf32>
    %56 = vector.shape_cast %55 : vector<1x32x32xf32> to vector<32x32xf32>
    %cst_57 = arith.constant dense<0.000000e+00> : vector<32x256xf32>
    %57 = tpu.matmul %56, %54, %cst_57 {dimension_numbers = #tpu.dot_dimension_numbers<[1], [0], [0], [1], [0, 0, 1, 1], [], []>} : vector<32x32xf32>, vector<32x256xf32>, vector<32x256xf32> -> vector<32x256xf32>
    %58 = arith.addf %51, %57 : vector<32x256xf32>
    %c7 = arith.constant 7 : index
    %c0_58 = arith.constant 0 : index
    %c0_59 = arith.constant 0 : index
    %59 = vector.load %arg2[%c7, %c0_58, %c0_59] : memref<9x256x256xf32, #tpu.memory_space<vmem>>, vector<1x256x256xf32>
    %60 = vector.shape_cast %59 : vector<1x256x256xf32> to vector<256x256xf32>
    %cst_60 = arith.constant dense<0.000000e+00> : vector<32x256xf32>
    %61 = tpu.matmul %8, %60, %cst_60 {dimension_numbers = #tpu.dot_dimension_numbers<[1], [0], [0], [1], [0, 0, 1, 1], [], []>} : vector<32x256xf32>, vector<256x256xf32>, vector<32x256xf32> -> vector<32x256xf32>
    %c7_61 = arith.constant 7 : index
    %c0_62 = arith.constant 0 : index
    %c0_63 = arith.constant 0 : index
    %62 = vector.load %arg5[%c7_61, %c0_62, %c0_63] : memref<9x32x32xf32, #tpu.memory_space<vmem>>, vector<1x32x32xf32>
    %63 = vector.shape_cast %62 : vector<1x32x32xf32> to vector<32x32xf32>
    %cst_64 = arith.constant dense<0.000000e+00> : vector<32x256xf32>
    %64 = tpu.matmul %63, %61, %cst_64 {dimension_numbers = #tpu.dot_dimension_numbers<[1], [0], [0], [1], [0, 0, 1, 1], [], []>} : vector<32x32xf32>, vector<32x256xf32>, vector<32x256xf32> -> vector<32x256xf32>
    %65 = arith.addf %58, %64 : vector<32x256xf32>
    %c8 = arith.constant 8 : index
    %c0_65 = arith.constant 0 : index
    %c0_66 = arith.constant 0 : index
    %66 = vector.load %arg2[%c8, %c0_65, %c0_66] : memref<9x256x256xf32, #tpu.memory_space<vmem>>, vector<1x256x256xf32>
    %67 = vector.shape_cast %66 : vector<1x256x256xf32> to vector<256x256xf32>
    %cst_67 = arith.constant dense<0.000000e+00> : vector<32x256xf32>
    %68 = tpu.matmul %8, %67, %cst_67 {dimension_numbers = #tpu.dot_dimension_numbers<[1], [0], [0], [1], [0, 0, 1, 1], [], []>} : vector<32x256xf32>, vector<256x256xf32>, vector<32x256xf32> -> vector<32x256xf32>
    %c8_68 = arith.constant 8 : index
    %c0_69 = arith.constant 0 : index
    %c0_70 = arith.constant 0 : index
    %69 = vector.load %arg5[%c8_68, %c0_69, %c0_70] : memref<9x32x32xf32, #tpu.memory_space<vmem>>, vector<1x32x32xf32>
    %70 = vector.shape_cast %69 : vector<1x32x32xf32> to vector<32x32xf32>
    %cst_71 = arith.constant dense<0.000000e+00> : vector<32x256xf32>
    %71 = tpu.matmul %70, %68, %cst_71 {dimension_numbers = #tpu.dot_dimension_numbers<[1], [0], [0], [1], [0, 0, 1, 1], [], []>} : vector<32x32xf32>, vector<32x256xf32>, vector<32x256xf32> -> vector<32x256xf32>
    %72 = arith.addf %65, %71 : vector<32x256xf32>
    %c0_72 = arith.constant 0 : index
    %c0_73 = arith.constant 0 : index
    %73 = vector.load %arg6[%c0_72, %c0_73] : memref<32x1xf32, #tpu.memory_space<vmem>>, vector<32x1xf32>
    %74 = vector.broadcast %73 : vector<32x1xf32> to vector<32x256xf32>
    %75 = arith.addf %72, %74 : vector<32x256xf32>
    %cst_74 = arith.constant 0.000000e+00 : f32
    %76 = vector.broadcast %cst_74 : f32 to vector<32x256xf32>
    %77 = arith.maximumf %75, %76 : vector<32x256xf32>
    %c0_75 = arith.constant 0 : index
    %c0_76 = arith.constant 0 : index
    %78 = vector.load %arg7[%c0_75, %c0_76] : memref<128x32xf32, #tpu.memory_space<vmem>>, vector<128x32xf32>
    %cst_77 = arith.constant dense<0.000000e+00> : vector<128x256xf32>
    %79 = tpu.matmul %78, %77, %cst_77 {dimension_numbers = #tpu.dot_dimension_numbers<[1], [0], [0], [1], [0, 0, 1, 1], [], []>} : vector<128x32xf32>, vector<32x256xf32>, vector<128x256xf32> -> vector<128x256xf32>
    %c0_78 = arith.constant 0 : index
    %c0_79 = arith.constant 0 : index
    %80 = vector.load %arg8[%c0_78, %c0_79] : memref<128x1xf32, #tpu.memory_space<vmem>>, vector<128x1xf32>
    %81 = vector.broadcast %80 : vector<128x1xf32> to vector<128x256xf32>
    %82 = arith.addf %79, %81 : vector<128x256xf32>
    %c0_80 = arith.constant 0 : index
    %c0_81 = arith.constant 0 : index
    %83 = vector.load %arg9[%c0_80, %c0_81] : memref<8x128xf32, #tpu.memory_space<vmem>>, vector<8x128xf32>
    %c0_82 = arith.constant 0 : index
    %c0_83 = arith.constant 0 : index
    %84 = vector.load %arg10[%c0_82, %c0_83] : memref<8x1xf32, #tpu.memory_space<vmem>>, vector<8x1xf32>
    %c0_84 = arith.constant 0 : index
    %c0_85 = arith.constant 0 : index
    %85 = vector.load %arg11[%c0_84, %c0_85] : memref<128x8xf32, #tpu.memory_space<vmem>>, vector<128x8xf32>
    %c0_86 = arith.constant 0 : index
    %c0_87 = arith.constant 0 : index
    %86 = vector.load %arg12[%c0_86, %c0_87] : memref<128x1xf32, #tpu.memory_space<vmem>>, vector<128x1xf32>
    %cst_88 = arith.constant dense<0.000000e+00> : vector<128xf32>
    %87 = vector.multi_reduction <add>, %82, %cst_88 [1] : vector<128x256xf32> to vector<128xf32>
    %88 = vector.shape_cast %87 : vector<128xf32> to vector<128x1xf32>
    %cst_89 = arith.constant 2.560000e+02 : f32
    %89 = vector.broadcast %cst_89 : f32 to vector<128x1xf32>
    %90 = arith.divf %88, %89 : vector<128x1xf32>
    %cst_90 = arith.constant dense<0xFF800000> : vector<128xf32>
    %91 = vector.multi_reduction <maximumf>, %82, %cst_90 [1] : vector<128x256xf32> to vector<128xf32>
    %92 = vector.shape_cast %91 : vector<128xf32> to vector<128x1xf32>
    %cst_91 = arith.constant dense<0.000000e+00> : vector<8x1xf32>
    %93 = tpu.matmul %83, %90, %cst_91 {dimension_numbers = #tpu.dot_dimension_numbers<[1], [0], [0], [1], [0, 0, 1, 1], [], []>} : vector<8x128xf32>, vector<128x1xf32>, vector<8x1xf32> -> vector<8x1xf32>
    %94 = arith.addf %93, %84 : vector<8x1xf32>
    %cst_92 = arith.constant 0.000000e+00 : f32
    %95 = vector.broadcast %cst_92 : f32 to vector<8x1xf32>
    %96 = arith.maximumf %94, %95 : vector<8x1xf32>
    %cst_93 = arith.constant dense<0.000000e+00> : vector<128x1xf32>
    %97 = tpu.matmul %85, %96, %cst_93 {dimension_numbers = #tpu.dot_dimension_numbers<[1], [0], [0], [1], [0, 0, 1, 1], [], []>} : vector<128x8xf32>, vector<8x1xf32>, vector<128x1xf32> -> vector<128x1xf32>
    %98 = arith.addf %97, %86 : vector<128x1xf32>
    %cst_94 = arith.constant dense<0.000000e+00> : vector<8x1xf32>
    %99 = tpu.matmul %83, %92, %cst_94 {dimension_numbers = #tpu.dot_dimension_numbers<[1], [0], [0], [1], [0, 0, 1, 1], [], []>} : vector<8x128xf32>, vector<128x1xf32>, vector<8x1xf32> -> vector<8x1xf32>
    %100 = arith.addf %99, %84 : vector<8x1xf32>
    %cst_95 = arith.constant 0.000000e+00 : f32
    %101 = vector.broadcast %cst_95 : f32 to vector<8x1xf32>
    %102 = arith.maximumf %100, %101 : vector<8x1xf32>
    %cst_96 = arith.constant dense<0.000000e+00> : vector<128x1xf32>
    %103 = tpu.matmul %85, %102, %cst_96 {dimension_numbers = #tpu.dot_dimension_numbers<[1], [0], [0], [1], [0, 0, 1, 1], [], []>} : vector<128x8xf32>, vector<8x1xf32>, vector<128x1xf32> -> vector<128x1xf32>
    %104 = arith.addf %103, %86 : vector<128x1xf32>
    %105 = arith.addf %98, %104 : vector<128x1xf32>
    %cst_97 = arith.constant 0.000000e+00 : f32
    %106 = vector.broadcast %cst_97 : f32 to vector<128x1xf32>
    %107 = arith.subf %106, %105 : vector<128x1xf32>
    %108 = math.exp %107 : vector<128x1xf32>
    %cst_98 = arith.constant 1.000000e+00 : f32
    %109 = vector.broadcast %cst_98 : f32 to vector<128x1xf32>
    %110 = arith.addf %109, %108 : vector<128x1xf32>
    %cst_99 = arith.constant 1.000000e+00 : f32
    %111 = vector.broadcast %cst_99 : f32 to vector<128x1xf32>
    %112 = arith.divf %111, %110 : vector<128x1xf32>
    %113 = vector.broadcast %112 : vector<128x1xf32> to vector<128x256xf32>
    %114 = arith.mulf %82, %113 : vector<128x256xf32>
    %cst_100 = arith.constant dense<0xFF800000> : vector<256xf32>
    %115 = vector.multi_reduction <maximumf>, %114, %cst_100 [0] : vector<128x256xf32> to vector<256xf32>
    %116 = vector.shape_cast %115 : vector<256xf32> to vector<1x256xf32>
    %cst_101 = arith.constant dense<0.000000e+00> : vector<256xf32>
    %117 = vector.multi_reduction <add>, %114, %cst_101 [0] : vector<128x256xf32> to vector<256xf32>
    %118 = vector.shape_cast %117 : vector<256xf32> to vector<1x256xf32>
    %cst_102 = arith.constant 1.280000e+02 : f32
    %119 = vector.broadcast %cst_102 : f32 to vector<1x256xf32>
    %120 = arith.divf %118, %119 : vector<1x256xf32>
    %c0_103 = arith.constant 0 : index
    %c0_104 = arith.constant 0 : index
    %121 = vector.load %arg13[%c0_103, %c0_104] : memref<256x256xf32, #tpu.memory_space<vmem>>, vector<256x256xf32>
    %cst_105 = arith.constant dense<0.000000e+00> : vector<1x256xf32>
    %122 = tpu.matmul %116, %121, %cst_105 {dimension_numbers = #tpu.dot_dimension_numbers<[1], [0], [0], [1], [0, 0, 1, 1], [], []>} : vector<1x256xf32>, vector<256x256xf32>, vector<1x256xf32> -> vector<1x256xf32>
    %c0_106 = arith.constant 0 : index
    %c0_107 = arith.constant 0 : index
    %123 = vector.load %arg14[%c0_106, %c0_107] : memref<256x256xf32, #tpu.memory_space<vmem>>, vector<256x256xf32>
    %cst_108 = arith.constant dense<0.000000e+00> : vector<1x256xf32>
    %124 = tpu.matmul %120, %123, %cst_108 {dimension_numbers = #tpu.dot_dimension_numbers<[1], [0], [0], [1], [0, 0, 1, 1], [], []>} : vector<1x256xf32>, vector<256x256xf32>, vector<1x256xf32> -> vector<1x256xf32>
    %125 = arith.addf %122, %124 : vector<1x256xf32>
    %c0_109 = arith.constant 0 : index
    %c0_110 = arith.constant 0 : index
    %126 = vector.load %arg15[%c0_109, %c0_110] : memref<1x1xf32, #tpu.memory_space<vmem>>, vector<1x1xf32>
    %127 = vector.broadcast %126 : vector<1x1xf32> to vector<1x256xf32>
    %128 = arith.addf %125, %127 : vector<1x256xf32>
    %cst_111 = arith.constant 0.000000e+00 : f32
    %129 = vector.broadcast %cst_111 : f32 to vector<1x256xf32>
    %130 = arith.subf %129, %128 : vector<1x256xf32>
    %131 = math.exp %130 : vector<1x256xf32>
    %cst_112 = arith.constant 1.000000e+00 : f32
    %132 = vector.broadcast %cst_112 : f32 to vector<1x256xf32>
    %133 = arith.addf %132, %131 : vector<1x256xf32>
    %cst_113 = arith.constant 1.000000e+00 : f32
    %134 = vector.broadcast %cst_113 : f32 to vector<1x256xf32>
    %135 = arith.divf %134, %133 : vector<1x256xf32>
    %136 = vector.broadcast %135 : vector<1x256xf32> to vector<128x256xf32>
    %137 = arith.mulf %114, %136 : vector<128x256xf32>
    %138 = arith.addf %137, %1 : vector<128x256xf32>
    %cst_114 = arith.constant 0.000000e+00 : f32
    %139 = vector.broadcast %cst_114 : f32 to vector<128x256xf32>
    %140 = arith.maximumf %138, %139 : vector<128x256xf32>
    %c0_115 = arith.constant 0 : index
    %c0_116 = arith.constant 0 : index
    %c0_117 = arith.constant 0 : index
    %141 = vector.load %arg16[%c0_115, %c0_116, %c0_117] : memref<1x128x256xf32, #tpu.memory_space<vmem>>, vector<1x128x256xf32>
    %142 = vector.shape_cast %141 : vector<1x128x256xf32> to vector<128x256xf32>
    %143 = vector.shape_cast %140 : vector<128x256xf32> to vector<1x128x256xf32>
    tpu.vector_store %arg16[%c0_115, %c0_116, %c0_117], %143 {strides = array<i32>} : memref<1x128x256xf32, #tpu.memory_space<vmem>>, vector<1x128x256xf32>,
    return
  }
  func.func @transform_0(%arg0: i32) -> (i32, i32, i32) {
    %c0_i32 = arith.constant 0 : i32
    %c0_i32_0 = arith.constant 0 : i32
    %c0_i32_1 = arith.constant 0 : i32
    return %arg0, %c0_i32, %c0_i32_0 : i32, i32, i32
  }
  func.func @transform_1(%arg0: i32) -> (i32, i32, i32) {
    %c0_i32 = arith.constant 0 : i32
    %c0_i32_0 = arith.constant 0 : i32
    %c0_i32_1 = arith.constant 0 : i32
    %c0_i32_2 = arith.constant 0 : i32
    return %c0_i32, %c0_i32_0, %c0_i32_1 : i32, i32, i32
  }
  func.func @transform_2(%arg0: i32) -> (i32, i32) {
    %c0_i32 = arith.constant 0 : i32
    %c0_i32_0 = arith.constant 0 : i32
    %c0_i32_1 = arith.constant 0 : i32
    return %c0_i32, %c0_i32_0 : i32, i32
  }
  func.func @transform_3(%arg0: i32) -> (i32, i32) {
    %c0_i32 = arith.constant 0 : i32
    %c0_i32_0 = arith.constant 0 : i32
    %c0_i32_1 = arith.constant 0 : i32
    return %c0_i32, %c0_i32_0 : i32, i32
  }
  func.func @transform_4(%arg0: i32) -> (i32, i32, i32) {
    %c0_i32 = arith.constant 0 : i32
    %c0_i32_0 = arith.constant 0 : i32
    %c0_i32_1 = arith.constant 0 : i32
    %c0_i32_2 = arith.constant 0 : i32
    return %c0_i32, %c0_i32_0, %c0_i32_1 : i32, i32, i32
  }
  func.func @transform_5(%arg0: i32) -> (i32, i32) {
    %c0_i32 = arith.constant 0 : i32
    %c0_i32_0 = arith.constant 0 : i32
    %c0_i32_1 = arith.constant 0 : i32
    return %c0_i32, %c0_i32_0 : i32, i32
  }
  func.func @transform_6(%arg0: i32) -> (i32, i32) {
    %c0_i32 = arith.constant 0 : i32
    %c0_i32_0 = arith.constant 0 : i32
    %c0_i32_1 = arith.constant 0 : i32
    return %c0_i32, %c0_i32_0 : i32, i32
  }
  func.func @transform_7(%arg0: i32) -> (i32, i32) {
    %c0_i32 = arith.constant 0 : i32
    %c0_i32_0 = arith.constant 0 : i32
    %c0_i32_1 = arith.constant 0 : i32
    return %c0_i32, %c0_i32_0 : i32, i32
  }
  func.func @transform_8(%arg0: i32) -> (i32, i32) {
    %c0_i32 = arith.constant 0 : i32
    %c0_i32_0 = arith.constant 0 : i32
    %c0_i32_1 = arith.constant 0 : i32
    return %c0_i32, %c0_i32_0 : i32, i32
  }
  func.func @transform_9(%arg0: i32) -> (i32, i32) {
    %c0_i32 = arith.constant 0 : i32
    %c0_i32_0 = arith.constant 0 : i32
    %c0_i32_1 = arith.constant 0 : i32
    return %c0_i32, %c0_i32_0 : i32, i32
  }
  func.func @transform_10(%arg0: i32) -> (i32, i32) {
    %c0_i32 = arith.constant 0 : i32
    %c0_i32_0 = arith.constant 0 : i32
    %c0_i32_1 = arith.constant 0 : i32
    return %c0_i32, %c0_i32_0 : i32, i32
  }
  func.func @transform_11(%arg0: i32) -> (i32, i32) {
    %c0_i32 = arith.constant 0 : i32
    %c0_i32_0 = arith.constant 0 : i32
    %c0_i32_1 = arith.constant 0 : i32
    return %c0_i32, %c0_i32_0 : i32, i32
  }
  func.func @transform_12(%arg0: i32) -> (i32, i32) {
    %c0_i32 = arith.constant 0 : i32
    %c0_i32_0 = arith.constant 0 : i32
    %c0_i32_1 = arith.constant 0 : i32
    return %c0_i32, %c0_i32_0 : i32, i32
  }
  func.func @transform_13(%arg0: i32) -> (i32, i32) {
    %c0_i32 = arith.constant 0 : i32
    %c0_i32_0 = arith.constant 0 : i32
    %c0_i32_1 = arith.constant 0 : i32
    return %c0_i32, %c0_i32_0 : i32, i32
  }
  func.func @transform_14(%arg0: i32) -> (i32, i32) {
    %c0_i32 = arith.constant 0 : i32
    %c0_i32_0 = arith.constant 0 : i32
    %c0_i32_1 = arith.constant 0 : i32
    return %c0_i32, %c0_i32_0 : i32, i32
  }
  func.func @transform_15(%arg0: i32) -> (i32, i32, i32) {
    %c0_i32 = arith.constant 0 : i32
    %c0_i32_0 = arith.constant 0 : i32
    %c0_i32_1 = arith.constant 0 : i32
    return %arg0, %c0_i32, %c0_i32_0 : i32, i32, i32
  }
}

</mosaic_0001>

<bundles_post_ra>
// kernel: bottleneck_cbam.1
= control target key start
LH: loop header
LB: loop body
LE: loop exit
PB: predicated region body
PF: predicated region fallthrough
CT: control target
= control target key end

     0   :  { %s5644_s20 = smov 0   ;;  %s9305_s0 = inlined_call_operand.vmem [shape: f32[2,128,256], index: 0, kind: input, shape index: {}]   ;;  %s9306_s1 = inlined_call_operand.vmem [shape: f32[9,256,256], index: 1, kind: input, shape index: {}]   ;;  %s9307_s2 = inlined_call_operand.vmem [shape: f32[32,128], index: 2, kind: input, shape index: {}]   ;;  %s9308_s3 = inlined_call_operand.vmem [shape: f32[32,1], index: 3, kind: input, shape index: {}]   ;;  %s9309_s4 = inlined_call_operand.vmem [shape: f32[9,32,32], index: 4, kind: input, shape index: {}]   ;;  %s9310_s5 = inlined_call_operand.vmem [shape: f32[32,1], index: 5, kind: input, shape index: {}]   ;;  %s9311_s6 = inlined_call_operand.vmem [shape: f32[128,32], index: 6, kind: input, shape index: {}]   ;;  %s9312_s7 = inlined_call_operand.vmem [shape: f32[128,1], index: 7, kind: input, shape index: {}]   ;;  %s9313_s8 = inlined_call_operand.vmem [shape: f32[8,128], index: 8, kind: input, shape index: {}]   ;;  %s9314_s9 = inlined_call_operand.vmem [shape: f32[8,1], index: 9, kind: input, shape index: {}]   ;;  %s9315_s10 = inlined_call_operand.vmem [shape: f32[128,8], index: 10, kind: input, shape index: {}]   ;;  %s9316_s11 = inlined_call_operand.vmem [shape: f32[128,1], index: 11, kind: input, shape index: {}]   ;;  %s9317_s12 = inlined_call_operand.vmem [shape: f32[256,256], index: 12, kind: input, shape index: {}]   ;;  %s9318_s13 = inlined_call_operand.vmem [shape: f32[256,256], index: 13, kind: input, shape index: {}]   ;;  %s9319_s14 = inlined_call_operand.<no memory space> [shape: f32[1,1], index: 14, kind: input, shape index: {}]   ;;  %s9320_s15 = inlined_call_operand.vmem [shape: f32[2,128,256], index: 15, kind: output, shape index: {}]  }
   0x1   :  { %v20_v0 = vstv %s9319_s14 }
   0x2   :  { %21 = vst [vmem:[#allocation2] sm:$0x1] %v20_v0 }
   0x3 LB: > { %s4731_s21 = sadd.s32 4294967295, %s5556_s20   ;;  %p4735_p0 = scmp.ge.s32.totalorder %s5556_s20, 1  ;;  %s5556_s20 = sphi %s5644_s20, %s27_s20  }
   0x4   : > { %p439_p1 = scmp.lt.s32.totalorder %s5556_s20, 3 }
   0x6   : > { %p440_p2 = pnand %p4735_p0, %p439_p1 }
   0x8   : > { %443 = sbr.rel (%p440_p2) target bundleno = 3127 (0xc37), region = 80 }
   0xd   : > { %v533_v1 = vld [vmem:[%s9308_s3] sm:$0xff]  ;;  %p487_p3 = scmp.lt.s32.totalorder %s4731_s21, 1  ;;  %v535_v2 = vld [vmem:[%s9308_s3 + $0x10] sm:$0xff]  ;;  %v5558_v3 = vmov 0   ;;  %v534_v8 = vld [vmem:[%s9308_s3 + $0x8] sm:$0xff]  ;;  %vm993_vm0 = vcmask 261120  }
   0xe   : > { %5439 = vset.pattern.permute.xlu0 %v5558_v3  ;;  %5440 = vset.pattern.permute.xlu1 %v5558_v3  ;;  %v536_v9 = vld [vmem:[%s9308_s3 + $0x18] sm:$0xff]  ;;  %v2983_v18 = vld [vmem:[%s9310_s5 + $0x8] sm:$0xff]  ;;  %v2982_v19 = vld [vmem:[%s9310_s5] sm:$0xff]  ;;  %vm3486_vm2 = vcmask 64512  }
   0xf   : > { %539 = vperm.xlu0 %5439, %v533_v1   ;;  %s9362_s21 = smov (!%p487_p3, %s4731_s21), 1  ;;  %549 = vperm.xlu1 %5440, %v535_v2   ;;  %v3052_v28 = vld [vmem:[%s9312_s7 + $0x70] sm:$0xff]  ;;  %v3051_v29 = vld [vmem:[%s9312_s7 + $0x68] sm:$0xff]  ;;  %v3049_v38 = vld [vmem:[%s9312_s7 + $0x58] sm:$0xff] }
  0x10   : > { %5441 = vset.pattern.permute.xlu2 %v5558_v3  ;;  %s5422_s25 = sshll.u32 %s9362_s21, 8  ;;  %v3048_v39 = vld [vmem:[%s9312_s7 + $0x50] sm:$0xff]  ;;  %v529_v44 = vld [vmem:[%s9307_s2] sm:$0xff]  ;;  %v3045_v46 = vld [vmem:[%s9312_s7 + $0x38] sm:$0xff] }
  0x11   : > { %s5666_s28 = scalar_lea.vmem %s9305_s0, %s5422_s25  ;;  %v3046_v45 = vld [vmem:[%s9312_s7 + $0x40] sm:$0xff]  ;;  %v530_v47 = vld [vmem:[%s9307_s2 + $0x8] sm:$0xff]  ;;  %v531_v50 = vld [vmem:[%s9307_s2 + $0x10] sm:$0xff]  ;;  %s9207_s16 = scalar_lea.vmem %s9320_s15, %s5422_s25 }
  0x12   : > { %v527_v4 = vld [vmem:[%s5666_s28 + $0xf0] sm:$0xff]  ;;  %v528_v5 = vld [vmem:[%s5666_s28 + $0xf8] sm:$0xff]  ;;  %v525_v6 = vld [vmem:[%s5666_s28 + $0xe0] sm:$0xff] }
  0x13   : > { %557 = vmatpush.msra.mxu0 %v527_v4  ;;  %586 = vmatpush.msra.mxu1 %v528_v5  ;;  %v526_v7 = vld [vmem:[%s5666_s28 + $0xe8] sm:$0xff]  ;;  %v523_v10 = vld [vmem:[%s5666_s28 + $0xd0] sm:$0xff]  ;;  %v524_v11 = vld [vmem:[%s5666_s28 + $0xd8] sm:$0xff] }
  0x14   : > { %v521_v12 = vld [vmem:[%s5666_s28 + $0xc0] sm:$0xff]  ;;  %v522_v13 = vld [vmem:[%s5666_s28 + $0xc8] sm:$0xff]  ;;  %v519_v14 = vld [vmem:[%s5666_s28 + $0xb0] sm:$0xff] }
  0x15   : > { %558 = vmatpush.msra.mxu0 %v525_v6  ;;  %587 = vmatpush.msra.mxu1 %v526_v7  ;;  %v520_v15 = vld [vmem:[%s5666_s28 + $0xb8] sm:$0xff]  ;;  %v517_v16 = vld [vmem:[%s5666_s28 + $0xa0] sm:$0xff]  ;;  %v518_v17 = vld [vmem:[%s5666_s28 + $0xa8] sm:$0xff] }
  0x16   : > { %v515_v20 = vld [vmem:[%s5666_s28 + $0x90] sm:$0xff]  ;;  %v516_v21 = vld [vmem:[%s5666_s28 + $0x98] sm:$0xff]  ;;  %v513_v22 = vld [vmem:[%s5666_s28 + $0x80] sm:$0xff] }
  0x17   : > { %544 = vperm.xlu0 %5439, %v534_v8   ;;  %554 = vperm.xlu1 %5440, %v536_v9   ;;  %v514_v23 = vld [vmem:[%s5666_s28 + $0x88] sm:$0xff]  ;;  %v511_v24 = vld [vmem:[%s5666_s28 + $0x70] sm:$0xff]  ;;  %v512_v25 = vld [vmem:[%s5666_s28 + $0x78] sm:$0xff] }
  0x18   : > { %559 = vmatpush.msra.mxu0 %v523_v10  ;;  %588 = vmatpush.msra.mxu1 %v524_v11  ;;  %v509_v26 = vld [vmem:[%s5666_s28 + $0x60] sm:$0xff]  ;;  %v510_v27 = vld [vmem:[%s5666_s28 + $0x68] sm:$0xff]  ;;  %v507_v30 = vld [vmem:[%s5666_s28 + $0x50] sm:$0xff] }
  0x19   : > { %v508_v31 = vld [vmem:[%s5666_s28 + $0x58] sm:$0xff]  ;;  %v505_v32 = vld [vmem:[%s5666_s28 + $0x40] sm:$0xff]  ;;  %v506_v33 = vld [vmem:[%s5666_s28 + $0x48] sm:$0xff] }
  0x1a   : > { %560 = vmatpush.msra.mxu0 %v521_v12  ;;  %589 = vmatpush.msra.mxu1 %v522_v13  ;;  %v503_v34 = vld [vmem:[%s5666_s28 + $0x30] sm:$0xff]  ;;  %v504_v35 = vld [vmem:[%s5666_s28 + $0x38] sm:$0xff]  ;;  %v501_v36 = vld [vmem:[%s5666_s28 + $0x20] sm:$0xff] }
  0x1b   : > { %v502_v37 = vld [vmem:[%s5666_s28 + $0x28] sm:$0xff]  ;;  %v499_v40 = vld [vmem:[%s5666_s28 + $0x10] sm:$0xff]  ;;  %v500_v41 = vld [vmem:[%s5666_s28 + $0x18] sm:$0xff] }
  0x1c   : > { %561 = vmatpush.msra.mxu0 %v519_v14  ;;  %590 = vmatpush.msra.mxu1 %v520_v15  ;;  %v497_v42 = vld [vmem:[%s5666_s28] sm:$0xff]  ;;  %v498_v43 = vld [vmem:[%s5666_s28 + $0x8] sm:$0xff]  ;;  %v3040_v51 = vld [vmem:[%s9312_s7 + $0x10] sm:$0xff] }
  0x1d   : > { %v3043_v48 = vld [vmem:[%s9312_s7 + $0x28] sm:$0xff]  ;;  %v3042_v49 = vld [vmem:[%s9312_s7 + $0x20] sm:$0xff]  ;;  %v532_v53 = vld [vmem:[%s9307_s2 + $0x18] sm:$0xff] }
  0x1e   : > { %562 = vmatpush.msra.mxu0 %v517_v16  ;;  %591 = vmatpush.msra.mxu1 %v518_v17  ;;  %v3039_v52 = vld [vmem:[%s9312_s7 + $0x8] sm:$0xff]  ;;  %v653_v54 = vld [vmem:[%s9306_s1 + $0xf0] sm:$0xff]  ;;  %v654_v56 = vld [vmem:[%s9306_s1 + $0xf8] sm:$0xff] }
  0x1f   : > { %2993 = vperm.xlu0 %5439, %v2983_v18   ;;  %2988 = vperm.xlu1 %5440, %v2982_v19   ;;  %v685_v55 = vld [vmem:[%s9306_s1 + $0x1f0] sm:$0xff]  ;;  %v686_v57 = vld [vmem:[%s9306_s1 + $0x1f8] sm:$0xff]  ;;  %v651_v58 = vld [vmem:[%s9306_s1 + $0xe0] sm:$0xff] }
  0x20   : > { %563 = vmatpush.msra.mxu0 %v515_v20  ;;  %592 = vmatpush.msra.mxu1 %v516_v21  ;;  %v683_v59 = vld [vmem:[%s9306_s1 + $0x1e0] sm:$0xff]  ;;  %v652_v60 = vld [vmem:[%s9306_s1 + $0xe8] sm:$0xff]  ;;  %v649_v62 = vld [vmem:[%s9306_s1 + $0xd0] sm:$0xff] }
  0x21   : > { %687 = vmatpush.msra.mxu2 %v653_v54  ;;  %716 = vmatpush.msra.mxu3 %v685_v55  ;;  %v684_v61 = vld [vmem:[%s9306_s1 + $0x1e8] sm:$0xff]  ;;  %v681_v63 = vld [vmem:[%s9306_s1 + $0x1d0] sm:$0xff]  ;;  %v650_v0 = vld [vmem:[%s9306_s1 + $0xd8] sm:$0xff] }
  0x22   : > { %564 = vmatpush.msra.mxu0 %v513_v22  ;;  %593 = vmatpush.msra.mxu1 %v514_v23  ;;  %v682_v1 = vld [vmem:[%s9306_s1 + $0x1d8] sm:$0xff]  ;;  %v647_v2 = vld [vmem:[%s9306_s1 + $0xc0] sm:$0xff]  ;;  %v648_v4 = vld [vmem:[%s9306_s1 + $0xc8] sm:$0xff] }
  0x23   : > { %688 = vmatpush.msra.mxu2 %v651_v58  ;;  %717 = vmatpush.msra.mxu3 %v683_v59  ;;  %v679_v3 = vld [vmem:[%s9306_s1 + $0x1c0] sm:$0xff]  ;;  %v680_v5 = vld [vmem:[%s9306_s1 + $0x1c8] sm:$0xff]  ;;  %v645_v6 = vld [vmem:[%s9306_s1 + $0xb0] sm:$0xff] }
  0x24   : > { %565 = vmatpush.msra.mxu0 %v511_v24  ;;  %594 = vmatpush.msra.mxu1 %v512_v25  ;;  %v677_v7 = vld [vmem:[%s9306_s1 + $0x1b0] sm:$0xff]  ;;  %v646_v8 = vld [vmem:[%s9306_s1 + $0xb8] sm:$0xff]  ;;  %v643_v10 = vld [vmem:[%s9306_s1 + $0xa0] sm:$0xff] }
  0x25   : > { %689 = vmatpush.msra.mxu2 %v649_v62  ;;  %718 = vmatpush.msra.mxu3 %v681_v63  ;;  %v678_v9 = vld [vmem:[%s9306_s1 + $0x1b8] sm:$0xff]  ;;  %v675_v11 = vld [vmem:[%s9306_s1 + $0x1a0] sm:$0xff]  ;;  %v644_v12 = vld [vmem:[%s9306_s1 + $0xa8] sm:$0xff] }
  0x26   : > { %566 = vmatpush.msra.mxu0 %v509_v26  ;;  %595 = vmatpush.msra.mxu1 %v510_v27  ;;  %v676_v13 = vld [vmem:[%s9306_s1 + $0x1a8] sm:$0xff]  ;;  %v641_v14 = vld [vmem:[%s9306_s1 + $0x90] sm:$0xff]  ;;  %v642_v16 = vld [vmem:[%s9306_s1 + $0x98] sm:$0xff] }
  0x27   : > { %3126 = vperm.xlu0 %5439, %v3052_v28   ;;  %3121 = vperm.xlu1 %5440, %v3051_v29   ;;  %v673_v15 = vld [vmem:[%s9306_s1 + $0x190] sm:$0xff]  ;;  %v674_v17 = vld [vmem:[%s9306_s1 + $0x198] sm:$0xff]  ;;  %v639_v18 = vld [vmem:[%s9306_s1 + $0x80] sm:$0xff] }
  0x28   : > { %567 = vmatpush.msra.mxu0 %v507_v30  ;;  %596 = vmatpush.msra.mxu1 %v508_v31  ;;  %v671_v19 = vld [vmem:[%s9306_s1 + $0x180] sm:$0xff]  ;;  %v640_v20 = vld [vmem:[%s9306_s1 + $0x88] sm:$0xff]  ;;  %v637_v22 = vld [vmem:[%s9306_s1 + $0x70] sm:$0xff] }
  0x29   : > { %690 = vmatpush.msra.mxu2 %v647_v2  ;;  %719 = vmatpush.msra.mxu3 %v679_v3  ;;  %v672_v21 = vld [vmem:[%s9306_s1 + $0x188] sm:$0xff]  ;;  %v669_v23 = vld [vmem:[%s9306_s1 + $0x170] sm:$0xff]  ;;  %v638_v24 = vld [vmem:[%s9306_s1 + $0x78] sm:$0xff] }
  0x2a   : > { %568 = vmatpush.msra.mxu0 %v505_v32  ;;  %597 = vmatpush.msra.mxu1 %v506_v33  ;;  %v670_v25 = vld [vmem:[%s9306_s1 + $0x178] sm:$0xff]  ;;  %v635_v26 = vld [vmem:[%s9306_s1 + $0x60] sm:$0xff]  ;;  %v636_v28 = vld [vmem:[%s9306_s1 + $0x68] sm:$0xff] }
  0x2b   : > { %691 = vmatpush.msra.mxu2 %v645_v6  ;;  %720 = vmatpush.msra.mxu3 %v677_v7  ;;  %v667_v27 = vld [vmem:[%s9306_s1 + $0x160] sm:$0xff]  ;;  %v668_v29 = vld [vmem:[%s9306_s1 + $0x168] sm:$0xff]  ;;  %v633_v30 = vld [vmem:[%s9306_s1 + $0x50] sm:$0xff] }
  0x2c   : > { %569 = vmatpush.msra.mxu0 %v503_v34  ;;  %598 = vmatpush.msra.mxu1 %v504_v35  ;;  %v665_v31 = vld [vmem:[%s9306_s1 + $0x150] sm:$0xff]  ;;  %v634_v32 = vld [vmem:[%s9306_s1 + $0x58] sm:$0xff]  ;;  %v631_v34 = vld [vmem:[%s9306_s1 + $0x40] sm:$0xff] }
  0x2d   : > { %692 = vmatpush.msra.mxu2 %v643_v10  ;;  %721 = vmatpush.msra.mxu3 %v675_v11  ;;  %v666_v33 = vld [vmem:[%s9306_s1 + $0x158] sm:$0xff]  ;;  %v663_v35 = vld [vmem:[%s9306_s1 + $0x140] sm:$0xff]  ;;  %v4770_v54 = vld [vmem:[%s9306_s1 + $0x2f0] sm:$0xff] }
  0x2e   : > { %570 = vmatpush.msra.mxu0 %v501_v36  ;;  %599 = vmatpush.msra.mxu1 %v502_v37  ;;  %v632_v36 = vld [vmem:[%s9306_s1 + $0x48] sm:$0xff]  ;;  %v4802_v55 = vld [vmem:[%s9306_s1 + $0x3f0] sm:$0xff]  ;;  %v4768_v58 = vld [vmem:[%s9306_s1 + $0x2e0] sm:$0xff] }
  0x2f   : > { %3111 = vperm.xlu0 %5439, %v3049_v38   ;;  %3106 = vperm.xlu1 %5440, %v3048_v39   ;;  %v664_v37 = vld [vmem:[%s9306_s1 + $0x148] sm:$0xff]  ;;  %v629_v38 = vld [vmem:[%s9306_s1 + $0x30] sm:$0xff]  ;;  %v4800_v59 = vld [vmem:[%s9306_s1 + $0x3e0] sm:$0xff] }
  0x30   : > { %571 = vmatpush.msra.mxu0 %v499_v40  ;;  %600 = vmatpush.msra.mxu1 %v500_v41  ;;  %v661_v39 = vld [vmem:[%s9306_s1 + $0x130] sm:$0xff]  ;;  %v630_v40 = vld [vmem:[%s9306_s1 + $0x38] sm:$0xff]  ;;  %v4764_v2 = vld [vmem:[%s9306_s1 + $0x2c0] sm:$0xff] }
  0x31   : > { %693 = vmatpush.msra.mxu2 %v641_v14  ;;  %722 = vmatpush.msra.mxu3 %v673_v15  ;;  %v662_v41 = vld [vmem:[%s9306_s1 + $0x138] sm:$0xff]  ;;  %v4766_v62 = vld [vmem:[%s9306_s1 + $0x2d0] sm:$0xff]  ;;  %v4796_v3 = vld [vmem:[%s9306_s1 + $0x3c0] sm:$0xff] }
  0x32   : > { %572 = vmatpush.msra.mxu0 %v497_v42  ;;  %601 = vmatpush.msra.mxu1 %v498_v43  ;;  %v627_v42 = vld [vmem:[%s9306_s1 + $0x20] sm:$0xff]  ;;  %v4798_v63 = vld [vmem:[%s9306_s1 + $0x3d0] sm:$0xff] }
  0x33   : > { %573 = vmatmul.f32.vlgmr.msra.gmra.mxu0 %v529_v44  ;;  %602 = vmatmul.f32.vlgmr.msra.gmra.mxu1 %v529_v44  ;;  %v659_v43 = vld [vmem:[%s9306_s1 + $0x120] sm:$0xff]  ;;  %v628_v44 = vld [vmem:[%s9306_s1 + $0x28] sm:$0xff]  ;;  %v4762_v6 = vld [vmem:[%s9306_s1 + $0x2b0] sm:$0xff] }
  0x34   : > { %745 = vmatpush.msrb.mxu0 %v654_v56  ;;  %774 = vmatpush.msrb.mxu1 %v686_v57  ;;  %v4771_v56 = vld [vmem:[%s9306_s1 + $0x2f8] sm:$0xff]  ;;  %v4794_v7 = vld [vmem:[%s9306_s1 + $0x3b0] sm:$0xff]  ;;  %v4760_v10 = vld [vmem:[%s9306_s1 + $0x2a0] sm:$0xff] }
  0x35   : > { %694 = vmatpush.msra.mxu2 %v639_v18  ;;  %723 = vmatpush.msra.mxu3 %v671_v19  ;;  %v4803_v57 = vld [vmem:[%s9306_s1 + $0x3f8] sm:$0xff]  ;;  %v4792_v11 = vld [vmem:[%s9306_s1 + $0x3a0] sm:$0xff]  ;;  %v4758_v14 = vld [vmem:[%s9306_s1 + $0x290] sm:$0xff] }
  0x36   : > { %746 = vmatpush.msrb.mxu0 %v652_v60  ;;  %775 = vmatpush.msrb.mxu1 %v684_v61  ;;  %v4769_v60 = vld [vmem:[%s9306_s1 + $0x2e8] sm:$0xff]  ;;  %v4790_v15 = vld [vmem:[%s9306_s1 + $0x390] sm:$0xff]  ;;  %v4756_v18 = vld [vmem:[%s9306_s1 + $0x280] sm:$0xff] }
  0x37   : > { %3096 = vperm.xlu0 %5439, %v3046_v45   ;;  %3091 = vperm.xlu1 %5440, %v3045_v46   ;;  %v660_v45 = vld [vmem:[%s9306_s1 + $0x128] sm:$0xff]  ;;  %v625_v46 = vld [vmem:[%s9306_s1 + $0x10] sm:$0xff]  ;;  %v4788_v19 = vld [vmem:[%s9306_s1 + $0x380] sm:$0xff] }
  0x38   : > { %747 = vmatpush.msrb.mxu0 %v650_v0  ;;  %776 = vmatpush.msrb.mxu1 %v682_v1  ;;  %v4801_v61 = vld [vmem:[%s9306_s1 + $0x3e8] sm:$0xff]  ;;  %v4767_v0 = vld [vmem:[%s9306_s1 + $0x2d8] sm:$0xff] }
  0x39   : > { %695 = vmatpush.msra.mxu2 %v637_v22  ;;  %724 = vmatpush.msra.mxu3 %v669_v23  ;;  %v4799_v1 = vld [vmem:[%s9306_s1 + $0x3d8] sm:$0xff]  ;;  %v4754_v22 = vld [vmem:[%s9306_s1 + $0x270] sm:$0xff] }
  0x3a   : > { %748 = vmatpush.msrb.mxu0 %v648_v4  ;;  %777 = vmatpush.msrb.mxu1 %v680_v5  ;;  %v4765_v4 = vld [vmem:[%s9306_s1 + $0x2c8] sm:$0xff]  ;;  %v4786_v23 = vld [vmem:[%s9306_s1 + $0x370] sm:$0xff] }
  0x3b   : > { %576 = vmatmul.f32.gmra.mxu0 %v530_v47  ;;  %605 = vmatmul.f32.gmra.mxu1 %v530_v47  ;;  %v657_v47 = vld [vmem:[%s9306_s1 + $0x110] sm:$0xff]  ;;  %v4797_v5 = vld [vmem:[%s9306_s1 + $0x3c8] sm:$0xff] }
  0x3c   : > { %749 = vmatpush.msrb.mxu0 %v646_v8  ;;  %778 = vmatpush.msrb.mxu1 %v678_v9  ;;  %v4763_v8 = vld [vmem:[%s9306_s1 + $0x2b8] sm:$0xff] }
  0x3d   : > { %696 = vmatpush.msra.mxu2 %v635_v26  ;;  %725 = vmatpush.msra.mxu3 %v667_v27  ;;  %v4795_v9 = vld [vmem:[%s9306_s1 + $0x3b8] sm:$0xff]  ;;  %v4752_v26 = vld [vmem:[%s9306_s1 + $0x260] sm:$0xff] }
  0x3e   : > { %750 = vmatpush.msrb.mxu0 %v644_v12  ;;  %779 = vmatpush.msrb.mxu1 %v676_v13  ;;  %v4761_v12 = vld [vmem:[%s9306_s1 + $0x2a8] sm:$0xff]  ;;  %v4784_v27 = vld [vmem:[%s9306_s1 + $0x360] sm:$0xff] }
  0x3f   : > { %3081 = vperm.xlu0 %5439, %v3043_v48   ;;  %3076 = vperm.xlu1 %5440, %v3042_v49   ;;  %v626_v48 = vld [vmem:[%s9306_s1 + $0x18] sm:$0xff]  ;;  %v4793_v13 = vld [vmem:[%s9306_s1 + $0x3a8] sm:$0xff] }
  0x40   : > { %751 = vmatpush.msrb.mxu0 %v642_v16  ;;  %780 = vmatpush.msrb.mxu1 %v674_v17  ;;  %v658_v49 = vld [vmem:[%s9306_s1 + $0x118] sm:$0xff] }
  0x41   : > { %697 = vmatpush.msra.mxu2 %v633_v30  ;;  %726 = vmatpush.msra.mxu3 %v665_v31  ;;  %v4759_v16 = vld [vmem:[%s9306_s1 + $0x298] sm:$0xff]  ;;  %v4750_v30 = vld [vmem:[%s9306_s1 + $0x250] sm:$0xff] }
  0x42   : > { %752 = vmatpush.msrb.mxu0 %v640_v20  ;;  %781 = vmatpush.msrb.mxu1 %v672_v21  ;;  %v4791_v17 = vld [vmem:[%s9306_s1 + $0x398] sm:$0xff]  ;;  %v4757_v20 = vld [vmem:[%s9306_s1 + $0x288] sm:$0xff]  ;;  %v4782_v31 = vld [vmem:[%s9306_s1 + $0x350] sm:$0xff] }
  0x43   : > { %579 = vmatmul.f32.gmra.mxu0 %v531_v50  ;;  %608 = vmatmul.f32.gmra.mxu1 %v531_v50  ;;  %v623_v50 = vld [vmem:[%s9306_s1] sm:$0xff]  ;;  %v4789_v21 = vld [vmem:[%s9306_s1 + $0x388] sm:$0xff] }
  0x44   : > { %753 = vmatpush.msrb.mxu0 %v638_v24  ;;  %782 = vmatpush.msrb.mxu1 %v670_v25  ;;  %v4755_v24 = vld [vmem:[%s9306_s1 + $0x278] sm:$0xff] }
  0x45   : > { %698 = vmatpush.msra.mxu2 %v631_v34  ;;  %727 = vmatpush.msra.mxu3 %v663_v35  ;;  %v4787_v25 = vld [vmem:[%s9306_s1 + $0x378] sm:$0xff]  ;;  %v4748_v34 = vld [vmem:[%s9306_s1 + $0x240] sm:$0xff] }
  0x46   : > { %754 = vmatpush.msrb.mxu0 %v636_v28  ;;  %783 = vmatpush.msrb.mxu1 %v668_v29  ;;  %v4753_v28 = vld [vmem:[%s9306_s1 + $0x268] sm:$0xff]  ;;  %v4780_v35 = vld [vmem:[%s9306_s1 + $0x340] sm:$0xff] }
  0x47   : > { %3066 = vperm.xlu0 %5439, %v3040_v51   ;;  %3061 = vperm.xlu1 %5440, %v3039_v52   ;;  %v655_v51 = vld [vmem:[%s9306_s1 + $0x100] sm:$0xff]  ;;  %v624_v52 = vld [vmem:[%s9306_s1 + $0x8] sm:$0xff] }
  0x48   : > { %755 = vmatpush.msrb.mxu0 %v634_v32  ;;  %784 = vmatpush.msrb.mxu1 %v666_v33  ;;  %v4785_v29 = vld [vmem:[%s9306_s1 + $0x368] sm:$0xff]  ;;  %v4751_v32 = vld [vmem:[%s9306_s1 + $0x258] sm:$0xff] }
  0x49   : > { %699 = vmatpush.msra.mxu2 %v629_v38  ;;  %728 = vmatpush.msra.mxu3 %v661_v39  ;;  %v4783_v33 = vld [vmem:[%s9306_s1 + $0x358] sm:$0xff]  ;;  %v4746_v39 = vld [vmem:[%s9306_s1 + $0x230] sm:$0xff] }
  0x4a   : > { %756 = vmatpush.msrb.mxu0 %v632_v36  ;;  %785 = vmatpush.msrb.mxu1 %v664_v37  ;;  %v4749_v36 = vld [vmem:[%s9306_s1 + $0x248] sm:$0xff] }
  0x4b   : > { %582 = vmatmul.f32.gmra.mxu0 %v532_v53  ;;  %611 = vmatmul.f32.gmra.mxu1 %v532_v53  ;;  %v656_v53 = vld [vmem:[%s9306_s1 + $0x108] sm:$0xff] }
  0x4c   : > { %757 = vmatpush.msrb.mxu0 %v630_v40  ;;  %786 = vmatpush.msrb.mxu1 %v662_v41  ;;  %v4781_v37 = vld [vmem:[%s9306_s1 + $0x348] sm:$0xff]  ;;  %v4778_v40 = vld [vmem:[%s9306_s1 + $0x330] sm:$0xff]  ;;  %v4747_v41 = vld [vmem:[%s9306_s1 + $0x238] sm:$0xff] }
  0x4d   : > { %700 = vmatpush.msra.mxu2 %v627_v42  ;;  %729 = vmatpush.msra.mxu3 %v659_v43  ;;  %v4779_v42 = vld [vmem:[%s9306_s1 + $0x338] sm:$0xff]  ;;  %v4744_v43 = vld [vmem:[%s9306_s1 + $0x220] sm:$0xff] }
  0x4e   : > { %758 = vmatpush.msrb.mxu0 %v628_v44  ;;  %787 = vmatpush.msrb.mxu1 %v660_v45  ;;  %v4776_v44 = vld [vmem:[%s9306_s1 + $0x320] sm:$0xff] }
  0x4f   : > { %701 = vmatpush.msra.mxu2 %v625_v46  ;;  %730 = vmatpush.msra.mxu3 %v657_v47  ;;  %v4745_v47 = vld [vmem:[%s9306_s1 + $0x228] sm:$0xff] }
  0x50   : > { %759 = vmatpush.msrb.mxu0 %v626_v48  ;;  %788 = vmatpush.msrb.mxu1 %v658_v49  ;;  %v4777_v48 = vld [vmem:[%s9306_s1 + $0x328] sm:$0xff]  ;;  %v4742_v49 = vld [vmem:[%s9306_s1 + $0x210] sm:$0xff] }
  0x51   : > { %702 = vmatpush.msra.mxu2 %v623_v50  ;;  %731 = vmatpush.msra.mxu3 %v655_v51 }
  0x52   : > { %760 = vmatpush.msrb.mxu0 %v624_v52  ;;  %789 = vmatpush.msrb.mxu1 %v656_v53  ;;  %v4774_v52 = vld [vmem:[%s9306_s1 + $0x310] sm:$0xff]  ;;  %v4743_v53 = vld [vmem:[%s9306_s1 + $0x218] sm:$0xff] }
  0x53   : > { %872 = vmatpush.msrb.mxu2 %v4770_v54  ;;  %901 = vmatpush.msrb.mxu3 %v4802_v55  ;;  %v4775_v54 = vld [vmem:[%s9306_s1 + $0x318] sm:$0xff] }
  0x54   : > { %930 = vmatpush.msra.mxu0 %v4771_v56  ;;  %959 = vmatpush.msra.mxu1 %v4803_v57  ;;  %v4740_v57 = vld [vmem:[%s9306_s1 + $0x200] sm:$0xff] }
  0x55   : > { %873 = vmatpush.msrb.mxu2 %v4768_v58  ;;  %902 = vmatpush.msrb.mxu3 %v4800_v59  ;;  %v4772_v58 = vld [vmem:[%s9306_s1 + $0x300] sm:$0xff]  ;;  %v4741_v59 = vld [vmem:[%s9306_s1 + $0x208] sm:$0xff] }
  0x56   : > { %931 = vmatpush.msra.mxu0 %v4769_v60  ;;  %960 = vmatpush.msra.mxu1 %v4801_v61  ;;  %v4773_v60 = vld [vmem:[%s9306_s1 + $0x308] sm:$0xff] }
  0x57   : > { %874 = vmatpush.msrb.mxu2 %v4766_v62  ;;  %903 = vmatpush.msrb.mxu3 %v4798_v63 }
  0x58   : > { %932 = vmatpush.msra.mxu0 %v4767_v0  ;;  %961 = vmatpush.msra.mxu1 %v4799_v1 }
  0x59   : > { %875 = vmatpush.msrb.mxu2 %v4764_v2  ;;  %904 = vmatpush.msrb.mxu3 %v4796_v3 }
  0x5a   : > { %933 = vmatpush.msra.mxu0 %v4765_v4  ;;  %962 = vmatpush.msra.mxu1 %v4797_v5 }
  0x5b   : > { %876 = vmatpush.msrb.mxu2 %v4762_v6  ;;  %905 = vmatpush.msrb.mxu3 %v4794_v7 }
  0x5c   : > { %934 = vmatpush.msra.mxu0 %v4763_v8  ;;  %963 = vmatpush.msra.mxu1 %v4795_v9 }
  0x5d   : > { %877 = vmatpush.msrb.mxu2 %v4760_v10  ;;  %906 = vmatpush.msrb.mxu3 %v4792_v11 }
  0x5e   : > { %935 = vmatpush.msra.mxu0 %v4761_v12  ;;  %964 = vmatpush.msra.mxu1 %v4793_v13 }
  0x5f   : > { %878 = vmatpush.msrb.mxu2 %v4758_v14  ;;  %907 = vmatpush.msrb.mxu3 %v4790_v15 }
  0x60   : > { %936 = vmatpush.msra.mxu0 %v4759_v16  ;;  %965 = vmatpush.msra.mxu1 %v4791_v17 }
  0x61   : > { %879 = vmatpush.msrb.mxu2 %v4756_v18  ;;  %908 = vmatpush.msrb.mxu3 %v4788_v19 }
  0x62   : > { %937 = vmatpush.msra.mxu0 %v4757_v20  ;;  %966 = vmatpush.msra.mxu1 %v4789_v21 }
  0x63   : > { %880 = vmatpush.msrb.mxu2 %v4754_v22  ;;  %909 = vmatpush.msrb.mxu3 %v4786_v23 }
  0x64   : > { %938 = vmatpush.msra.mxu0 %v4755_v24  ;;  %967 = vmatpush.msra.mxu1 %v4787_v25 }
  0x65   : > { %881 = vmatpush.msrb.mxu2 %v4752_v26  ;;  %910 = vmatpush.msrb.mxu3 %v4784_v27 }
  0x66   : > { %939 = vmatpush.msra.mxu0 %v4753_v28  ;;  %968 = vmatpush.msra.mxu1 %v4785_v29 }
  0x67   : > { %882 = vmatpush.msrb.mxu2 %v4750_v30  ;;  %911 = vmatpush.msrb.mxu3 %v4782_v31 }
  0x68   : > { %940 = vmatpush.msra.mxu0 %v4751_v32  ;;  %969 = vmatpush.msra.mxu1 %v4783_v33 }
  0x69   : > { %883 = vmatpush.msrb.mxu2 %v4748_v34  ;;  %912 = vmatpush.msrb.mxu3 %v4780_v35 }
  0x6a   : > { %941 = vmatpush.msra.mxu0 %v4749_v36  ;;  %970 = vmatpush.msra.mxu1 %v4781_v37 }
  0x6b   : > { %884 = vmatpush.msrb.mxu2 %v4746_v39  ;;  %913 = vmatpush.msrb.mxu3 %v4778_v40  ;;  %v803_v39 = vld [vmem:[%s9309_s4] sm:$0xff] }
  0x6c   : > { %942 = vmatpush.msra.mxu0 %v4747_v41  ;;  %971 = vmatpush.msra.mxu1 %v4779_v42 }
  0x6d   : > { %885 = vmatpush.msrb.mxu2 %v4744_v43  ;;  %914 = vmatpush.msrb.mxu3 %v4776_v44  ;;  %v4887_v43 = vld [vmem:[%s9306_s1 + $0x5f8] sm:$0xff] }
  0x6e   : > { %943 = vmatpush.msra.mxu0 %v4745_v47  ;;  %972 = vmatpush.msra.mxu1 %v4777_v48  ;;  %v4883_v47 = vld [vmem:[%s9306_s1 + $0x5d8] sm:$0xff] }
  0x6f   : > { %886 = vmatpush.msrb.mxu2 %v4742_v49  ;;  %915 = vmatpush.msrb.mxu3 %v4774_v52  ;;  %v804_v52 = vld [vmem:[%s9309_s4 + $0x8] sm:$0xff] }
  0x70   : > { %944 = vmatpush.msra.mxu0 %v4743_v53  ;;  %973 = vmatpush.msra.mxu1 %v4775_v54  ;;  %v4853_v53 = vld [vmem:[%s9306_s1 + $0x4e8] sm:$0xff] }
  0x71   : > { %887 = vmatpush.msrb.mxu2 %v4740_v57  ;;  %916 = vmatpush.msrb.mxu3 %v4772_v58  ;;  %v4879_v58 = vld [vmem:[%s9306_s1 + $0x5b8] sm:$0xff] }
  0x72   : > { %945 = vmatpush.msra.mxu0 %v4741_v59  ;;  %974 = vmatpush.msra.mxu1 %v4773_v60  ;;  %v4851_v59 = vld [vmem:[%s9306_s1 + $0x4d8] sm:$0xff]  ;;  %v4877_v60 = vld [vmem:[%s9306_s1 + $0x5a8] sm:$0xff] }
  0x81   : > { %v540_v38 = vpop.permute.xlu0 %539  ;;  %v550_v4 = vpop.permute.xlu1 %549 }
  0x89   : > { %v545_v61 = vpop.permute.xlu0 %544  ;;  %v555_v11 = vpop.permute.xlu1 %554 }
  0xb0   : > { %v574_v45 = vpop.f32.mrf.mxu0  ;;  %v603_v46 = vpop.f32.mrf.mxu1 }
  0xb1   : > { %v575_v50 = vadd.f32 %v574_v45, %v540_v38  ;;  %v604_v51 = vadd.f32 %v603_v46, %v540_v38  ;;  %v4885_v45 = vld [vmem:[%s9306_s1 + $0x5e8] sm:$0xff] }
  0xb3   : > { %v6126_v55 = vmax.f32 %v575_v50, 0.0  ;;  %v6128_v56 = vmax.f32 %v604_v51, 0.0  ;;  %v4855_v50 = vld [vmem:[%s9306_s1 + $0x4f8] sm:$0xff]  ;;  %v4881_v51 = vld [vmem:[%s9306_s1 + $0x5c8] sm:$0xff] }
  0xb5   : > { %703 = vmatmul.f32.vlgmr.msra.gmra.mxu2 %v6126_v55  ;;  %732 = vmatmul.f32.vlgmr.msra.gmra.mxu3 %v6128_v56 }
  0xb6   : > { %761 = vmatmul.f32.vlgmr.msrb.gmra.mxu0 %v6126_v55  ;;  %790 = vmatmul.f32.vlgmr.msrb.gmra.mxu1 %v6128_v56 }
  0xb8   : > { %v577_v62 = vpop.f32.mrf.mxu0  ;;  %v606_v63 = vpop.f32.mrf.mxu1 }
  0xb9   : > { %v578_v0 = vadd.f32 %v577_v62, %v545_v61  ;;  %v607_v1 = vadd.f32 %v606_v63, %v545_v61  ;;  %v4849_v61 = vld [vmem:[%s9306_s1 + $0x4c8] sm:$0xff]  ;;  %v4875_v62 = vld [vmem:[%s9306_s1 + $0x598] sm:$0xff] }
  0xbb   : > { %v6146_v2 = vmax.f32 %v578_v0, 0.0  ;;  %v6148_v3 = vmax.f32 %v607_v1, 0.0  ;;  %v4847_v1 = vld [vmem:[%s9306_s1 + $0x4b8] sm:$0xff] }
  0xbd   : > { %706 = vmatmul.f32.gmra.mxu2 %v6146_v2  ;;  %735 = vmatmul.f32.gmra.mxu3 %v6148_v3 }
  0xbe   : > { %764 = vmatmul.f32.gmra.mxu0 %v6146_v2  ;;  %793 = vmatmul.f32.gmra.mxu1 %v6148_v3 }
  0xc0   : > { %v580_v5 = vpop.f32.mrf.mxu0  ;;  %v609_v6 = vpop.f32.mrf.mxu1 }
  0xc1   : > { %v581_v7 = vadd.f32 %v580_v5, %v550_v4  ;;  %v610_v8 = vadd.f32 %v609_v6, %v550_v4  ;;  %v4873_v4 = vld [vmem:[%s9306_s1 + $0x588] sm:$0xff]  ;;  %v805_v5 = vld [vmem:[%s9309_s4 + $0x10] sm:$0xff] }
  0xc2   : > { %v4845_v6 = vld [vmem:[%s9306_s1 + $0x4a8] sm:$0xff] }
  0xc3   : > { %v6154_v9 = vmax.f32 %v581_v7, 0.0  ;;  %v6156_v10 = vmax.f32 %v610_v8, 0.0 }
  0xc5   : > { %709 = vmatmul.f32.gmra.mxu2 %v6154_v9  ;;  %738 = vmatmul.f32.gmra.mxu3 %v6156_v10 }
  0xc6   : > { %767 = vmatmul.f32.gmra.mxu0 %v6154_v9  ;;  %796 = vmatmul.f32.gmra.mxu1 %v6156_v10 }
  0xc8   : > { %v583_v12 = vpop.f32.mrf.mxu0  ;;  %v612_v13 = vpop.f32.mrf.mxu1 }
  0xc9   : > { %v584_v14 = vadd.f32 %v583_v12, %v555_v11  ;;  %v613_v15 = vadd.f32 %v612_v13, %v555_v11  ;;  %v4871_v11 = vld [vmem:[%s9306_s1 + $0x578] sm:$0xff]  ;;  %v4869_v13 = vld [vmem:[%s9306_s1 + $0x568] sm:$0xff] }
  0xca   : > { %v4843_v12 = vld [vmem:[%s9306_s1 + $0x498] sm:$0xff] }
  0xcb   : > { %v6162_v16 = vmax.f32 %v584_v14, 0.0  ;;  %v6164_v17 = vmax.f32 %v613_v15, 0.0  ;;  %v4841_v14 = vld [vmem:[%s9306_s1 + $0x488] sm:$0xff]  ;;  %v4867_v15 = vld [vmem:[%s9306_s1 + $0x558] sm:$0xff] }
  0xcd   : > { %712 = vmatmul.f32.gmra.mxu2 %v6162_v16  ;;  %741 = vmatmul.f32.gmra.mxu3 %v6164_v17 }
  0xce   : > { %770 = vmatmul.f32.gmra.mxu0 %v6162_v16  ;;  %799 = vmatmul.f32.gmra.mxu1 %v6164_v17 }
  0xd5   : > { %888 = vmatmul.f32.vlgmr.msrb.gmra.mxu2 %v6126_v55  ;;  %917 = vmatmul.f32.vlgmr.msrb.gmra.mxu3 %v6128_v56 }
  0xd6   : > { %946 = vmatmul.f32.vlgmr.msra.gmra.mxu0 %v6126_v55  ;;  %975 = vmatmul.f32.vlgmr.msra.gmra.mxu1 %v6128_v56 }
  0xdd   : > { %891 = vmatmul.f32.gmra.mxu2 %v6146_v2  ;;  %920 = vmatmul.f32.gmra.mxu3 %v6148_v3 }
  0xde   : > { %949 = vmatmul.f32.gmra.mxu0 %v6146_v2  ;;  %978 = vmatmul.f32.gmra.mxu1 %v6148_v3 }
  0xe5   : > { %894 = vmatmul.f32.gmra.mxu2 %v6154_v9  ;;  %923 = vmatmul.f32.gmra.mxu3 %v6156_v10 }
  0xe6   : > { %952 = vmatmul.f32.gmra.mxu0 %v6154_v9  ;;  %981 = vmatmul.f32.gmra.mxu1 %v6156_v10 }
  0xed   : > { %897 = vmatmul.f32.gmra.mxu2 %v6162_v16  ;;  %926 = vmatmul.f32.gmra.mxu3 %v6164_v17 }
  0xee   : > { %955 = vmatmul.f32.gmra.mxu0 %v6162_v16  ;;  %984 = vmatmul.f32.gmra.mxu1 %v6164_v17 }
 0x133   : > { %v762_v18 = vpop.f32.mrf.mxu0  ;;  %v791_v19 = vpop.f32.mrf.mxu1 }
 0x134   : > { %v792_v38 = vadd.f32 %v791_v19, %v762_v18 }
 0x138   : > { %v704_v20 = vpop.f32.mrf.mxu2  ;;  %v733_v21 = vpop.f32.mrf.mxu3 }
 0x139   : > { %v734_v46 = vadd.f32 %v733_v21, %v704_v20  ;;  %v4839_v20 = vld [vmem:[%s9306_s1 + $0x478] sm:$0xff]  ;;  %v4865_v21 = vld [vmem:[%s9306_s1 + $0x548] sm:$0xff] }
 0x13b   : > { %v765_v22 = vpop.f32.mrf.mxu0  ;;  %v794_v23 = vpop.f32.mrf.mxu1 }
 0x13c   : > { %v795_v34 = vadd.f32 %v794_v23, %v765_v22  ;;  %v806_v22 = vld [vmem:[%s9309_s4 + $0x18] sm:$0xff]  ;;  %v4837_v23 = vld [vmem:[%s9306_s1 + $0x468] sm:$0xff] }
 0x140   : > { %v707_v24 = vpop.f32.mrf.mxu2  ;;  %v736_v25 = vpop.f32.mrf.mxu3 }
 0x141   : > { %v737_v44 = vadd.f32 %v736_v25, %v707_v24 }
 0x143   : > { %v768_v26 = vpop.f32.mrf.mxu0  ;;  %v797_v27 = vpop.f32.mrf.mxu1 }
 0x144   : > { %v798_v33 = vadd.f32 %v797_v27, %v768_v26  ;;  %v4863_v26 = vld [vmem:[%s9306_s1 + $0x538] sm:$0xff] }
 0x148   : > { %v710_v28 = vpop.f32.mrf.mxu2  ;;  %v739_v29 = vpop.f32.mrf.mxu3 }
 0x149   : > { %v740_v40 = vadd.f32 %v739_v29, %v710_v28  ;;  %v4835_v28 = vld [vmem:[%s9306_s1 + $0x458] sm:$0xff]  ;;  %v4861_v29 = vld [vmem:[%s9306_s1 + $0x528] sm:$0xff] }
 0x14b   : > { %v771_v30 = vpop.f32.mrf.mxu0  ;;  %v800_v31 = vpop.f32.mrf.mxu1 }
 0x14c   : > { %v801_v32 = vadd.f32 %v800_v31, %v771_v30  ;;  %v4833_v31 = vld [vmem:[%s9306_s1 + $0x448] sm:$0xff] }
 0x14e   : > { %1117 = vmatpush.msrb.mxu1 %v801_v32  ;;  %v4859_v32 = vld [vmem:[%s9306_s1 + $0x518] sm:$0xff] }
 0x150   : > { %1118 = vmatpush.msrb.mxu1 %v798_v33  ;;  %v713_v35 = vpop.f32.mrf.mxu2  ;;  %v742_v36 = vpop.f32.mrf.mxu3 }
 0x151   : > { %v743_v37 = vadd.f32 %v742_v36, %v713_v35 }
 0x152   : > { %1119 = vmatpush.msrb.mxu1 %v795_v34 }
 0x153   : > { %v6189_v41 = vpop.f32.mrf.mxu0  ;;  %v6191_v42 = vpop.f32.mrf.mxu1  ;;  %1088 = vmatpush.msrb.mxu0 %v743_v37  ;;  %v4831_v37 = vld [vmem:[%s9306_s1 + $0x438] sm:$0xff] }
 0x154   : > { %1120 = vmatpush.msrb.mxu1 %v792_v38  ;;  %v977_v38 = vadd.f32 %v6191_v42, %v6189_v41  ;;  %v4886_v41 = vld [vmem:[%s9306_s1 + $0x5f0] sm:$0xff]  ;;  %v4829_v42 = vld [vmem:[%s9306_s1 + $0x428] sm:$0xff] }
 0x155   : > { %4820 = vmatmul.msk.f32.vlgmr.msrb.gmra.mxu1 %vm993_vm0, %v803_v39  ;;  %1089 = vmatpush.msrb.mxu0 %v740_v40  ;;  %v4804_v40 = vld [vmem:[%s9309_s4 + $0x20] sm:$0xff] }
 0x156   : > { %1286 = vmatpush.msra.mxu1 %v4887_v43 }
 0x157   : > { %1090 = vmatpush.msrb.mxu0 %v737_v44  ;;  %v4962_v44 = vld [vmem:[%s9306_s1 + $0x7f0] sm:$0xff] }
 0x158   : > { %1287 = vmatpush.msra.mxu1 %v4885_v45  ;;  %v6203_v48 = vpop.f32.mrf.mxu2  ;;  %v6205_v49 = vpop.f32.mrf.mxu3 }
 0x159   : > { %1091 = vmatpush.msrb.mxu0 %v734_v46  ;;  %v4884_v46 = vld [vmem:[%s9306_s1 + $0x5e0] sm:$0xff] }
 0x15a   : > { %1288 = vmatpush.msra.mxu1 %v4883_v47  ;;  %4816 = vmatmul.msk.f32.vlgmr.msrb.gmra.mxu0 %vm993_vm0, %v803_v39  ;;  %v4857_v39 = vld [vmem:[%s9306_s1 + $0x508] sm:$0xff]  ;;  %v4827_v47 = vld [vmem:[%s9306_s1 + $0x418] sm:$0xff] }
 0x15b   : > { %v950_v54 = vpop.f32.mrf.mxu0  ;;  %v979_v57 = vpop.f32.mrf.mxu1  ;;  %1257 = vmatpush.msra.mxu0 %v4855_v50  ;;  %v4960_v50 = vld [vmem:[%s9306_s1 + $0x7e0] sm:$0xff] }
 0x15c   : > { %1289 = vmatpush.msra.mxu1 %v4881_v51  ;;  %v980_v33 = vadd.f32 %v979_v57, %v950_v54  ;;  %v919_v51 = vadd.f32 %v6205_v49, %v6203_v48  ;;  %v4958_v54 = vld [vmem:[%s9306_s1 + $0x7d0] sm:$0xff]  ;;  %v4880_v49 = vld [vmem:[%s9306_s1 + $0x5c0] sm:$0xff] }
 0x15d   : > { %4821 = vmatmul.msk.f32.gmra.mxu1 %vm993_vm0, %v804_v52  ;;  %1258 = vmatpush.msra.mxu0 %v4853_v53  ;;  %v4825_v53 = vld [vmem:[%s9306_s1 + $0x408] sm:$0xff]  ;;  %v4854_v48 = vld [vmem:[%s9306_s1 + $0x4f0] sm:$0xff] }
 0x15e   : > { %1290 = vmatpush.msra.mxu1 %v4879_v58  ;;  %v4930_v57 = vld [vmem:[%s9306_s1 + $0x6f0] sm:$0xff]  ;;  %v4956_v58 = vld [vmem:[%s9306_s1 + $0x7c0] sm:$0xff] }
 0x15f   : > { %1259 = vmatpush.msra.mxu0 %v4851_v59  ;;  %v4805_v59 = vld [vmem:[%s9309_s4 + $0x28] sm:$0xff] }
 0x160   : > { %1291 = vmatpush.msra.mxu1 %v4877_v60  ;;  %v6236_v63 = vpop.f32.mrf.mxu2  ;;  %v6238_v0 = vpop.f32.mrf.mxu3  ;;  %v4852_v60 = vld [vmem:[%s9306_s1 + $0x4e0] sm:$0xff] }
 0x161   : > { %1260 = vmatpush.msra.mxu0 %v4849_v61  ;;  %v922_v45 = vadd.f32 %v6238_v0, %v6236_v63  ;;  %v4878_v61 = vld [vmem:[%s9306_s1 + $0x5b0] sm:$0xff] }
 0x162   : > { %1292 = vmatpush.msra.mxu1 %v4875_v62  ;;  %4817 = vmatmul.msk.f32.gmra.mxu0 %vm993_vm0, %v804_v52  ;;  %v4882_v52 = vld [vmem:[%s9306_s1 + $0x5d0] sm:$0xff]  ;;  %v4928_v62 = vld [vmem:[%s9306_s1 + $0x6e0] sm:$0xff] }
 0x163   : > { %v953_v7 = vpop.f32.mrf.mxu0  ;;  %v982_v8 = vpop.f32.mrf.mxu1  ;;  %1261 = vmatpush.msra.mxu0 %v4847_v1  ;;  %v4954_v63 = vld [vmem:[%s9306_s1 + $0x7b0] sm:$0xff]  ;;  %v4876_v1 = vld [vmem:[%s9306_s1 + $0x5a0] sm:$0xff] }
 0x164   : > { %1293 = vmatpush.msra.mxu1 %v4873_v4  ;;  %v983_v30 = vadd.f32 %v982_v8, %v953_v7  ;;  %v4850_v0 = vld [vmem:[%s9306_s1 + $0x4d0] sm:$0xff]  ;;  %v4924_v8 = vld [vmem:[%s9306_s1 + $0x6c0] sm:$0xff] }
 0x165   : > { %4822 = vmatmul.msk.f32.gmra.mxu1 %vm993_vm0, %v805_v5  ;;  %1262 = vmatpush.msra.mxu0 %v4845_v6  ;;  %v4926_v4 = vld [vmem:[%s9306_s1 + $0x6d0] sm:$0xff]  ;;  %v4848_v6 = vld [vmem:[%s9306_s1 + $0x4c0] sm:$0xff] }
 0x166   : > { %1294 = vmatpush.msra.mxu1 %v4871_v11  ;;  %v4874_v7 = vld [vmem:[%s9306_s1 + $0x590] sm:$0xff] }
 0x167   : > { %1263 = vmatpush.msra.mxu0 %v4843_v12  ;;  %v4950_v11 = vld [vmem:[%s9306_s1 + $0x790] sm:$0xff] }
 0x168   : > { %1295 = vmatpush.msra.mxu1 %v4869_v13  ;;  %v895_v18 = vpop.f32.mrf.mxu2  ;;  %v924_v19 = vpop.f32.mrf.mxu3  ;;  %v4846_v12 = vld [vmem:[%s9306_s1 + $0x4b0] sm:$0xff]  ;;  %v4872_v13 = vld [vmem:[%s9306_s1 + $0x580] sm:$0xff] }
 0x169   : > { %1264 = vmatpush.msra.mxu0 %v4841_v14  ;;  %v925_v43 = vadd.f32 %v924_v19, %v895_v18  ;;  %v4922_v14 = vld [vmem:[%s9306_s1 + $0x6b0] sm:$0xff]  ;;  %v4844_v19 = vld [vmem:[%s9306_s1 + $0x4a0] sm:$0xff] }
 0x16a   : > { %1296 = vmatpush.msra.mxu1 %v4867_v15  ;;  %4818 = vmatmul.msk.f32.gmra.mxu0 %vm993_vm0, %v805_v5  ;;  %v4952_v5 = vld [vmem:[%s9306_s1 + $0x7a0] sm:$0xff]  ;;  %v4806_v18 = vld [vmem:[%s9309_s4 + $0x30] sm:$0xff] }
 0x16b   : > { %v956_v24 = vpop.f32.mrf.mxu0  ;;  %v985_v25 = vpop.f32.mrf.mxu1  ;;  %1265 = vmatpush.msra.mxu0 %v4839_v20  ;;  %v4948_v15 = vld [vmem:[%s9306_s1 + $0x780] sm:$0xff]  ;;  %v4870_v20 = vld [vmem:[%s9306_s1 + $0x570] sm:$0xff] }
 0x16c   : > { %v986_v27 = vadd.f32 %v985_v25, %v956_v24  ;;  %1297 = vmatpush.msra.mxu1 %v4865_v21  ;;  %v4920_v21 = vld [vmem:[%s9306_s1 + $0x6a0] sm:$0xff]  ;;  %v4918_v25 = vld [vmem:[%s9306_s1 + $0x690] sm:$0xff] }
 0x16d   : > { %4823 = vmatmul.msk.f32.gmra.mxu1 %vm993_vm0, %v806_v22  ;;  %1266 = vmatpush.msra.mxu0 %v4837_v23  ;;  %v4842_v23 = vld [vmem:[%s9306_s1 + $0x490] sm:$0xff]  ;;  %v4868_v24 = vld [vmem:[%s9306_s1 + $0x560] sm:$0xff] }
 0x16e   : > { %1047 = vmatpush.msra.mxu3 %v986_v27  ;;  %1298 = vmatpush.msra.mxu1 %v4863_v26  ;;  %v4944_v26 = vld [vmem:[%s9306_s1 + $0x760] sm:$0xff] }
 0x16f   : > { %1267 = vmatpush.msra.mxu0 %v4835_v28  ;;  %v4840_v27 = vld [vmem:[%s9306_s1 + $0x480] sm:$0xff]  ;;  %v4866_v28 = vld [vmem:[%s9306_s1 + $0x550] sm:$0xff] }
 0x170   : > { %1048 = vmatpush.msra.mxu3 %v983_v30  ;;  %1299 = vmatpush.msra.mxu1 %v4861_v29  ;;  %v898_v34 = vpop.f32.mrf.mxu2  ;;  %v927_v35 = vpop.f32.mrf.mxu3  ;;  %v4916_v29 = vld [vmem:[%s9306_s1 + $0x680] sm:$0xff]  ;;  %v4942_v30 = vld [vmem:[%s9306_s1 + $0x750] sm:$0xff] }
 0x171   : > { %v928_v36 = vadd.f32 %v927_v35, %v898_v34  ;;  %1268 = vmatpush.msra.mxu0 %v4833_v31  ;;  %v4838_v31 = vld [vmem:[%s9306_s1 + $0x470] sm:$0xff]  ;;  %v4940_v34 = vld [vmem:[%s9306_s1 + $0x740] sm:$0xff]  ;;  %v4807_v35 = vld [vmem:[%s9309_s4 + $0x38] sm:$0xff] }
 0x172   : > { %1049 = vmatpush.msra.mxu3 %v980_v33  ;;  %1300 = vmatpush.msra.mxu1 %v4859_v32  ;;  %v4864_v32 = vld [vmem:[%s9306_s1 + $0x540] sm:$0xff]  ;;  %v4914_v33 = vld [vmem:[%s9306_s1 + $0x670] sm:$0xff] }
 0x173   : > { %4819 = vmatmul.msk.f32.gmra.mxu0 %vm993_vm0, %v806_v22  ;;  %1018 = vmatpush.msra.mxu2 %v928_v36  ;;  %v4946_v22 = vld [vmem:[%s9306_s1 + $0x770] sm:$0xff]  ;;  %v4836_v36 = vld [vmem:[%s9306_s1 + $0x460] sm:$0xff] }
 0x174   : > { %1050 = vmatpush.msra.mxu3 %v977_v38  ;;  %1269 = vmatpush.msra.mxu0 %v4831_v37  ;;  %v4862_v37 = vld [vmem:[%s9306_s1 + $0x530] sm:$0xff]  ;;  %v4912_v38 = vld [vmem:[%s9306_s1 + $0x660] sm:$0xff] }
 0x175   : > { %1301 = vmatpush.msra.mxu1 %v4857_v39  ;;  %4812 = vmatmul.msk.f32.vlgmr.msra.gmra.mxu3 %vm993_vm0, %v4804_v40  ;;  %v4938_v39 = vld [vmem:[%s9306_s1 + $0x730] sm:$0xff] }
 0x176   : > { %1302 = vmatmul.f32.vlgmr.msra.gmra.mxu1 %v6128_v56  ;;  %1019 = vmatpush.msra.mxu2 %v925_v43  ;;  %v4860_v43 = vld [vmem:[%s9306_s1 + $0x520] sm:$0xff] }
 0x177   : > { %1228 = vmatpush.msrb.mxu3 %v4886_v41  ;;  %1270 = vmatpush.msra.mxu0 %v4829_v42  ;;  %v4910_v41 = vld [vmem:[%s9306_s1 + $0x650] sm:$0xff]  ;;  %v4936_v42 = vld [vmem:[%s9306_s1 + $0x720] sm:$0xff] }
 0x178   : > { %1492 = vmatpush.msrb.mxu1 %v4962_v44  ;;  %1020 = vmatpush.msra.mxu2 %v922_v45  ;;  %v4832_v44 = vld [vmem:[%s9306_s1 + $0x440] sm:$0xff]  ;;  %v4858_v45 = vld [vmem:[%s9306_s1 + $0x510] sm:$0xff] }
 0x179   : > { %1229 = vmatpush.msrb.mxu3 %v4884_v46  ;;  %1271 = vmatpush.msra.mxu0 %v4827_v47  ;;  %v4908_v46 = vld [vmem:[%s9306_s1 + $0x640] sm:$0xff]  ;;  %v4934_v47 = vld [vmem:[%s9306_s1 + $0x710] sm:$0xff] }
 0x17a   : > { %1493 = vmatpush.msrb.mxu1 %v4960_v50  ;;  %1021 = vmatpush.msra.mxu2 %v919_v51  ;;  %v4830_v50 = vld [vmem:[%s9306_s1 + $0x430] sm:$0xff]  ;;  %v4856_v51 = vld [vmem:[%s9306_s1 + $0x500] sm:$0xff] }
 0x17b   : > { %1230 = vmatpush.msrb.mxu3 %v4882_v52  ;;  %1272 = vmatpush.msra.mxu0 %v4825_v53  ;;  %v4906_v52 = vld [vmem:[%s9306_s1 + $0x630] sm:$0xff]  ;;  %v4932_v53 = vld [vmem:[%s9306_s1 + $0x700] sm:$0xff] }
 0x17c   : > { %1494 = vmatpush.msrb.mxu1 %v4958_v54  ;;  %4808 = vmatmul.msk.f32.vlgmr.msra.gmra.mxu2 %vm993_vm0, %v4804_v40  ;;  %v4834_v40 = vld [vmem:[%s9306_s1 + $0x450] sm:$0xff]  ;;  %v4828_v54 = vld [vmem:[%s9306_s1 + $0x420] sm:$0xff] }
 0x17d   : > { %1273 = vmatmul.f32.vlgmr.msra.gmra.mxu0 %v6126_v55  ;;  %1199 = vmatpush.msrb.mxu2 %v4854_v48  ;;  %v4904_v48 = vld [vmem:[%s9306_s1 + $0x620] sm:$0xff] }
 0x17e   : > { %1231 = vmatpush.msrb.mxu3 %v4880_v49  ;;  %1463 = vmatpush.msrb.mxu0 %v4930_v57  ;;  %v4826_v49 = vld [vmem:[%s9306_s1 + $0x410] sm:$0xff] }
 0x17f   : > { %1495 = vmatpush.msrb.mxu1 %v4956_v58  ;;  %4813 = vmatmul.msk.f32.gmra.mxu3 %vm993_vm0, %v4805_v59  ;;  %v4902_v57 = vld [vmem:[%s9306_s1 + $0x610] sm:$0xff]  ;;  %v4824_v58 = vld [vmem:[%s9306_s1 + $0x400] sm:$0xff] }
 0x180   : > { %1305 = vmatmul.f32.gmra.mxu1 %v6148_v3  ;;  %1200 = vmatpush.msrb.mxu2 %v4852_v60 }
 0x181   : > { %1232 = vmatpush.msrb.mxu3 %v4878_v61  ;;  %1464 = vmatpush.msrb.mxu0 %v4928_v62 }
 0x182   : > { %1496 = vmatpush.msrb.mxu1 %v4954_v63  ;;  %1201 = vmatpush.msrb.mxu2 %v4850_v0 }
 0x183   : > { %1233 = vmatpush.msrb.mxu3 %v4876_v1  ;;  %1465 = vmatpush.msrb.mxu0 %v4926_v4 }
 0x184   : > { %1497 = vmatpush.msrb.mxu1 %v4952_v5  ;;  %1202 = vmatpush.msrb.mxu2 %v4848_v6 }
 0x185   : > { %1234 = vmatpush.msrb.mxu3 %v4874_v7  ;;  %1466 = vmatpush.msrb.mxu0 %v4924_v8 }
 0x186   : > { %1498 = vmatpush.msrb.mxu1 %v4950_v11  ;;  %4809 = vmatmul.msk.f32.gmra.mxu2 %vm993_vm0, %v4805_v59  ;;  %v4900_v59 = vld [vmem:[%s9306_s1 + $0x600] sm:$0xff] }
 0x187   : > { %1276 = vmatmul.f32.gmra.mxu0 %v6146_v2  ;;  %1203 = vmatpush.msrb.mxu2 %v4846_v12 }
 0x188   : > { %1235 = vmatpush.msrb.mxu3 %v4872_v13  ;;  %1467 = vmatpush.msrb.mxu0 %v4922_v14 }
 0x189   : > { %1499 = vmatpush.msrb.mxu1 %v4948_v15  ;;  %4814 = vmatmul.msk.f32.gmra.mxu3 %vm993_vm0, %v4806_v18 }
 0x18a   : > { %1308 = vmatmul.f32.gmra.mxu1 %v6156_v10  ;;  %1204 = vmatpush.msrb.mxu2 %v4844_v19 }
 0x18b   : > { %1236 = vmatpush.msrb.mxu3 %v4870_v20  ;;  %1468 = vmatpush.msrb.mxu0 %v4920_v21 }
 0x18c   : > { %1500 = vmatpush.msrb.mxu1 %v4946_v22  ;;  %1205 = vmatpush.msrb.mxu2 %v4842_v23 }
 0x18d   : > { %1237 = vmatpush.msrb.mxu3 %v4868_v24  ;;  %1469 = vmatpush.msrb.mxu0 %v4918_v25 }
 0x18e   : > { %1501 = vmatpush.msrb.mxu1 %v4944_v26  ;;  %1206 = vmatpush.msrb.mxu2 %v4840_v27 }
 0x18f   : > { %1238 = vmatpush.msrb.mxu3 %v4866_v28  ;;  %1470 = vmatpush.msrb.mxu0 %v4916_v29 }
 0x190   : > { %1502 = vmatpush.msrb.mxu1 %v4942_v30  ;;  %4810 = vmatmul.msk.f32.gmra.mxu2 %vm993_vm0, %v4806_v18 }
 0x191   : > { %1279 = vmatmul.f32.gmra.mxu0 %v6154_v9  ;;  %1207 = vmatpush.msrb.mxu2 %v4838_v31  ;;  %v6593_v31 = vld [vmem:[%s9309_s4 + $0x40] sm:$0xff] }
 0x192   : > { %1239 = vmatpush.msrb.mxu3 %v4864_v32  ;;  %1471 = vmatpush.msrb.mxu0 %v4914_v33  ;;  %v4963_v33 = vld [vmem:[%s9306_s1 + $0x7f8] sm:$0xff] }
 0x193   : > { %1503 = vmatpush.msrb.mxu1 %v4940_v34  ;;  %4815 = vmatmul.msk.f32.gmra.mxu3 %vm993_vm0, %v4807_v35 }
 0x194   : > { %1311 = vmatmul.f32.gmra.mxu1 %v6164_v17  ;;  %1208 = vmatpush.msrb.mxu2 %v4836_v36  ;;  %v4959_v36 = vld [vmem:[%s9306_s1 + $0x7d8] sm:$0xff] }
 0x195   : > { %1240 = vmatpush.msrb.mxu3 %v4862_v37  ;;  %1472 = vmatpush.msrb.mxu0 %v4912_v38 }
 0x196   : > { %1504 = vmatpush.msrb.mxu1 %v4938_v39  ;;  %1209 = vmatpush.msrb.mxu2 %v4834_v40  ;;  %v4957_v39 = vld [vmem:[%s9306_s1 + $0x7c8] sm:$0xff] }
 0x197   : > { %1241 = vmatpush.msrb.mxu3 %v4860_v43  ;;  %1473 = vmatpush.msrb.mxu0 %v4910_v41  ;;  %v6616_v40 = vld [vmem:[%s9309_s4 + $0x48] sm:$0xff]  ;;  %v4955_v43 = vld [vmem:[%s9306_s1 + $0x7b8] sm:$0xff] }
 0x198   : > { %1505 = vmatpush.msrb.mxu1 %v4936_v42  ;;  %1210 = vmatpush.msrb.mxu2 %v4832_v44  ;;  %v4953_v44 = vld [vmem:[%s9306_s1 + $0x7a8] sm:$0xff] }
 0x199   : > { %1242 = vmatpush.msrb.mxu3 %v4858_v45  ;;  %1474 = vmatpush.msrb.mxu0 %v4908_v46  ;;  %v4951_v45 = vld [vmem:[%s9306_s1 + $0x798] sm:$0xff] }
 0x19a   : > { %1506 = vmatpush.msrb.mxu1 %v4934_v47  ;;  %4811 = vmatmul.msk.f32.gmra.mxu2 %vm993_vm0, %v4807_v35  ;;  %v4961_v35 = vld [vmem:[%s9306_s1 + $0x7e8] sm:$0xff] }
 0x19b   : > { %1282 = vmatmul.f32.gmra.mxu0 %v6162_v16  ;;  %1211 = vmatpush.msrb.mxu2 %v4830_v50  ;;  %v4949_v47 = vld [vmem:[%s9306_s1 + $0x788] sm:$0xff] }
 0x19c   : > { %1243 = vmatpush.msrb.mxu3 %v4856_v51  ;;  %1475 = vmatpush.msrb.mxu0 %v4906_v52  ;;  %v6635_v51 = vld [vmem:[%s9309_s4 + $0x50] sm:$0xff]  ;;  %v4947_v52 = vld [vmem:[%s9306_s1 + $0x778] sm:$0xff] }
 0x19d   : > { %1507 = vmatpush.msrb.mxu1 %v4932_v53  ;;  %1244 = vmatmul.f32.vlgmr.msrb.gmra.mxu3 %v6128_v56 }
 0x19e   : > { %1508 = vmatmul.f32.vlgmr.msrb.gmra.mxu1 %v6128_v56  ;;  %1212 = vmatpush.msrb.mxu2 %v4828_v54  ;;  %v4945_v54 = vld [vmem:[%s9306_s1 + $0x768] sm:$0xff] }
 0x19f   : > { %1476 = vmatpush.msrb.mxu0 %v4904_v48 }
 0x1a0   : > { %1213 = vmatpush.msrb.mxu2 %v4826_v49  ;;  %v4943_v49 = vld [vmem:[%s9306_s1 + $0x758] sm:$0xff] }
 0x1a1   : > { %1477 = vmatpush.msrb.mxu0 %v4902_v57 }
 0x1a2   : > { %1214 = vmatpush.msrb.mxu2 %v4824_v58  ;;  %v4941_v58 = vld [vmem:[%s9306_s1 + $0x748] sm:$0xff] }
 0x1a3   : > { %1478 = vmatpush.msrb.mxu0 %v4900_v59  ;;  %1215 = vmatmul.f32.vlgmr.msrb.gmra.mxu2 %v6126_v55  ;;  %v6654_v59 = vld [vmem:[%s9309_s4 + $0x58] sm:$0xff] }
 0x1a4   : > { %1479 = vmatmul.f32.vlgmr.msrb.gmra.mxu0 %v6126_v55 }
 0x1a5   : > { %1247 = vmatmul.f32.gmra.mxu3 %v6148_v3 }
 0x1a6   : > { %1511 = vmatmul.f32.gmra.mxu1 %v6148_v3 }
 0x1ab   : > { %1218 = vmatmul.f32.gmra.mxu2 %v6146_v2 }
 0x1ac   : > { %1482 = vmatmul.f32.gmra.mxu0 %v6146_v2 }
 0x1ad   : > { %1250 = vmatmul.f32.gmra.mxu3 %v6156_v10 }
 0x1ae   : > { %1514 = vmatmul.f32.gmra.mxu1 %v6156_v10 }
 0x1b3   : > { %1221 = vmatmul.f32.gmra.mxu2 %v6154_v9 }
 0x1b4   : > { %1485 = vmatmul.f32.gmra.mxu0 %v6154_v9 }
 0x1b5   : > { %1253 = vmatmul.f32.gmra.mxu3 %v6164_v17 }
 0x1b6   : > { %1517 = vmatmul.f32.gmra.mxu1 %v6164_v17 }
 0x1bb   : > { %1224 = vmatmul.f32.gmra.mxu2 %v6162_v16 }
 0x1bc   : > { %1488 = vmatmul.f32.gmra.mxu0 %v6162_v16 }
 0x1d2   : > { %v6556_v60 = vpop.f32.mrf.mxu1 }
 0x1d7   : > { %v6558_v61 = vpop.f32.mrf.mxu0 }
 0x1da   : > { %v6560_v62 = vpop.f32.mrf.mxu1 }
 0x1df   : > { %v6562_v63 = vpop.f32.mrf.mxu0 }
 0x1e2   : > { %v6564_v0 = vpop.f32.mrf.mxu1 }
 0x1e7   : > { %v6566_v1 = vpop.f32.mrf.mxu0 }
 0x1ea   : > { %v6568_v4 = vpop.f32.mrf.mxu1 }
 0x1f0   : > { %v6570_v5 = vpop.f32.mrf.mxu0 }
 0x1f3   : > { %v1303_v6 = vpop.f32.mrf.mxu1 }
 0x1f8   : > { %v6572_v7 = vpop.f32.mrf.mxu3 }
 0x1fa   : > { %v1274_v8 = vpop.f32.mrf.mxu0 }
 0x1fb   : > { %v1304_v30 = vadd.f32 %v1303_v6, %v1274_v8  ;;  %v4939_v6 = vld [vmem:[%s9306_s1 + $0x738] sm:$0xff] }
 0x1fd   : > { %v1306_v11 = vpop.f32.mrf.mxu1 }
 0x1ff   : > { %v6574_v12 = vpop.f32.mrf.mxu2 }
 0x202   : > { %v6576_v13 = vpop.f32.mrf.mxu3 }
 0x204   : > { %v1277_v14 = vpop.f32.mrf.mxu0 }
 0x205   : > { %v1307_v28 = vadd.f32 %v1306_v11, %v1277_v14 }
 0x207   : > { %v1309_v15 = vpop.f32.mrf.mxu1 }
 0x209   : > { %v6578_v18 = vpop.f32.mrf.mxu2 }
 0x20c   : > { %v6580_v19 = vpop.f32.mrf.mxu3 }
 0x20e   : > { %v1280_v20 = vpop.f32.mrf.mxu0 }
 0x20f   : > { %v1310_v26 = vadd.f32 %v1309_v15, %v1280_v20  ;;  %v4937_v15 = vld [vmem:[%s9306_s1 + $0x728] sm:$0xff] }
 0x211   : > { %v1312_v21 = vpop.f32.mrf.mxu1 }
 0x213   : > { %v6582_v22 = vpop.f32.mrf.mxu2 }
 0x216   : > { %v6584_v23 = vpop.f32.mrf.mxu3 }
 0x218   : > { %v1283_v24 = vpop.f32.mrf.mxu0 }
 0x219   : > { %v1313_v25 = vadd.f32 %v1312_v21, %v1283_v24  ;;  %v4935_v21 = vld [vmem:[%s9306_s1 + $0x718] sm:$0xff] }
 0x21b   : > { %v6586_v27 = vpop.f32.mrf.mxu1  ;;  %1373 = vmatpush.msra.mxu3 %v1313_v25 }
 0x21d   : > { %1374 = vmatpush.msra.mxu3 %v1310_v26  ;;  %v6588_v29 = vpop.f32.mrf.mxu2 }
 0x21f   : > { %1375 = vmatpush.msra.mxu3 %v1307_v28  ;;  %v4933_v28 = vld [vmem:[%s9306_s1 + $0x708] sm:$0xff] }
 0x220   : > { %v6595_v32 = vpop.f32.mrf.mxu3 }
 0x221   : > { %v1480_v34 = vpop.f32.mrf.mxu0  ;;  %1376 = vmatpush.msra.mxu3 %v1304_v30 }
 0x222   : > { %4896 = vmatmul.msk.f32.vlgmr.msra.gmra.mxu3 %vm993_vm0, %v6593_v31 }
 0x223   : > { %1550 = vmatpush.msrb.mxu3 %v4963_v33  ;;  %v1512_v37 = vpop.f32.mrf.mxu1  ;;  %v1510_v33 = vadd.f32 %v6586_v27, %v1480_v34  ;;  %v5036_v34 = vld [vmem:[%s9306_s1 + $0x9e0] sm:$0xff] }
 0x225   : > { %1551 = vmatpush.msrb.mxu3 %v4961_v35  ;;  %v6674_v35 = vld [vmem:[%s9309_s4 + $0x60] sm:$0xff] }
 0x226   : > { %v6608_v38 = vpop.f32.mrf.mxu2 }
 0x227   : > { %1552 = vmatpush.msrb.mxu3 %v4959_v36 }
 0x228   : > { %v1248_v42 = vpop.f32.mrf.mxu3 }
 0x229   : > { %v1483_v41 = vpop.f32.mrf.mxu0  ;;  %1553 = vmatpush.msrb.mxu3 %v4957_v39  ;;  %v5007_v39 = vld [vmem:[%s9306_s1 + $0x8f8] sm:$0xff] }
 0x22a   : > { %4897 = vmatmul.msk.f32.gmra.mxu3 %vm993_vm0, %v6616_v40  ;;  %v1513_v24 = vadd.f32 %v1512_v37, %v1483_v41  ;;  %v5038_v37 = vld [vmem:[%s9306_s1 + $0x9f0] sm:$0xff]  ;;  %v1246_v41 = vadd.f32 %v6595_v32, %v6608_v38  ;;  %v5032_v32 = vld [vmem:[%s9306_s1 + $0x9c0] sm:$0xff]  ;;  %v5001_v38 = vld [vmem:[%s9306_s1 + $0x8c8] sm:$0xff] }
 0x22b   : > { %1554 = vmatpush.msrb.mxu3 %v4955_v43  ;;  %v1515_v50 = vpop.f32.mrf.mxu1  ;;  %v5005_v43 = vld [vmem:[%s9306_s1 + $0x8e8] sm:$0xff] }
 0x22d   : > { %1555 = vmatpush.msrb.mxu3 %v4953_v44  ;;  %v5003_v44 = vld [vmem:[%s9306_s1 + $0x8d8] sm:$0xff] }
 0x22e   : > { %v1219_v46 = vpop.f32.mrf.mxu2 }
 0x22f   : > { %1556 = vmatpush.msrb.mxu3 %v4951_v45  ;;  %v1249_v27 = vadd.f32 %v1248_v42, %v1219_v46  ;;  %v5034_v42 = vld [vmem:[%s9306_s1 + $0x9d0] sm:$0xff]  ;;  %v4931_v45 = vld [vmem:[%s9306_s1 + $0x6f8] sm:$0xff]  ;;  %v6713_v46 = vld [vmem:[%s9309_s4 + $0x68] sm:$0xff] }
 0x230   : > { %v1251_v48 = vpop.f32.mrf.mxu3 }
 0x231   : > { %v1486_v53 = vpop.f32.mrf.mxu0  ;;  %1557 = vmatpush.msrb.mxu3 %v4949_v47  ;;  %v4929_v47 = vld [vmem:[%s9306_s1 + $0x6e8] sm:$0xff] }
 0x232   : > { %4898 = vmatmul.msk.f32.gmra.mxu3 %vm993_vm0, %v6635_v51  ;;  %v1516_v20 = vadd.f32 %v1515_v50, %v1486_v53  ;;  %v5030_v50 = vld [vmem:[%s9306_s1 + $0x9b0] sm:$0xff]  ;;  %v5028_v53 = vld [vmem:[%s9306_s1 + $0x9a0] sm:$0xff] }
 0x233   : > { %1558 = vmatpush.msrb.mxu3 %v4947_v52  ;;  %v1518_v8 = vpop.f32.mrf.mxu1  ;;  %v4999_v52 = vld [vmem:[%s9306_s1 + $0x8b8] sm:$0xff] }
 0x235   : > { %1559 = vmatpush.msrb.mxu3 %v4945_v54  ;;  %v4997_v54 = vld [vmem:[%s9306_s1 + $0x8a8] sm:$0xff] }
 0x236   : > { %v1222_v57 = vpop.f32.mrf.mxu2 }
 0x237   : > { %1560 = vmatpush.msrb.mxu3 %v4943_v49  ;;  %v1252_v36 = vadd.f32 %v1251_v48, %v1222_v57  ;;  %v4925_v48 = vld [vmem:[%s9306_s1 + $0x6c8] sm:$0xff]  ;;  %v5026_v49 = vld [vmem:[%s9306_s1 + $0x990] sm:$0xff]  ;;  %v4995_v57 = vld [vmem:[%s9306_s1 + $0x898] sm:$0xff] }
 0x238   : > { %v1254_v25 = vpop.f32.mrf.mxu3 }
 0x239   : > { %v1489_v11 = vpop.f32.mrf.mxu0  ;;  %1561 = vmatpush.msrb.mxu3 %v4941_v58  ;;  %v4923_v58 = vld [vmem:[%s9306_s1 + $0x6b8] sm:$0xff] }
 0x23a   : > { %v1519_v14 = vadd.f32 %v1518_v8, %v1489_v11  ;;  %4899 = vmatmul.msk.f32.gmra.mxu3 %vm993_vm0, %v6654_v59  ;;  %v4993_v8 = vld [vmem:[%s9306_s1 + $0x888] sm:$0xff]  ;;  %v6759_v11 = vld [vmem:[%s9309_s4 + $0x70] sm:$0xff] }
 0x23b   : > { %1562 = vmatpush.msrb.mxu3 %v4939_v6  ;;  %v5024_v6 = vld [vmem:[%s9306_s1 + $0x980] sm:$0xff] }
 0x23c   : > { %1608 = vmatpush.msra.mxu0 %v1519_v14  ;;  %v4921_v14 = vld [vmem:[%s9306_s1 + $0x6a8] sm:$0xff] }
 0x23d   : > { %1563 = vmatpush.msrb.mxu3 %v4937_v15  ;;  %v5022_v15 = vld [vmem:[%s9306_s1 + $0x970] sm:$0xff] }
 0x23e   : > { %1609 = vmatpush.msra.mxu0 %v1516_v20  ;;  %v1225_v26 = vpop.f32.mrf.mxu2  ;;  %v4991_v20 = vld [vmem:[%s9306_s1 + $0x878] sm:$0xff] }
 0x23f   : > { %v1255_v30 = vadd.f32 %v1254_v25, %v1225_v26  ;;  %1564 = vmatpush.msrb.mxu3 %v4935_v21  ;;  %v5020_v21 = vld [vmem:[%s9306_s1 + $0x960] sm:$0xff]  ;;  %v4917_v25 = vld [vmem:[%s9306_s1 + $0x688] sm:$0xff]  ;;  %v5018_v26 = vld [vmem:[%s9306_s1 + $0x950] sm:$0xff] }
 0x240   : > { %1610 = vmatpush.msra.mxu0 %v1513_v24  ;;  %v4989_v24 = vld [vmem:[%s9306_s1 + $0x868] sm:$0xff] }
 0x241   : > { %1344 = vmatpush.msra.mxu2 %v1255_v30  ;;  %1565 = vmatpush.msrb.mxu3 %v4933_v28  ;;  %v4987_v28 = vld [vmem:[%s9306_s1 + $0x858] sm:$0xff] }
 0x242   : > { %1611 = vmatpush.msra.mxu0 %v1510_v33  ;;  %1566 = vmatmul.f32.vlgmr.msrb.gmra.mxu3 %v6128_v56  ;;  %v4915_v30 = vld [vmem:[%s9306_s1 + $0x678] sm:$0xff]  ;;  %v5016_v33 = vld [vmem:[%s9306_s1 + $0x940] sm:$0xff] }
 0x243   : > { %4968 = vmatmul.msk.f32.vlgmr.msra.gmra.mxu0 %vm993_vm0, %v6674_v35  ;;  %1345 = vmatpush.msra.mxu2 %v1252_v36  ;;  %v4985_v36 = vld [vmem:[%s9306_s1 + $0x848] sm:$0xff] }
 0x244   : > { %1756 = vmatpush.msra.mxu3 %v5038_v37  ;;  %1785 = vmatpush.msrb.mxu0 %v5007_v39  ;;  %v6805_v37 = vld [vmem:[%s9309_s4 + $0x78] sm:$0xff]  ;;  %v4913_v39 = vld [vmem:[%s9306_s1 + $0x668] sm:$0xff] }
 0x245   : > { %1346 = vmatpush.msra.mxu2 %v1249_v27  ;;  %v5014_v27 = vld [vmem:[%s9306_s1 + $0x930] sm:$0xff] }
 0x246   : > { %1757 = vmatpush.msra.mxu3 %v5036_v34  ;;  %1786 = vmatpush.msrb.mxu0 %v5005_v43  ;;  %v4983_v34 = vld [vmem:[%s9306_s1 + $0x838] sm:$0xff]  ;;  %v5012_v43 = vld [vmem:[%s9306_s1 + $0x920] sm:$0xff] }
 0x247   : > { %1347 = vmatpush.msra.mxu2 %v1246_v41  ;;  %v4981_v41 = vld [vmem:[%s9306_s1 + $0x828] sm:$0xff] }
 0x248   : > { %1758 = vmatpush.msra.mxu3 %v5034_v42  ;;  %1787 = vmatpush.msrb.mxu0 %v5003_v44  ;;  %v4909_v42 = vld [vmem:[%s9306_s1 + $0x648] sm:$0xff]  ;;  %v5010_v44 = vld [vmem:[%s9306_s1 + $0x910] sm:$0xff] }
 0x249   : > { %4892 = vmatmul.msk.f32.vlgmr.msra.gmra.mxu2 %vm993_vm0, %v6593_v31  ;;  %v4927_v31 = vld [vmem:[%s9306_s1 + $0x6d8] sm:$0xff] }
 0x24a   : > { %1521 = vmatpush.msrb.mxu2 %v4931_v45  ;;  %1759 = vmatpush.msra.mxu3 %v5032_v32  ;;  %v4979_v45 = vld [vmem:[%s9306_s1 + $0x818] sm:$0xff] }
 0x24b   : > { %1788 = vmatpush.msrb.mxu0 %v5001_v38  ;;  %1569 = vmatmul.f32.gmra.mxu3 %v6148_v3  ;;  %v4907_v32 = vld [vmem:[%s9306_s1 + $0x638] sm:$0xff]  ;;  %v5008_v38 = vld [vmem:[%s9306_s1 + $0x900] sm:$0xff] }
 0x24c   : > { %4969 = vmatmul.msk.f32.gmra.mxu0 %vm993_vm0, %v6713_v46  ;;  %1522 = vmatpush.msrb.mxu2 %v4929_v47  ;;  %v4977_v47 = vld [vmem:[%s9306_s1 + $0x808] sm:$0xff] }
 0x24d   : > { %1760 = vmatpush.msra.mxu3 %v5030_v50  ;;  %1789 = vmatpush.msrb.mxu0 %v4999_v52  ;;  %v4905_v50 = vld [vmem:[%s9306_s1 + $0x628] sm:$0xff]  ;;  %v5082_v52 = vld [vmem:[%s9306_s1 + $0xaf0] sm:$0xff] }
 0x24e   : > { %1523 = vmatpush.msrb.mxu2 %v4927_v31  ;;  %v4903_v31 = vld [vmem:[%s9306_s1 + $0x618] sm:$0xff] }
 0x24f   : > { %1761 = vmatpush.msra.mxu3 %v5028_v53  ;;  %1790 = vmatpush.msrb.mxu0 %v4997_v54  ;;  %v4901_v53 = vld [vmem:[%s9306_s1 + $0x608] sm:$0xff]  ;;  %v5078_v54 = vld [vmem:[%s9306_s1 + $0xad0] sm:$0xff] }
 0x250   : > { %1524 = vmatpush.msrb.mxu2 %v4925_v48  ;;  %v5006_v48 = vld [vmem:[%s9306_s1 + $0x8f0] sm:$0xff] }
 0x251   : > { %1762 = vmatpush.msra.mxu3 %v5026_v49  ;;  %1791 = vmatpush.msrb.mxu0 %v4995_v57  ;;  %v5076_v49 = vld [vmem:[%s9306_s1 + $0xac0] sm:$0xff] }
 0x252   : > { %4893 = vmatmul.msk.f32.gmra.mxu2 %vm993_vm0, %v6616_v40  ;;  %v4919_v40 = vld [vmem:[%s9306_s1 + $0x698] sm:$0xff]  ;;  %v5004_v57 = vld [vmem:[%s9306_s1 + $0x8e0] sm:$0xff] }
 0x253   : > { %1525 = vmatpush.msrb.mxu2 %v4923_v58  ;;  %1763 = vmatpush.msra.mxu3 %v5024_v6  ;;  %v5074_v58 = vld [vmem:[%s9306_s1 + $0xab0] sm:$0xff] }
 0x254   : > { %1792 = vmatpush.msrb.mxu0 %v4993_v8  ;;  %1572 = vmatmul.f32.gmra.mxu3 %v6156_v10  ;;  %v5002_v6 = vld [vmem:[%s9306_s1 + $0x8d0] sm:$0xff]  ;;  %v5072_v8 = vld [vmem:[%s9306_s1 + $0xaa0] sm:$0xff] }
 0x255   : > { %4970 = vmatmul.msk.f32.gmra.mxu0 %vm993_vm0, %v6759_v11  ;;  %1526 = vmatpush.msrb.mxu2 %v4921_v14  ;;  %v5000_v14 = vld [vmem:[%s9306_s1 + $0x8c0] sm:$0xff] }
 0x256   : > { %1764 = vmatpush.msra.mxu3 %v5022_v15  ;;  %1793 = vmatpush.msrb.mxu0 %v4991_v20  ;;  %v5070_v15 = vld [vmem:[%s9306_s1 + $0xa90] sm:$0xff] }
 0x257   : > { %1527 = vmatpush.msrb.mxu2 %v4919_v40  ;;  %v4998_v20 = vld [vmem:[%s9306_s1 + $0x8b0] sm:$0xff]  ;;  %v5068_v40 = vld [vmem:[%s9306_s1 + $0xa80] sm:$0xff] }
 0x258   : > { %1765 = vmatpush.msra.mxu3 %v5020_v21  ;;  %1794 = vmatpush.msrb.mxu0 %v4989_v24  ;;  %v4996_v21 = vld [vmem:[%s9306_s1 + $0x8a0] sm:$0xff]  ;;  %v5066_v24 = vld [vmem:[%s9306_s1 + $0xa70] sm:$0xff] }
 0x259   : > { %1528 = vmatpush.msrb.mxu2 %v4917_v25  ;;  %v4994_v25 = vld [vmem:[%s9306_s1 + $0x890] sm:$0xff] }
 0x25a   : > { %1766 = vmatpush.msra.mxu3 %v5018_v26  ;;  %1795 = vmatpush.msrb.mxu0 %v4987_v28  ;;  %v5064_v26 = vld [vmem:[%s9306_s1 + $0xa60] sm:$0xff] }
 0x25b   : > { %4894 = vmatmul.msk.f32.gmra.mxu2 %vm993_vm0, %v6635_v51  ;;  %v4911_v51 = vld [vmem:[%s9306_s1 + $0x658] sm:$0xff]  ;;  %v4992_v28 = vld [vmem:[%s9306_s1 + $0x880] sm:$0xff] }
 0x25c   : > { %1529 = vmatpush.msrb.mxu2 %v4915_v30  ;;  %1767 = vmatpush.msra.mxu3 %v5016_v33  ;;  %v5062_v30 = vld [vmem:[%s9306_s1 + $0xa50] sm:$0xff] }
 0x25d   : > { %1796 = vmatpush.msrb.mxu0 %v4985_v36  ;;  %1575 = vmatmul.f32.gmra.mxu3 %v6164_v17  ;;  %v4990_v33 = vld [vmem:[%s9306_s1 + $0x870] sm:$0xff]  ;;  %v5060_v36 = vld [vmem:[%s9306_s1 + $0xa40] sm:$0xff] }
 0x25e   : > { %4971 = vmatmul.msk.f32.gmra.mxu0 %vm993_vm0, %v6805_v37  ;;  %1530 = vmatpush.msrb.mxu2 %v4913_v39  ;;  %v4988_v39 = vld [vmem:[%s9306_s1 + $0x860] sm:$0xff] }
 0x25f   : > { %1768 = vmatpush.msra.mxu3 %v5014_v27  ;;  %1797 = vmatpush.msrb.mxu0 %v4983_v34  ;;  %v5058_v27 = vld [vmem:[%s9306_s1 + $0xa30] sm:$0xff] }
 0x260   : > { %1531 = vmatpush.msrb.mxu2 %v4911_v51  ;;  %v4986_v34 = vld [vmem:[%s9306_s1 + $0x850] sm:$0xff]  ;;  %v5056_v51 = vld [vmem:[%s9306_s1 + $0xa20] sm:$0xff] }
 0x261   : > { %1769 = vmatpush.msra.mxu3 %v5012_v43  ;;  %1798 = vmatpush.msrb.mxu0 %v4981_v41  ;;  %v4984_v43 = vld [vmem:[%s9306_s1 + $0x840] sm:$0xff]  ;;  %v5054_v41 = vld [vmem:[%s9306_s1 + $0xa10] sm:$0xff] }
 0x262   : > { %1532 = vmatpush.msrb.mxu2 %v4909_v42  ;;  %v4982_v42 = vld [vmem:[%s9306_s1 + $0x830] sm:$0xff] }
 0x263   : > { %1770 = vmatpush.msra.mxu3 %v5010_v44  ;;  %1799 = vmatpush.msrb.mxu0 %v4979_v45  ;;  %v5052_v44 = vld [vmem:[%s9306_s1 + $0xa00] sm:$0xff] }
 0x264   : > { %4895 = vmatmul.msk.f32.gmra.mxu2 %vm993_vm0, %v6654_v59  ;;  %v5080_v59 = vld [vmem:[%s9306_s1 + $0xae0] sm:$0xff] }
 0x265   : > { %1533 = vmatpush.msrb.mxu2 %v4907_v32  ;;  %1771 = vmatpush.msra.mxu3 %v5008_v38  ;;  %v4980_v45 = vld [vmem:[%s9306_s1 + $0x820] sm:$0xff]  ;;  %v4978_v32 = vld [vmem:[%s9306_s1 + $0x810] sm:$0xff] }
 0x266   : > { %1800 = vmatpush.msrb.mxu0 %v4977_v47  ;;  %1772 = vmatmul.f32.vlgmr.msra.gmra.mxu3 %v6128_v56  ;;  %v4976_v38 = vld [vmem:[%s9306_s1 + $0x800] sm:$0xff] }
 0x267   : > { %1801 = vmatmul.f32.vlgmr.msrb.gmra.mxu0 %v6126_v55  ;;  %1534 = vmatpush.msrb.mxu2 %v4905_v50 }
 0x268   : > { %1991 = vmatpush.msra.mxu0 %v5082_v52 }
 0x269   : > { %1535 = vmatpush.msrb.mxu2 %v4903_v31 }
 0x26a   : > { %1992 = vmatpush.msra.mxu0 %v5080_v59 }
 0x26b   : > { %1536 = vmatpush.msrb.mxu2 %v4901_v53 }
 0x26c   : > { %1993 = vmatpush.msra.mxu0 %v5078_v54  ;;  %1537 = vmatmul.f32.vlgmr.msrb.gmra.mxu2 %v6126_v55 }
 0x26d   : > { %1727 = vmatpush.msra.mxu2 %v5006_v48 }
 0x26e   : > { %1994 = vmatpush.msra.mxu0 %v5076_v49  ;;  %1775 = vmatmul.f32.gmra.mxu3 %v6148_v3 }
 0x26f   : > { %1804 = vmatmul.f32.gmra.mxu0 %v6146_v2  ;;  %1728 = vmatpush.msra.mxu2 %v5004_v57 }
 0x270   : > { %1995 = vmatpush.msra.mxu0 %v5074_v58 }
 0x271   : > { %1729 = vmatpush.msra.mxu2 %v5002_v6 }
 0x272   : > { %1996 = vmatpush.msra.mxu0 %v5072_v8 }
 0x273   : > { %1730 = vmatpush.msra.mxu2 %v5000_v14 }
 0x274   : > { %1997 = vmatpush.msra.mxu0 %v5070_v15  ;;  %1540 = vmatmul.f32.gmra.mxu2 %v6146_v2 }
 0x275   : > { %1731 = vmatpush.msra.mxu2 %v4998_v20 }
 0x276   : > { %1998 = vmatpush.msra.mxu0 %v5068_v40  ;;  %1778 = vmatmul.f32.gmra.mxu3 %v6156_v10 }
 0x277   : > { %1807 = vmatmul.f32.gmra.mxu0 %v6154_v9  ;;  %1732 = vmatpush.msra.mxu2 %v4996_v21 }
 0x278   : > { %1999 = vmatpush.msra.mxu0 %v5066_v24 }
 0x279   : > { %1733 = vmatpush.msra.mxu2 %v4994_v25 }
 0x27a   : > { %2000 = vmatpush.msra.mxu0 %v5064_v26 }
 0x27b   : > { %1734 = vmatpush.msra.mxu2 %v4992_v28 }
 0x27c   : > { %2001 = vmatpush.msra.mxu0 %v5062_v30  ;;  %1543 = vmatmul.f32.gmra.mxu2 %v6154_v9  ;;  %v5039_v30 = vld [vmem:[%s9306_s1 + $0x9f8] sm:$0xff] }
 0x27d   : > { %1735 = vmatpush.msra.mxu2 %v4990_v33  ;;  %v5037_v33 = vld [vmem:[%s9306_s1 + $0x9e8] sm:$0xff] }
 0x27e   : > { %2002 = vmatpush.msra.mxu0 %v5060_v36  ;;  %1781 = vmatmul.f32.gmra.mxu3 %v6164_v17 }
 0x27f   : > { %1810 = vmatmul.f32.gmra.mxu0 %v6162_v16  ;;  %1736 = vmatpush.msra.mxu2 %v4988_v39  ;;  %v5035_v39 = vld [vmem:[%s9306_s1 + $0x9d8] sm:$0xff] }
 0x280   : > { %2003 = vmatpush.msra.mxu0 %v5058_v27  ;;  %v5033_v27 = vld [vmem:[%s9306_s1 + $0x9c8] sm:$0xff] }
 0x281   : > { %1737 = vmatpush.msra.mxu2 %v4986_v34 }
 0x282   : > { %2004 = vmatpush.msra.mxu0 %v5056_v51  ;;  %v5029_v51 = vld [vmem:[%s9306_s1 + $0x9a8] sm:$0xff] }
 0x283   : > { %1738 = vmatpush.msra.mxu2 %v4984_v43  ;;  %v5027_v43 = vld [vmem:[%s9306_s1 + $0x998] sm:$0xff] }
 0x284   : > { %2005 = vmatpush.msra.mxu0 %v5054_v41  ;;  %1546 = vmatmul.f32.gmra.mxu2 %v6162_v16 }
 0x285   : > { %1739 = vmatpush.msra.mxu2 %v4982_v42  ;;  %v5025_v42 = vld [vmem:[%s9306_s1 + $0x988] sm:$0xff] }
 0x286   : > { %2006 = vmatpush.msra.mxu0 %v5052_v44 }
 0x287   : > { %2007 = vmatmul.f32.vlgmr.msra.gmra.mxu0 %v6126_v55  ;;  %1740 = vmatpush.msra.mxu2 %v4980_v45  ;;  %v5021_v45 = vld [vmem:[%s9306_s1 + $0x968] sm:$0xff] }
 0x289   : > { %1741 = vmatpush.msra.mxu2 %v4978_v32  ;;  %v5019_v32 = vld [vmem:[%s9306_s1 + $0x958] sm:$0xff] }
 0x28b   : > { %1742 = vmatpush.msra.mxu2 %v4976_v38  ;;  %v5017_v38 = vld [vmem:[%s9306_s1 + $0x948] sm:$0xff] }
 0x28c   : > { %1743 = vmatmul.f32.vlgmr.msra.gmra.mxu2 %v6126_v55 }
 0x28f   : > { %2010 = vmatmul.f32.gmra.mxu0 %v6146_v2 }
 0x294   : > { %1746 = vmatmul.f32.gmra.mxu2 %v6146_v2 }
 0x297   : > { %2013 = vmatmul.f32.gmra.mxu0 %v6154_v9 }
 0x29c   : > { %1749 = vmatmul.f32.gmra.mxu2 %v6154_v9 }
 0x29f   : > { %2016 = vmatmul.f32.gmra.mxu0 %v6162_v16 }
 0x2a4   : > { %1752 = vmatmul.f32.gmra.mxu2 %v6162_v16 }
 0x2a5   : > { %v6973_v47 = vpop.f32.mrf.mxu3 }
 0x2a6   : > { %9321 = vst [vmem:[#allocation3_spill] sm:$0xff] %v6973_v47 }
 0x2ad   : > { %v6975_v50 = vpop.f32.mrf.mxu3 }
 0x2b5   : > { %v6979_v31 = vpop.f32.mrf.mxu3 }
 0x2bd   : > { %v6983_v53 = vpop.f32.mrf.mxu3 }
 0x2c5   : > { %v1567_v48 = vpop.f32.mrf.mxu3 }
 0x2cc   : > { %v6977_v52 = vpop.f32.mrf.mxu2 }
 0x2ce   : > { %v1570_v57 = vpop.f32.mrf.mxu3 }
 0x2d5   : > { %v6981_v59 = vpop.f32.mrf.mxu2 }
 0x2d7   : > { %v1573_v6 = vpop.f32.mrf.mxu3 }
 0x2de   : > { %v6985_v54 = vpop.f32.mrf.mxu2 }
 0x2e0   : > { %v1576_v14 = vpop.f32.mrf.mxu3 }
 0x2e7   : > { %v6987_v49 = vpop.f32.mrf.mxu2 }
 0x2e9   : > { %v1773_v21 = vpop.f32.mrf.mxu3 }
 0x2ef   : > { %v1538_v58 = vpop.f32.mrf.mxu2 }
 0x2f0   : > { %v1568_v26 = vadd.f32 %v1567_v48, %v1538_v58 }
 0x2f1   : > { %v1776_v36 = vpop.f32.mrf.mxu3 }
 0x2f7   : > { %v1541_v8 = vpop.f32.mrf.mxu2 }
 0x2f8   : > { %v1571_v25 = vadd.f32 %v1570_v57, %v1541_v8 }
 0x2f9   : > { %v1779_v41 = vpop.f32.mrf.mxu3 }
 0x2ff   : > { %v1544_v15 = vpop.f32.mrf.mxu2 }
 0x300   : > { %v1574_v24 = vadd.f32 %v1573_v6, %v1544_v15  ;;  %v5013_v6 = vld [vmem:[%s9306_s1 + $0x928] sm:$0xff] }
 0x301   : > { %v1782_v48 = vpop.f32.mrf.mxu3 }
 0x307   : > { %v1547_v20 = vpop.f32.mrf.mxu2 }
 0x308   : > { %v1577_v40 = vadd.f32 %v1576_v14, %v1547_v20  ;;  %v5011_v14 = vld [vmem:[%s9306_s1 + $0x918] sm:$0xff]  ;;  %v5009_v20 = vld [vmem:[%s9306_s1 + $0x908] sm:$0xff] }
 0x30a   : > { %1637 = vmatpush.msra.mxu1 %v1577_v40 }
 0x30c   : > { %1638 = vmatpush.msra.mxu1 %v1574_v24  ;;  %v5114_v24 = vld [vmem:[%s9306_s1 + $0xbf0] sm:$0xff] }
 0x30e   : > { %1639 = vmatpush.msra.mxu1 %v1571_v25  ;;  %v5083_v25 = vld [vmem:[%s9306_s1 + $0xaf8] sm:$0xff] }
 0x30f   : > { %v1744_v28 = vpop.f32.mrf.mxu2 }
 0x310   : > { %1640 = vmatpush.msra.mxu1 %v1568_v26  ;;  %v1774_v40 = vadd.f32 %v1773_v21, %v1744_v28  ;;  %v5112_v21 = vld [vmem:[%s9306_s1 + $0xbe0] sm:$0xff]  ;;  %v5081_v26 = vld [vmem:[%s9306_s1 + $0xae8] sm:$0xff]  ;;  %v5110_v28 = vld [vmem:[%s9306_s1 + $0xbd0] sm:$0xff] }
 0x311   : > { %4972 = vmatmul.msk.f32.vlgmr.msra.gmra.mxu1 %vm993_vm0, %v6674_v35  ;;  %v5031_v35 = vld [vmem:[%s9306_s1 + $0x9b8] sm:$0xff] }
 0x312   : > { %1814 = vmatpush.msrb.mxu1 %v5039_v30  ;;  %v5079_v30 = vld [vmem:[%s9306_s1 + $0xad8] sm:$0xff] }
 0x314   : > { %1815 = vmatpush.msrb.mxu1 %v5037_v33  ;;  %v5108_v33 = vld [vmem:[%s9306_s1 + $0xbc0] sm:$0xff] }
 0x316   : > { %1816 = vmatpush.msrb.mxu1 %v5035_v39  ;;  %v7080_v39 = vld [vmem:[%s9309_s4 + $0x88] sm:$0xff] }
 0x317   : > { %v1747_v34 = vpop.f32.mrf.mxu2 }
 0x318   : > { %1817 = vmatpush.msrb.mxu1 %v5033_v27  ;;  %v1777_v15 = vadd.f32 %v1776_v36, %v1747_v34  ;;  %v5077_v36 = vld [vmem:[%s9306_s1 + $0xac8] sm:$0xff]  ;;  %v5106_v27 = vld [vmem:[%s9306_s1 + $0xbb0] sm:$0xff]  ;;  %v5075_v34 = vld [vmem:[%s9306_s1 + $0xab8] sm:$0xff] }
 0x319   : > { %4973 = vmatmul.msk.f32.gmra.mxu1 %vm993_vm0, %v6713_v46  ;;  %v5023_v46 = vld [vmem:[%s9306_s1 + $0x978] sm:$0xff] }
 0x31a   : > { %1818 = vmatpush.msrb.mxu1 %v5031_v35  ;;  %v5104_v35 = vld [vmem:[%s9306_s1 + $0xba0] sm:$0xff] }
 0x31c   : > { %1819 = vmatpush.msrb.mxu1 %v5029_v51  ;;  %v5073_v51 = vld [vmem:[%s9306_s1 + $0xaa8] sm:$0xff] }
 0x31e   : > { %1820 = vmatpush.msrb.mxu1 %v5027_v43  ;;  %v5102_v43 = vld [vmem:[%s9306_s1 + $0xb90] sm:$0xff] }
 0x31f   : > { %v1750_v44 = vpop.f32.mrf.mxu2 }
 0x320   : > { %1821 = vmatpush.msrb.mxu1 %v5025_v42  ;;  %v1780_v8 = vadd.f32 %v1779_v41, %v1750_v44  ;;  %v5071_v41 = vld [vmem:[%s9306_s1 + $0xa98] sm:$0xff]  ;;  %v5100_v42 = vld [vmem:[%s9306_s1 + $0xb80] sm:$0xff]  ;;  %v5069_v44 = vld [vmem:[%s9306_s1 + $0xa88] sm:$0xff] }
 0x321   : > { %4974 = vmatmul.msk.f32.gmra.mxu1 %vm993_vm0, %v6759_v11  ;;  %v5015_v11 = vld [vmem:[%s9306_s1 + $0x938] sm:$0xff] }
 0x322   : > { %1822 = vmatpush.msrb.mxu1 %v5023_v46  ;;  %v7112_v46 = vld [vmem:[%s9309_s4 + $0x90] sm:$0xff] }
 0x324   : > { %1823 = vmatpush.msrb.mxu1 %v5021_v45  ;;  %v5098_v45 = vld [vmem:[%s9306_s1 + $0xb70] sm:$0xff] }
 0x326   : > { %1824 = vmatpush.msrb.mxu1 %v5019_v32  ;;  %v5067_v32 = vld [vmem:[%s9306_s1 + $0xa78] sm:$0xff] }
 0x327   : > { %v1753_v57 = vpop.f32.mrf.mxu2 }
 0x328   : > { %v1783_v58 = vadd.f32 %v1782_v48, %v1753_v57  ;;  %1825 = vmatpush.msrb.mxu1 %v5017_v38  ;;  %v5096_v38 = vld [vmem:[%s9306_s1 + $0xb60] sm:$0xff]  ;;  %v5065_v48 = vld [vmem:[%s9306_s1 + $0xa68] sm:$0xff]  ;;  %v5094_v57 = vld [vmem:[%s9306_s1 + $0xb50] sm:$0xff] }
 0x329   : > { %4975 = vmatmul.msk.f32.gmra.mxu1 %vm993_vm0, %v6805_v37  ;;  %v7048_v37 = vld [vmem:[%s9309_s4 + $0x80] sm:$0xff] }
 0x32a   : > { %1826 = vmatpush.msrb.mxu1 %v5015_v11  ;;  %1872 = vmatpush.msrb.mxu2 %v1783_v58  ;;  %v5063_v11 = vld [vmem:[%s9306_s1 + $0xa58] sm:$0xff]  ;;  %v5092_v58 = vld [vmem:[%s9306_s1 + $0xb40] sm:$0xff] }
 0x32c   : > { %1827 = vmatpush.msrb.mxu1 %v5013_v6  ;;  %1873 = vmatpush.msrb.mxu2 %v1780_v8  ;;  %v5061_v6 = vld [vmem:[%s9306_s1 + $0xa48] sm:$0xff]  ;;  %v7144_v8 = vld [vmem:[%s9309_s4 + $0x98] sm:$0xff] }
 0x32e   : > { %1828 = vmatpush.msrb.mxu1 %v5011_v14  ;;  %1874 = vmatpush.msrb.mxu2 %v1777_v15  ;;  %v5090_v14 = vld [vmem:[%s9306_s1 + $0xb30] sm:$0xff]  ;;  %v5059_v15 = vld [vmem:[%s9306_s1 + $0xa38] sm:$0xff] }
 0x330   : > { %1829 = vmatpush.msrb.mxu1 %v5009_v20  ;;  %1875 = vmatpush.msrb.mxu2 %v1774_v40  ;;  %v5088_v20 = vld [vmem:[%s9306_s1 + $0xb20] sm:$0xff]  ;;  %v5057_v40 = vld [vmem:[%s9306_s1 + $0xa28] sm:$0xff] }
 0x331   : > { %1830 = vmatmul.f32.vlgmr.msrb.gmra.mxu1 %v6128_v56  ;;  %5044 = vmatmul.msk.f32.vlgmr.msrb.gmra.mxu2 %vm993_vm0, %v7048_v37 }
 0x332   : > { %2020 = vmatpush.msra.mxu1 %v5114_v24  ;;  %2049 = vmatpush.msra.mxu2 %v5083_v25  ;;  %v5086_v24 = vld [vmem:[%s9306_s1 + $0xb10] sm:$0xff]  ;;  %v5055_v25 = vld [vmem:[%s9306_s1 + $0xa18] sm:$0xff] }
 0x334   : > { %2021 = vmatpush.msra.mxu1 %v5112_v21  ;;  %2050 = vmatpush.msra.mxu2 %v5081_v26  ;;  %v5084_v21 = vld [vmem:[%s9306_s1 + $0xb00] sm:$0xff]  ;;  %v5053_v26 = vld [vmem:[%s9306_s1 + $0xa08] sm:$0xff] }
 0x336   : > { %2022 = vmatpush.msra.mxu1 %v5110_v28  ;;  %2051 = vmatpush.msra.mxu2 %v5079_v30  ;;  %v5158_v28 = vld [vmem:[%s9306_s1 + $0xcf0] sm:$0xff]  ;;  %v5156_v30 = vld [vmem:[%s9306_s1 + $0xce0] sm:$0xff] }
 0x338   : > { %2023 = vmatpush.msra.mxu1 %v5108_v33  ;;  %2052 = vmatpush.msra.mxu2 %v5077_v36  ;;  %v5154_v33 = vld [vmem:[%s9306_s1 + $0xcd0] sm:$0xff]  ;;  %v5152_v36 = vld [vmem:[%s9306_s1 + $0xcc0] sm:$0xff] }
 0x339   : > { %1833 = vmatmul.f32.gmra.mxu1 %v6148_v3  ;;  %5045 = vmatmul.msk.f32.gmra.mxu2 %vm993_vm0, %v7080_v39 }
 0x33a   : > { %2024 = vmatpush.msra.mxu1 %v5106_v27  ;;  %2053 = vmatpush.msra.mxu2 %v5075_v34  ;;  %v5150_v27 = vld [vmem:[%s9306_s1 + $0xcb0] sm:$0xff]  ;;  %v5148_v34 = vld [vmem:[%s9306_s1 + $0xca0] sm:$0xff] }
 0x33c   : > { %2025 = vmatpush.msra.mxu1 %v5104_v35  ;;  %2054 = vmatpush.msra.mxu2 %v5073_v51  ;;  %v5146_v35 = vld [vmem:[%s9306_s1 + $0xc90] sm:$0xff]  ;;  %v5144_v51 = vld [vmem:[%s9306_s1 + $0xc80] sm:$0xff] }
 0x33e   : > { %2026 = vmatpush.msra.mxu1 %v5102_v43  ;;  %2055 = vmatpush.msra.mxu2 %v5071_v41  ;;  %v5142_v43 = vld [vmem:[%s9306_s1 + $0xc70] sm:$0xff]  ;;  %v5140_v41 = vld [vmem:[%s9306_s1 + $0xc60] sm:$0xff] }
 0x340   : > { %2027 = vmatpush.msra.mxu1 %v5100_v42  ;;  %2056 = vmatpush.msra.mxu2 %v5069_v44  ;;  %v5138_v42 = vld [vmem:[%s9306_s1 + $0xc50] sm:$0xff]  ;;  %v5136_v44 = vld [vmem:[%s9306_s1 + $0xc40] sm:$0xff] }
 0x341   : > { %1836 = vmatmul.f32.gmra.mxu1 %v6156_v10  ;;  %5046 = vmatmul.msk.f32.gmra.mxu2 %vm993_vm0, %v7112_v46 }
 0x342   : > { %2028 = vmatpush.msra.mxu1 %v5098_v45  ;;  %2057 = vmatpush.msra.mxu2 %v5067_v32  ;;  %v5134_v45 = vld [vmem:[%s9306_s1 + $0xc30] sm:$0xff]  ;;  %v5132_v32 = vld [vmem:[%s9306_s1 + $0xc20] sm:$0xff] }
 0x344   : > { %2029 = vmatpush.msra.mxu1 %v5096_v38  ;;  %2058 = vmatpush.msra.mxu2 %v5065_v48  ;;  %v5130_v38 = vld [vmem:[%s9306_s1 + $0xc10] sm:$0xff]  ;;  %v5128_v48 = vld [vmem:[%s9306_s1 + $0xc00] sm:$0xff] }
 0x346   : > { %2030 = vmatpush.msra.mxu1 %v5094_v57  ;;  %2059 = vmatpush.msra.mxu2 %v5063_v11  ;;  %v7230_v57 = vpop.f32.mrf.mxu0 }
 0x348   : > { %2031 = vmatpush.msra.mxu1 %v5092_v58  ;;  %2060 = vmatpush.msra.mxu2 %v5061_v6 }
 0x349   : > { %1839 = vmatmul.f32.gmra.mxu1 %v6164_v17  ;;  %5047 = vmatmul.msk.f32.gmra.mxu2 %vm993_vm0, %v7144_v8 }
 0x34a   : > { %2032 = vmatpush.msra.mxu1 %v5090_v14  ;;  %2061 = vmatpush.msra.mxu2 %v5059_v15 }
 0x34c   : > { %2033 = vmatpush.msra.mxu1 %v5088_v20  ;;  %2062 = vmatpush.msra.mxu2 %v5057_v40 }
 0x34e   : > { %2034 = vmatpush.msra.mxu1 %v5086_v24  ;;  %2063 = vmatpush.msra.mxu2 %v5055_v25  ;;  %v7234_v11 = vpop.f32.mrf.mxu0 }
 0x350   : > { %2035 = vmatpush.msra.mxu1 %v5084_v21  ;;  %2064 = vmatpush.msra.mxu2 %v5053_v26 }
 0x351   : > { %2036 = vmatmul.f32.vlgmr.msra.gmra.mxu1 %v6128_v56  ;;  %2065 = vmatmul.f32.vlgmr.msra.gmra.mxu2 %v6126_v55 }
 0x352   : > { %2255 = vmatpush.msrb.mxu2 %v5158_v28 }
 0x354   : > { %2256 = vmatpush.msrb.mxu2 %v5156_v30 }
 0x356   : > { %2257 = vmatpush.msrb.mxu2 %v5154_v33  ;;  %v7237_v58 = vpop.f32.mrf.mxu0 }
 0x358   : > { %2258 = vmatpush.msrb.mxu2 %v5152_v36 }
 0x359   : > { %2039 = vmatmul.f32.gmra.mxu1 %v6148_v3  ;;  %2068 = vmatmul.f32.gmra.mxu2 %v6146_v2 }
 0x35a   : > { %2259 = vmatpush.msrb.mxu2 %v5150_v27 }
 0x35c   : > { %2260 = vmatpush.msrb.mxu2 %v5148_v34 }
 0x35e   : > { %2261 = vmatpush.msrb.mxu2 %v5146_v35  ;;  %v7241_v14 = vpop.f32.mrf.mxu0 }
 0x360   : > { %2262 = vmatpush.msrb.mxu2 %v5144_v51 }
 0x361   : > { %2042 = vmatmul.f32.gmra.mxu1 %v6156_v10  ;;  %2071 = vmatmul.f32.gmra.mxu2 %v6154_v9 }
 0x362   : > { %2263 = vmatpush.msrb.mxu2 %v5142_v43 }
 0x364   : > { %2264 = vmatpush.msrb.mxu2 %v5140_v41 }
 0x366   : > { %2265 = vmatpush.msrb.mxu2 %v5138_v42  ;;  %v1802_v40 = vpop.f32.mrf.mxu0  ;;  %v5115_v42 = vld [vmem:[%s9306_s1 + $0xbf8] sm:$0xff] }
 0x368   : > { %2266 = vmatpush.msrb.mxu2 %v5136_v44  ;;  %v5113_v44 = vld [vmem:[%s9306_s1 + $0xbe8] sm:$0xff] }
 0x369   : > { %2045 = vmatmul.f32.gmra.mxu1 %v6164_v17  ;;  %2074 = vmatmul.f32.gmra.mxu2 %v6162_v16 }
 0x36a   : > { %2267 = vmatpush.msrb.mxu2 %v5134_v45 }
 0x36c   : > { %2268 = vmatpush.msrb.mxu2 %v5132_v32  ;;  %v5111_v32 = vld [vmem:[%s9306_s1 + $0xbd8] sm:$0xff] }
 0x36e   : > { %2269 = vmatpush.msrb.mxu2 %v5130_v38  ;;  %v1805_v25 = vpop.f32.mrf.mxu0  ;;  %v5109_v38 = vld [vmem:[%s9306_s1 + $0xbc8] sm:$0xff] }
 0x370   : > { %2270 = vmatpush.msrb.mxu2 %v5128_v48 }
 0x371   : > { %2271 = vmatmul.f32.vlgmr.msrb.gmra.mxu2 %v6126_v55 }
 0x376   : > { %v1808_v26 = vpop.f32.mrf.mxu0 }
 0x379   : > { %2274 = vmatmul.f32.gmra.mxu2 %v6146_v2 }
 0x37e   : > { %v1811_v30 = vpop.f32.mrf.mxu0 }
 0x381   : > { %2277 = vmatmul.f32.gmra.mxu2 %v6154_v9 }
 0x386   : > { %v2008_v34 = vpop.f32.mrf.mxu0 }
 0x389   : > { %2280 = vmatmul.f32.gmra.mxu2 %v6162_v16 }
 0x38e   : > { %v7239_v6 = vpop.f32.mrf.mxu1  ;;  %v2011_v45 = vpop.f32.mrf.mxu0 }
 0x38f   : > { %9322 = vst [vmem:[#allocation4_spill] sm:$0xff] %v7239_v6 }
 0x396   : > { %v7243_v15 = vpop.f32.mrf.mxu1 }
 0x397   : > { %9323 = vst [vmem:[#allocation5_spill] sm:$0xff] %v7243_v15 }
 0x39e   : > { %v7245_v20 = vpop.f32.mrf.mxu1 }
 0x3a6   : > { %v7247_v24 = vpop.f32.mrf.mxu1 }
 0x3a7   : > { %9324 = vst [vmem:[#allocation6_spill] sm:$0xff] %v7247_v24 }
 0x3ae   : > { %v1831_v21 = vpop.f32.mrf.mxu1 }
 0x3af   : > { %v1832_v43 = vadd.f32 %v1831_v21, %v1802_v40  ;;  %v5105_v40 = vld [vmem:[%s9306_s1 + $0xba8] sm:$0xff]  ;;  %v2014_v21 = vpop.f32.mrf.mxu0 }
 0x3b6   : > { %v1834_v28 = vpop.f32.mrf.mxu1 }
 0x3b7   : > { %v1835_v51 = vadd.f32 %v1834_v28, %v1805_v25  ;;  %v5103_v25 = vld [vmem:[%s9306_s1 + $0xb98] sm:$0xff] }
 0x3be   : > { %v1837_v33 = vpop.f32.mrf.mxu1 }
 0x3bf   : > { %v1838_v35 = vadd.f32 %v1837_v33, %v1808_v26  ;;  %v5101_v26 = vld [vmem:[%s9306_s1 + $0xb88] sm:$0xff]  ;;  %v5095_v33 = vld [vmem:[%s9306_s1 + $0xb58] sm:$0xff] }
 0x3c6   : > { %v1840_v36 = vpop.f32.mrf.mxu1 }
 0x3c7   : > { %v1841_v27 = vadd.f32 %v1840_v36, %v1811_v30  ;;  %v5097_v30 = vld [vmem:[%s9306_s1 + $0xb68] sm:$0xff] }
 0x3c8   : > { %v5093_v36 = vld [vmem:[%s9306_s1 + $0xb48] sm:$0xff] }
 0x3c9   : > { %1901 = vmatpush.msrb.mxu3 %v1841_v27  ;;  %v2017_v27 = vpop.f32.mrf.mxu0 }
 0x3cb   : > { %1902 = vmatpush.msrb.mxu3 %v1838_v35 }
 0x3cd   : > { %1903 = vmatpush.msrb.mxu3 %v1835_v51 }
 0x3ce   : > { %v2037_v41 = vpop.f32.mrf.mxu1 }
 0x3cf   : > { %1904 = vmatpush.msrb.mxu3 %v1832_v43  ;;  %v5089_v43 = vld [vmem:[%s9306_s1 + $0xb28] sm:$0xff] }
 0x3d0   : > { %5048 = vmatmul.msk.f32.vlgmr.msrb.gmra.mxu3 %vm993_vm0, %v7048_v37  ;;  %v5107_v37 = vld [vmem:[%s9306_s1 + $0xbb8] sm:$0xff] }
 0x3d1   : > { %2078 = vmatpush.msra.mxu3 %v5115_v42 }
 0x3d3   : > { %2079 = vmatpush.msra.mxu3 %v5113_v44  ;;  %v5087_v44 = vld [vmem:[%s9306_s1 + $0xb18] sm:$0xff] }
 0x3d5   : > { %2080 = vmatpush.msra.mxu3 %v5111_v32 }
 0x3d6   : > { %v2040_v48 = vpop.f32.mrf.mxu1 }
 0x3d7   : > { %2081 = vmatpush.msra.mxu3 %v5109_v38  ;;  %v2041_v32 = vadd.f32 %v2040_v48, %v2011_v45  ;;  %v5085_v38 = vld [vmem:[%s9306_s1 + $0xb08] sm:$0xff]  ;;  %v5159_v45 = vld [vmem:[%s9306_s1 + $0xcf8] sm:$0xff]  ;;  %v5186_v48 = vld [vmem:[%s9306_s1 + $0xdd0] sm:$0xff] }
 0x3d8   : > { %5049 = vmatmul.msk.f32.gmra.mxu3 %vm993_vm0, %v7080_v39  ;;  %v5099_v39 = vld [vmem:[%s9306_s1 + $0xb78] sm:$0xff] }
 0x3d9   : > { %2082 = vmatpush.msra.mxu3 %v5107_v37  ;;  %v2038_v37 = vadd.f32 %v2037_v41, %v2008_v34  ;;  %v5188_v34 = vld [vmem:[%s9306_s1 + $0xde0] sm:$0xff]  ;;  %v5157_v41 = vld [vmem:[%s9306_s1 + $0xce8] sm:$0xff] }
 0x3db   : > { %2083 = vmatpush.msra.mxu3 %v5105_v40  ;;  %v5190_v40 = vld [vmem:[%s9306_s1 + $0xdf0] sm:$0xff] }
 0x3dd   : > { %2084 = vmatpush.msra.mxu3 %v5103_v25  ;;  %v5155_v25 = vld [vmem:[%s9306_s1 + $0xcd8] sm:$0xff] }
 0x3de   : > { %v2043_v28 = vpop.f32.mrf.mxu1 }
 0x3df   : > { %2085 = vmatpush.msra.mxu3 %v5101_v26  ;;  %v2044_v42 = vadd.f32 %v2043_v28, %v2014_v21  ;;  %v5184_v21 = vld [vmem:[%s9306_s1 + $0xdc0] sm:$0xff]  ;;  %v5153_v26 = vld [vmem:[%s9306_s1 + $0xcc8] sm:$0xff] }
 0x3e0   : > { %5050 = vmatmul.msk.f32.gmra.mxu3 %vm993_vm0, %v7112_v46  ;;  %v5091_v46 = vld [vmem:[%s9306_s1 + $0xb38] sm:$0xff]  ;;  %v7340_v28 = vld [vmem:[%s9309_s4 + $0xa8] sm:$0xff] }
 0x3e1   : > { %2086 = vmatpush.msra.mxu3 %v5099_v39  ;;  %v5182_v39 = vld [vmem:[%s9306_s1 + $0xdb0] sm:$0xff] }
 0x3e3   : > { %2087 = vmatpush.msra.mxu3 %v5097_v30  ;;  %v5151_v30 = vld [vmem:[%s9306_s1 + $0xcb8] sm:$0xff] }
 0x3e5   : > { %2088 = vmatpush.msra.mxu3 %v5095_v33  ;;  %v5180_v33 = vld [vmem:[%s9306_s1 + $0xda0] sm:$0xff] }
 0x3e6   : > { %v2046_v35 = vpop.f32.mrf.mxu1 }
 0x3e7   : > { %v2047_v51 = vadd.f32 %v2046_v35, %v2017_v27  ;;  %2089 = vmatpush.msra.mxu3 %v5093_v36  ;;  %v5149_v36 = vld [vmem:[%s9306_s1 + $0xca8] sm:$0xff]  ;;  %v5178_v27 = vld [vmem:[%s9306_s1 + $0xd90] sm:$0xff]  ;;  %v5147_v35 = vld [vmem:[%s9306_s1 + $0xc98] sm:$0xff] }
 0x3e8   : > { %5051 = vmatmul.msk.f32.gmra.mxu3 %vm993_vm0, %v7144_v8  ;;  %v7308_v8 = vld [vmem:[%s9309_s4 + $0xa0] sm:$0xff] }
 0x3e9   : > { %2090 = vmatpush.msra.mxu3 %v5091_v46  ;;  %2136 = vmatpush.msrb.mxu0 %v2047_v51  ;;  %v5176_v46 = vld [vmem:[%s9306_s1 + $0xd80] sm:$0xff]  ;;  %v5145_v51 = vld [vmem:[%s9306_s1 + $0xc88] sm:$0xff] }
 0x3eb   : > { %2091 = vmatpush.msra.mxu3 %v5089_v43  ;;  %2137 = vmatpush.msrb.mxu0 %v2044_v42  ;;  %v7372_v43 = vld [vmem:[%s9309_s4 + $0xb0] sm:$0xff] }
 0x3ec   : > { %v5174_v42 = vld [vmem:[%s9306_s1 + $0xd70] sm:$0xff] }
 0x3ed   : > { %2092 = vmatpush.msra.mxu3 %v5087_v44  ;;  %2138 = vmatpush.msrb.mxu0 %v2041_v32  ;;  %v5143_v44 = vld [vmem:[%s9306_s1 + $0xc78] sm:$0xff]  ;;  %v5172_v32 = vld [vmem:[%s9306_s1 + $0xd60] sm:$0xff] }
 0x3ef   : > { %2093 = vmatpush.msra.mxu3 %v5085_v38  ;;  %2139 = vmatpush.msrb.mxu0 %v2038_v37  ;;  %v5141_v38 = vld [vmem:[%s9306_s1 + $0xc68] sm:$0xff]  ;;  %v5170_v37 = vld [vmem:[%s9306_s1 + $0xd50] sm:$0xff] }
 0x3f0   : > { %2094 = vmatmul.f32.vlgmr.msra.gmra.mxu3 %v6128_v56  ;;  %5120 = vmatmul.msk.f32.vlgmr.msrb.gmra.mxu0 %vm993_vm0, %v7308_v8 }
 0x3f1   : > { %2284 = vmatpush.msrb.mxu3 %v5190_v40  ;;  %2313 = vmatpush.msra.mxu0 %v5159_v45  ;;  %v5139_v40 = vld [vmem:[%s9306_s1 + $0xc58] sm:$0xff]  ;;  %v5168_v45 = vld [vmem:[%s9306_s1 + $0xd40] sm:$0xff] }
 0x3f3   : > { %2285 = vmatpush.msrb.mxu3 %v5188_v34  ;;  %2314 = vmatpush.msra.mxu0 %v5157_v41  ;;  %v5137_v34 = vld [vmem:[%s9306_s1 + $0xc48] sm:$0xff]  ;;  %v7404_v41 = vld [vmem:[%s9309_s4 + $0xb8] sm:$0xff] }
 0x3f5   : > { %2286 = vmatpush.msrb.mxu3 %v5186_v48  ;;  %2315 = vmatpush.msra.mxu0 %v5155_v25  ;;  %v5166_v48 = vld [vmem:[%s9306_s1 + $0xd30] sm:$0xff]  ;;  %v5135_v25 = vld [vmem:[%s9306_s1 + $0xc38] sm:$0xff] }
 0x3f7   : > { %2287 = vmatpush.msrb.mxu3 %v5184_v21  ;;  %2316 = vmatpush.msra.mxu0 %v5153_v26  ;;  %v5164_v21 = vld [vmem:[%s9306_s1 + $0xd20] sm:$0xff]  ;;  %v5133_v26 = vld [vmem:[%s9306_s1 + $0xc28] sm:$0xff] }
 0x3f8   : > { %2097 = vmatmul.f32.gmra.mxu3 %v6148_v3  ;;  %5121 = vmatmul.msk.f32.gmra.mxu0 %vm993_vm0, %v7340_v28 }
 0x3f9   : > { %2288 = vmatpush.msrb.mxu3 %v5182_v39  ;;  %2317 = vmatpush.msra.mxu0 %v5151_v30  ;;  %v5162_v39 = vld [vmem:[%s9306_s1 + $0xd10] sm:$0xff]  ;;  %v5131_v30 = vld [vmem:[%s9306_s1 + $0xc18] sm:$0xff] }
 0x3fb   : > { %2289 = vmatpush.msrb.mxu3 %v5180_v33  ;;  %2318 = vmatpush.msra.mxu0 %v5149_v36  ;;  %v5160_v33 = vld [vmem:[%s9306_s1 + $0xd00] sm:$0xff]  ;;  %v5129_v36 = vld [vmem:[%s9306_s1 + $0xc08] sm:$0xff] }
 0x3fd   : > { %2290 = vmatpush.msrb.mxu3 %v5178_v27  ;;  %2319 = vmatpush.msra.mxu0 %v5147_v35  ;;  %v5234_v27 = vld [vmem:[%s9306_s1 + $0xef0] sm:$0xff]  ;;  %v5232_v35 = vld [vmem:[%s9306_s1 + $0xee0] sm:$0xff] }
 0x3ff   : > { %2291 = vmatpush.msrb.mxu3 %v5176_v46  ;;  %2320 = vmatpush.msra.mxu0 %v5145_v51  ;;  %v5230_v46 = vld [vmem:[%s9306_s1 + $0xed0] sm:$0xff]  ;;  %v5228_v51 = vld [vmem:[%s9306_s1 + $0xec0] sm:$0xff] }
 0x400   : > { %2100 = vmatmul.f32.gmra.mxu3 %v6156_v10  ;;  %5122 = vmatmul.msk.f32.gmra.mxu0 %vm993_vm0, %v7372_v43 }
 0x401   : > { %2292 = vmatpush.msrb.mxu3 %v5174_v42  ;;  %2321 = vmatpush.msra.mxu0 %v5143_v44  ;;  %v5226_v42 = vld [vmem:[%s9306_s1 + $0xeb0] sm:$0xff]  ;;  %v5224_v44 = vld [vmem:[%s9306_s1 + $0xea0] sm:$0xff] }
 0x403   : > { %2293 = vmatpush.msrb.mxu3 %v5172_v32  ;;  %2322 = vmatpush.msra.mxu0 %v5141_v38  ;;  %v5222_v32 = vld [vmem:[%s9306_s1 + $0xe90] sm:$0xff]  ;;  %v5220_v38 = vld [vmem:[%s9306_s1 + $0xe80] sm:$0xff] }
 0x405   : > { %2294 = vmatpush.msrb.mxu3 %v5170_v37  ;;  %2323 = vmatpush.msra.mxu0 %v5139_v40  ;;  %v5218_v37 = vld [vmem:[%s9306_s1 + $0xe70] sm:$0xff]  ;;  %v5216_v40 = vld [vmem:[%s9306_s1 + $0xe60] sm:$0xff] }
 0x407   : > { %2295 = vmatpush.msrb.mxu3 %v5168_v45  ;;  %2324 = vmatpush.msra.mxu0 %v5137_v34  ;;  %v5214_v45 = vld [vmem:[%s9306_s1 + $0xe50] sm:$0xff]  ;;  %v5212_v34 = vld [vmem:[%s9306_s1 + $0xe40] sm:$0xff] }
 0x408   : > { %2103 = vmatmul.f32.gmra.mxu3 %v6164_v17  ;;  %5123 = vmatmul.msk.f32.gmra.mxu0 %vm993_vm0, %v7404_v41 }
 0x409   : > { %2296 = vmatpush.msrb.mxu3 %v5166_v48  ;;  %2325 = vmatpush.msra.mxu0 %v5135_v25  ;;  %v5210_v48 = vld [vmem:[%s9306_s1 + $0xe30] sm:$0xff]  ;;  %v5208_v25 = vld [vmem:[%s9306_s1 + $0xe20] sm:$0xff] }
 0x40b   : > { %2297 = vmatpush.msrb.mxu3 %v5164_v21  ;;  %2326 = vmatpush.msra.mxu0 %v5133_v26  ;;  %v5206_v21 = vld [vmem:[%s9306_s1 + $0xe10] sm:$0xff]  ;;  %v5204_v26 = vld [vmem:[%s9306_s1 + $0xe00] sm:$0xff] }
 0x40d   : > { %2298 = vmatpush.msrb.mxu3 %v5162_v39  ;;  %2327 = vmatpush.msra.mxu0 %v5131_v30  ;;  %v7491_v39 = vpop.f32.mrf.mxu2 }
 0x40f   : > { %2299 = vmatpush.msrb.mxu3 %v5160_v33  ;;  %2328 = vmatpush.msra.mxu0 %v5129_v36 }
 0x410   : > { %2300 = vmatmul.f32.vlgmr.msrb.gmra.mxu3 %v6128_v56  ;;  %2329 = vmatmul.f32.vlgmr.msra.gmra.mxu0 %v6126_v55 }
 0x411   : > { %2519 = vmatpush.msrb.mxu0 %v5234_v27 }
 0x413   : > { %2520 = vmatpush.msrb.mxu0 %v5232_v35 }
 0x415   : > { %2521 = vmatpush.msrb.mxu0 %v5230_v46  ;;  %v7494_v30 = vpop.f32.mrf.mxu2 }
 0x417   : > { %2522 = vmatpush.msrb.mxu0 %v5228_v51 }
 0x418   : > { %2303 = vmatmul.f32.gmra.mxu3 %v6148_v3  ;;  %2332 = vmatmul.f32.gmra.mxu0 %v6146_v2 }
 0x419   : > { %2523 = vmatpush.msrb.mxu0 %v5226_v42 }
 0x41b   : > { %2524 = vmatpush.msrb.mxu0 %v5224_v44 }
 0x41d   : > { %2525 = vmatpush.msrb.mxu0 %v5222_v32  ;;  %v7497_v33 = vpop.f32.mrf.mxu2 }
 0x41f   : > { %2526 = vmatpush.msrb.mxu0 %v5220_v38 }
 0x420   : > { %2306 = vmatmul.f32.gmra.mxu3 %v6156_v10  ;;  %2335 = vmatmul.f32.gmra.mxu0 %v6154_v9 }
 0x421   : > { %2527 = vmatpush.msrb.mxu0 %v5218_v37 }
 0x423   : > { %2528 = vmatpush.msrb.mxu0 %v5216_v40 }
 0x425   : > { %2529 = vmatpush.msrb.mxu0 %v5214_v45  ;;  %v7501_v27 = vpop.f32.mrf.mxu2 }
 0x427   : > { %2530 = vmatpush.msrb.mxu0 %v5212_v34 }
 0x428   : > { %2309 = vmatmul.f32.gmra.mxu3 %v6164_v17  ;;  %2338 = vmatmul.f32.gmra.mxu0 %v6162_v16 }
 0x429   : > { %2531 = vmatpush.msrb.mxu0 %v5210_v48 }
 0x42b   : > { %2532 = vmatpush.msrb.mxu0 %v5208_v25 }
 0x42d   : > { %2533 = vmatpush.msrb.mxu0 %v5206_v21  ;;  %v2066_v51 = vpop.f32.mrf.mxu2 }
 0x42f   : > { %2534 = vmatpush.msrb.mxu0 %v5204_v26 }
 0x430   : > { %2535 = vmatmul.f32.vlgmr.msrb.gmra.mxu0 %v6126_v55 }
 0x435   : > { %v2069_v44 = vpop.f32.mrf.mxu2 }
 0x438   : > { %2538 = vmatmul.f32.gmra.mxu0 %v6146_v2 }
 0x43d   : > { %v2072_v38 = vpop.f32.mrf.mxu2 }
 0x440   : > { %2541 = vmatmul.f32.gmra.mxu0 %v6154_v9 }
 0x445   : > { %v2075_v40 = vpop.f32.mrf.mxu2 }
 0x448   : > { %2544 = vmatmul.f32.gmra.mxu0 %v6162_v16 }
 0x44d   : > { %v2272_v25 = vpop.f32.mrf.mxu2 }
 0x453   : > { %v7499_v36 = vpop.f32.mrf.mxu3 }
 0x454   : > { %9325 = vst [vmem:[#allocation7_spill] sm:$0xff] %v7499_v36 }
 0x45b   : > { %v7503_v35 = vpop.f32.mrf.mxu3 }
 0x45c   : > { %9326 = vst [vmem:[#allocation8_spill] sm:$0xff] %v7503_v35 }
 0x463   : > { %v7505_v46 = vpop.f32.mrf.mxu3 }
 0x464   : > { %9327 = vst [vmem:[#allocation9_spill] sm:$0xff] %v7505_v46 }
 0x46b   : > { %v7507_v42 = vpop.f32.mrf.mxu3 }
 0x46c   : > { %9328 = vst [vmem:[#allocation10_spill] sm:$0xff] %v7507_v42  ;;  %v5191_v42 = vld [vmem:[%s9306_s1 + $0xdf8] sm:$0xff] }
 0x473   : > { %v2095_v32 = vpop.f32.mrf.mxu3 }
 0x474   : > { %v2096_v36 = vadd.f32 %v2095_v32, %v2066_v51  ;;  %v5187_v51 = vld [vmem:[%s9306_s1 + $0xdd8] sm:$0xff] }
 0x475   : > { %v5179_v32 = vld [vmem:[%s9306_s1 + $0xd98] sm:$0xff] }
 0x47b   : > { %v2098_v37 = vpop.f32.mrf.mxu3 }
 0x47c   : > { %v2099_v26 = vadd.f32 %v2098_v37, %v2069_v44  ;;  %v5185_v44 = vld [vmem:[%s9306_s1 + $0xdc8] sm:$0xff] }
 0x483   : > { %v2101_v45 = vpop.f32.mrf.mxu3 }
 0x484   : > { %v2102_v21 = vadd.f32 %v2101_v45, %v2072_v38  ;;  %v2275_v38 = vpop.f32.mrf.mxu2  ;;  %v5177_v45 = vld [vmem:[%s9306_s1 + $0xd88] sm:$0xff] }
 0x48b   : > { %v2104_v34 = vpop.f32.mrf.mxu3 }
 0x48c   : > { %v2105_v48 = vadd.f32 %v2104_v34, %v2075_v40  ;;  %v5189_v40 = vld [vmem:[%s9306_s1 + $0xde8] sm:$0xff]  ;;  %v2278_v37 = vpop.f32.mrf.mxu2 }
 0x48e   : > { %2165 = vmatpush.msrb.mxu1 %v2105_v48  ;;  %v5173_v48 = vld [vmem:[%s9306_s1 + $0xd68] sm:$0xff] }
 0x490   : > { %2166 = vmatpush.msrb.mxu1 %v2102_v21  ;;  %v5171_v21 = vld [vmem:[%s9306_s1 + $0xd58] sm:$0xff] }
 0x492   : > { %2167 = vmatpush.msrb.mxu1 %v2099_v26  ;;  %v5169_v26 = vld [vmem:[%s9306_s1 + $0xd48] sm:$0xff] }
 0x493   : > { %v2301_v35 = vpop.f32.mrf.mxu3 }
 0x494   : > { %2168 = vmatpush.msrb.mxu1 %v2096_v36 }
 0x495   : > { %5124 = vmatmul.msk.f32.vlgmr.msrb.gmra.mxu1 %vm993_vm0, %v7308_v8  ;;  %v5183_v8 = vld [vmem:[%s9306_s1 + $0xdb8] sm:$0xff] }
 0x496   : > { %2342 = vmatpush.msra.mxu1 %v5191_v42  ;;  %v5181_v42 = vld [vmem:[%s9306_s1 + $0xda8] sm:$0xff] }
 0x498   : > { %2343 = vmatpush.msra.mxu1 %v5189_v40  ;;  %v2281_v40 = vpop.f32.mrf.mxu2 }
 0x49a   : > { %2344 = vmatpush.msra.mxu1 %v5187_v51 }
 0x49b   : > { %v2304_v36 = vpop.f32.mrf.mxu3 }
 0x49c   : > { %2345 = vmatpush.msra.mxu1 %v5185_v44 }
 0x49d   : > { %5125 = vmatmul.msk.f32.gmra.mxu1 %vm993_vm0, %v7340_v28  ;;  %v5175_v28 = vld [vmem:[%s9306_s1 + $0xd78] sm:$0xff] }
 0x49e   : > { %2346 = vmatpush.msra.mxu1 %v5183_v8  ;;  %v5165_v8 = vld [vmem:[%s9306_s1 + $0xd28] sm:$0xff] }
 0x4a0   : > { %2347 = vmatpush.msra.mxu1 %v5181_v42 }
 0x4a2   : > { %2348 = vmatpush.msra.mxu1 %v5179_v32  ;;  %v5163_v32 = vld [vmem:[%s9306_s1 + $0xd18] sm:$0xff] }
 0x4a3   : > { %v2307_v34 = vpop.f32.mrf.mxu3 }
 0x4a4   : > { %2349 = vmatpush.msra.mxu1 %v5177_v45  ;;  %v2308_v42 = vadd.f32 %v2307_v34, %v2278_v37  ;;  %v2305_v45 = vadd.f32 %v2304_v36, %v2275_v38  ;;  %v5266_v37 = vld [vmem:[%s9306_s1 + $0xff0] sm:$0xff]  ;;  %v5235_v38 = vld [vmem:[%s9306_s1 + $0xef8] sm:$0xff] }
 0x4a5   : > { %5126 = vmatmul.msk.f32.gmra.mxu1 %vm993_vm0, %v7372_v43  ;;  %v5167_v43 = vld [vmem:[%s9306_s1 + $0xd38] sm:$0xff]  ;;  %v5262_v36 = vld [vmem:[%s9306_s1 + $0xfd0] sm:$0xff] }
 0x4a6   : > { %2350 = vmatpush.msra.mxu1 %v5175_v28  ;;  %v5161_v28 = vld [vmem:[%s9306_s1 + $0xd08] sm:$0xff]  ;;  %v5231_v34 = vld [vmem:[%s9306_s1 + $0xed8] sm:$0xff] }
 0x4a8   : > { %2351 = vmatpush.msra.mxu1 %v5173_v48  ;;  %v2302_v48 = vadd.f32 %v2301_v35, %v2272_v25  ;;  %v5264_v35 = vld [vmem:[%s9306_s1 + $0xfe0] sm:$0xff]  ;;  %v5233_v25 = vld [vmem:[%s9306_s1 + $0xee8] sm:$0xff] }
 0x4aa   : > { %2352 = vmatpush.msra.mxu1 %v5171_v21  ;;  %v5260_v21 = vld [vmem:[%s9306_s1 + $0xfc0] sm:$0xff] }
 0x4ab   : > { %v2310_v51 = vpop.f32.mrf.mxu3 }
 0x4ac   : > { %v2311_v44 = vadd.f32 %v2310_v51, %v2281_v40  ;;  %2353 = vmatpush.msra.mxu1 %v5169_v26  ;;  %v5229_v26 = vld [vmem:[%s9306_s1 + $0xec8] sm:$0xff]  ;;  %v5258_v51 = vld [vmem:[%s9306_s1 + $0xfb0] sm:$0xff] }
 0x4ad   : > { %5127 = vmatmul.msk.f32.gmra.mxu1 %vm993_vm0, %v7404_v41  ;;  %v7568_v41 = vld [vmem:[%s9309_s4 + $0xc0] sm:$0xff]  ;;  %v7600_v40 = vld [vmem:[%s9309_s4 + $0xc8] sm:$0xff] }
 0x4ae   : > { %2354 = vmatpush.msra.mxu1 %v5167_v43  ;;  %2400 = vmatpush.msra.mxu2 %v2311_v44  ;;  %v5227_v43 = vld [vmem:[%s9306_s1 + $0xeb8] sm:$0xff]  ;;  %v5256_v44 = vld [vmem:[%s9306_s1 + $0xfa0] sm:$0xff] }
 0x4b0   : > { %2355 = vmatpush.msra.mxu1 %v5165_v8  ;;  %2401 = vmatpush.msra.mxu2 %v2308_v42  ;;  %v5225_v8 = vld [vmem:[%s9306_s1 + $0xea8] sm:$0xff]  ;;  %v5254_v42 = vld [vmem:[%s9306_s1 + $0xf90] sm:$0xff] }
 0x4b2   : > { %2356 = vmatpush.msra.mxu1 %v5163_v32  ;;  %2402 = vmatpush.msra.mxu2 %v2305_v45  ;;  %v5223_v32 = vld [vmem:[%s9306_s1 + $0xe98] sm:$0xff]  ;;  %v5252_v45 = vld [vmem:[%s9306_s1 + $0xf80] sm:$0xff] }
 0x4b4   : > { %2357 = vmatpush.msra.mxu1 %v5161_v28  ;;  %2403 = vmatpush.msra.mxu2 %v2302_v48  ;;  %v5221_v28 = vld [vmem:[%s9306_s1 + $0xe88] sm:$0xff]  ;;  %v7632_v48 = vld [vmem:[%s9309_s4 + $0xd0] sm:$0xff] }
 0x4b5   : > { %2358 = vmatmul.f32.vlgmr.msra.gmra.mxu1 %v6128_v56  ;;  %5196 = vmatmul.msk.f32.vlgmr.msra.gmra.mxu2 %vm993_vm0, %v7568_v41 }
 0x4b6   : > { %2548 = vmatpush.msrb.mxu1 %v5266_v37  ;;  %2577 = vmatpush.msrb.mxu2 %v5235_v38  ;;  %v5250_v37 = vld [vmem:[%s9306_s1 + $0xf70] sm:$0xff]  ;;  %v5219_v38 = vld [vmem:[%s9306_s1 + $0xe78] sm:$0xff] }
 0x4b8   : > { %2549 = vmatpush.msrb.mxu1 %v5264_v35  ;;  %2578 = vmatpush.msrb.mxu2 %v5233_v25  ;;  %v5248_v35 = vld [vmem:[%s9306_s1 + $0xf60] sm:$0xff]  ;;  %v5217_v25 = vld [vmem:[%s9306_s1 + $0xe68] sm:$0xff] }
 0x4ba   : > { %2550 = vmatpush.msrb.mxu1 %v5262_v36  ;;  %2579 = vmatpush.msrb.mxu2 %v5231_v34  ;;  %v5246_v36 = vld [vmem:[%s9306_s1 + $0xf50] sm:$0xff]  ;;  %v5215_v34 = vld [vmem:[%s9306_s1 + $0xe58] sm:$0xff] }
 0x4bc   : > { %2551 = vmatpush.msrb.mxu1 %v5260_v21  ;;  %2580 = vmatpush.msrb.mxu2 %v5229_v26  ;;  %v5244_v21 = vld [vmem:[%s9306_s1 + $0xf40] sm:$0xff]  ;;  %v5213_v26 = vld [vmem:[%s9306_s1 + $0xe48] sm:$0xff] }
 0x4bd   : > { %2361 = vmatmul.f32.gmra.mxu1 %v6148_v3  ;;  %5197 = vmatmul.msk.f32.gmra.mxu2 %vm993_vm0, %v7600_v40 }
 0x4be   : > { %2552 = vmatpush.msrb.mxu1 %v5258_v51  ;;  %2581 = vmatpush.msrb.mxu2 %v5227_v43  ;;  %v7664_v51 = vld [vmem:[%s9309_s4 + $0xd8] sm:$0xff]  ;;  %v5242_v43 = vld [vmem:[%s9306_s1 + $0xf30] sm:$0xff] }
 0x4c0   : > { %2553 = vmatpush.msrb.mxu1 %v5256_v44  ;;  %2582 = vmatpush.msrb.mxu2 %v5225_v8  ;;  %v5211_v44 = vld [vmem:[%s9306_s1 + $0xe38] sm:$0xff]  ;;  %v5240_v8 = vld [vmem:[%s9306_s1 + $0xf20] sm:$0xff] }
 0x4c2   : > { %2554 = vmatpush.msrb.mxu1 %v5254_v42  ;;  %2583 = vmatpush.msrb.mxu2 %v5223_v32  ;;  %v5209_v42 = vld [vmem:[%s9306_s1 + $0xe28] sm:$0xff]  ;;  %v5238_v32 = vld [vmem:[%s9306_s1 + $0xf10] sm:$0xff] }
 0x4c4   : > { %2555 = vmatpush.msrb.mxu1 %v5252_v45  ;;  %2584 = vmatpush.msrb.mxu2 %v5221_v28  ;;  %v5207_v45 = vld [vmem:[%s9306_s1 + $0xe18] sm:$0xff]  ;;  %v5236_v28 = vld [vmem:[%s9306_s1 + $0xf00] sm:$0xff] }
 0x4c5   : > { %2364 = vmatmul.f32.gmra.mxu1 %v6156_v10  ;;  %5198 = vmatmul.msk.f32.gmra.mxu2 %vm993_vm0, %v7632_v48 }
 0x4c6   : > { %2556 = vmatpush.msrb.mxu1 %v5250_v37  ;;  %2585 = vmatpush.msrb.mxu2 %v5219_v38  ;;  %v5205_v37 = vld [vmem:[%s9306_s1 + $0xe08] sm:$0xff]  ;;  %v5310_v38 = vld [vmem:[%s9306_s1 + $0x10f0] sm:$0xff] }
 0x4c8   : > { %2557 = vmatpush.msrb.mxu1 %v5248_v35  ;;  %2586 = vmatpush.msrb.mxu2 %v5217_v25  ;;  %v5308_v35 = vld [vmem:[%s9306_s1 + $0x10e0] sm:$0xff]  ;;  %v5306_v25 = vld [vmem:[%s9306_s1 + $0x10d0] sm:$0xff] }
 0x4ca   : > { %2558 = vmatpush.msrb.mxu1 %v5246_v36  ;;  %2587 = vmatpush.msrb.mxu2 %v5215_v34  ;;  %v5304_v36 = vld [vmem:[%s9306_s1 + $0x10c0] sm:$0xff]  ;;  %v5302_v34 = vld [vmem:[%s9306_s1 + $0x10b0] sm:$0xff] }
 0x4cc   : > { %2559 = vmatpush.msrb.mxu1 %v5244_v21  ;;  %2588 = vmatpush.msrb.mxu2 %v5213_v26  ;;  %v5300_v21 = vld [vmem:[%s9306_s1 + $0x10a0] sm:$0xff]  ;;  %v5298_v26 = vld [vmem:[%s9306_s1 + $0x1090] sm:$0xff] }
 0x4cd   : > { %2367 = vmatmul.f32.gmra.mxu1 %v6164_v17  ;;  %5199 = vmatmul.msk.f32.gmra.mxu2 %vm993_vm0, %v7664_v51 }
 0x4ce   : > { %2560 = vmatpush.msrb.mxu1 %v5242_v43  ;;  %2589 = vmatpush.msrb.mxu2 %v5211_v44  ;;  %v5296_v43 = vld [vmem:[%s9306_s1 + $0x1080] sm:$0xff]  ;;  %v5294_v44 = vld [vmem:[%s9306_s1 + $0x1070] sm:$0xff] }
 0x4d0   : > { %2561 = vmatpush.msrb.mxu1 %v5240_v8  ;;  %2590 = vmatpush.msrb.mxu2 %v5209_v42  ;;  %v5292_v8 = vld [vmem:[%s9306_s1 + $0x1060] sm:$0xff]  ;;  %v5290_v42 = vld [vmem:[%s9306_s1 + $0x1050] sm:$0xff] }
 0x4d2   : > { %2562 = vmatpush.msrb.mxu1 %v5238_v32  ;;  %2591 = vmatpush.msrb.mxu2 %v5207_v45  ;;  %v5288_v32 = vld [vmem:[%s9306_s1 + $0x1040] sm:$0xff]  ;;  %v5286_v45 = vld [vmem:[%s9306_s1 + $0x1030] sm:$0xff] }
 0x4d4   : > { %2563 = vmatpush.msrb.mxu1 %v5236_v28  ;;  %2592 = vmatpush.msrb.mxu2 %v5205_v37  ;;  %v5284_v28 = vld [vmem:[%s9306_s1 + $0x1020] sm:$0xff]  ;;  %v5282_v37 = vld [vmem:[%s9306_s1 + $0x1010] sm:$0xff] }
 0x4d5   : > { %2564 = vmatmul.f32.vlgmr.msrb.gmra.mxu1 %v6128_v56  ;;  %2593 = vmatmul.f32.vlgmr.msrb.gmra.mxu2 %v6126_v55 }
 0x4d6   : > { %2783 = vmatpush.msra.mxu2 %v5310_v38  ;;  %v5280_v38 = vld [vmem:[%s9306_s1 + $0x1000] sm:$0xff] }
 0x4d8   : > { %2784 = vmatpush.msra.mxu2 %v5308_v35  ;;  %v7750_v35 = vpop.f32.mrf.mxu0 }
 0x4da   : > { %2785 = vmatpush.msra.mxu2 %v5306_v25 }
 0x4dc   : > { %2786 = vmatpush.msra.mxu2 %v5304_v36 }
 0x4dd   : > { %2567 = vmatmul.f32.gmra.mxu1 %v6148_v3  ;;  %2596 = vmatmul.f32.gmra.mxu2 %v6146_v2 }
 0x4de   : > { %2787 = vmatpush.msra.mxu2 %v5302_v34 }
 0x4e0   : > { %2788 = vmatpush.msra.mxu2 %v5300_v21  ;;  %v7754_v25 = vpop.f32.mrf.mxu0 }
 0x4e2   : > { %2789 = vmatpush.msra.mxu2 %v5298_v26 }
 0x4e4   : > { %2790 = vmatpush.msra.mxu2 %v5296_v43 }
 0x4e5   : > { %2570 = vmatmul.f32.gmra.mxu1 %v6156_v10  ;;  %2599 = vmatmul.f32.gmra.mxu2 %v6154_v9 }
 0x4e6   : > { %2791 = vmatpush.msra.mxu2 %v5294_v44 }
 0x4e8   : > { %2792 = vmatpush.msra.mxu2 %v5292_v8  ;;  %v7757_v36 = vpop.f32.mrf.mxu0 }
 0x4ea   : > { %2793 = vmatpush.msra.mxu2 %v5290_v42 }
 0x4ec   : > { %2794 = vmatpush.msra.mxu2 %v5288_v32 }
 0x4ed   : > { %2573 = vmatmul.f32.gmra.mxu1 %v6164_v17  ;;  %2602 = vmatmul.f32.gmra.mxu2 %v6162_v16 }
 0x4ee   : > { %2795 = vmatpush.msra.mxu2 %v5286_v45 }
 0x4f0   : > { %2796 = vmatpush.msra.mxu2 %v5284_v28  ;;  %v7761_v21 = vpop.f32.mrf.mxu0 }
 0x4f2   : > { %2797 = vmatpush.msra.mxu2 %v5282_v37 }
 0x4f4   : > { %2798 = vmatpush.msra.mxu2 %v5280_v38 }
 0x4f5   : > { %2799 = vmatmul.f32.vlgmr.msra.gmra.mxu2 %v6126_v55 }
 0x4f8   : > { %v2330_v44 = vpop.f32.mrf.mxu0 }
 0x4fd   : > { %2802 = vmatmul.f32.gmra.mxu2 %v6146_v2 }
 0x500   : > { %v2333_v42 = vpop.f32.mrf.mxu0 }
 0x505   : > { %2805 = vmatmul.f32.gmra.mxu2 %v6154_v9 }
 0x508   : > { %v2336_v45 = vpop.f32.mrf.mxu0 }
 0x50d   : > { %2808 = vmatmul.f32.gmra.mxu2 %v6162_v16 }
 0x510   : > { %v2339_v37 = vpop.f32.mrf.mxu0 }
 0x512   : > { %v7759_v34 = vpop.f32.mrf.mxu1 }
 0x513   : > { %9329 = vst [vmem:[#allocation11_spill] sm:$0xff] %v7759_v34 }
 0x518   : > { %v2536_v24 = vpop.f32.mrf.mxu0 }
 0x51a   : > { %v7763_v26 = vpop.f32.mrf.mxu1 }
 0x51b   : > { %9330 = vst [vmem:[#allocation12_spill] sm:$0xff] %v7763_v26 }
 0x522   : > { %v7765_v43 = vpop.f32.mrf.mxu1 }
 0x523   : > { %9331 = vst [vmem:[#allocation13_spill] sm:$0xff] %v7765_v43 }
 0x52a   : > { %v7767_v8 = vpop.f32.mrf.mxu1 }
 0x52b   : > { %9332 = vst [vmem:[#allocation14_spill] sm:$0xff] %v7767_v8  ;;  %v5267_v8 = vld [vmem:[%s9306_s1 + $0xff8] sm:$0xff] }
 0x532   : > { %v2359_v32 = vpop.f32.mrf.mxu1 }
 0x533   : > { %v2360_v47 = vadd.f32 %v2359_v32, %v2330_v44  ;;  %v5255_v44 = vld [vmem:[%s9306_s1 + $0xf98] sm:$0xff] }
 0x53a   : > { %v2362_v28 = vpop.f32.mrf.mxu1 }
 0x53b   : > { %v2363_v34 = vadd.f32 %v2362_v28, %v2333_v42  ;;  %v5253_v42 = vld [vmem:[%s9306_s1 + $0xf88] sm:$0xff] }
 0x53c   : > { %v5249_v28 = vld [vmem:[%s9306_s1 + $0xf68] sm:$0xff] }
 0x542   : > { %v2365_v38 = vpop.f32.mrf.mxu1 }
 0x543   : > { %v2366_v15 = vadd.f32 %v2365_v38, %v2336_v45  ;;  %v2539_v45 = vpop.f32.mrf.mxu0  ;;  %v5245_v38 = vld [vmem:[%s9306_s1 + $0xf48] sm:$0xff] }
 0x54a   : > { %v2368_v6 = vpop.f32.mrf.mxu1 }
 0x54b   : > { %v2369_v46 = vadd.f32 %v2368_v6, %v2339_v37  ;;  %v5265_v6 = vld [vmem:[%s9306_s1 + $0xfe8] sm:$0xff]  ;;  %v5247_v37 = vld [vmem:[%s9306_s1 + $0xf58] sm:$0xff] }
 0x54d   : > { %2429 = vmatpush.msra.mxu3 %v2369_v46  ;;  %v5261_v46 = vld [vmem:[%s9306_s1 + $0xfc8] sm:$0xff] }
 0x54f   : > { %2430 = vmatpush.msra.mxu3 %v2366_v15  ;;  %v5263_v15 = vld [vmem:[%s9306_s1 + $0xfd8] sm:$0xff] }
 0x551   : > { %2431 = vmatpush.msra.mxu3 %v2363_v34  ;;  %v5257_v34 = vld [vmem:[%s9306_s1 + $0xfa8] sm:$0xff] }
 0x552   : > { %v2565_v26 = vpop.f32.mrf.mxu1 }
 0x553   : > { %2432 = vmatpush.msra.mxu3 %v2360_v47 }
 0x554   : > { %5200 = vmatmul.msk.f32.vlgmr.msra.gmra.mxu3 %vm993_vm0, %v7568_v41  ;;  %v5259_v41 = vld [vmem:[%s9306_s1 + $0xfb8] sm:$0xff] }
 0x555   : > { %2606 = vmatpush.msrb.mxu3 %v5267_v8  ;;  %v2542_v8 = vpop.f32.mrf.mxu0 }
 0x557   : > { %2607 = vmatpush.msrb.mxu3 %v5265_v6 }
 0x559   : > { %2608 = vmatpush.msrb.mxu3 %v5263_v15 }
 0x55a   : > { %v2568_v47 = vpop.f32.mrf.mxu1 }
 0x55b   : > { %2609 = vmatpush.msrb.mxu3 %v5261_v46 }
 0x55c   : > { %5201 = vmatmul.msk.f32.gmra.mxu3 %vm993_vm0, %v7600_v40  ;;  %v5251_v40 = vld [vmem:[%s9306_s1 + $0xf78] sm:$0xff] }
 0x55d   : > { %2610 = vmatpush.msrb.mxu3 %v5259_v41  ;;  %v2545_v6 = vpop.f32.mrf.mxu0  ;;  %v5241_v41 = vld [vmem:[%s9306_s1 + $0xf28] sm:$0xff] }
 0x55f   : > { %2611 = vmatpush.msrb.mxu3 %v5257_v34 }
 0x561   : > { %2612 = vmatpush.msrb.mxu3 %v5255_v44  ;;  %v5239_v44 = vld [vmem:[%s9306_s1 + $0xf18] sm:$0xff] }
 0x562   : > { %v2571_v32 = vpop.f32.mrf.mxu1 }
 0x563   : > { %2613 = vmatpush.msrb.mxu3 %v5253_v42  ;;  %v2572_v34 = vadd.f32 %v2571_v32, %v2542_v8  ;;  %v2569_v42 = vadd.f32 %v2568_v47, %v2539_v45  ;;  %v5342_v8 = vld [vmem:[%s9306_s1 + $0x11f0] sm:$0xff]  ;;  %v5311_v45 = vld [vmem:[%s9306_s1 + $0x10f8] sm:$0xff] }
 0x564   : > { %5202 = vmatmul.msk.f32.gmra.mxu3 %vm993_vm0, %v7632_v48  ;;  %v5243_v48 = vld [vmem:[%s9306_s1 + $0xf38] sm:$0xff]  ;;  %v5338_v47 = vld [vmem:[%s9306_s1 + $0x11d0] sm:$0xff] }
 0x565   : > { %2614 = vmatpush.msrb.mxu3 %v5251_v40  ;;  %v5237_v40 = vld [vmem:[%s9306_s1 + $0xf08] sm:$0xff]  ;;  %v5307_v32 = vld [vmem:[%s9306_s1 + $0x10d8] sm:$0xff] }
 0x567   : > { %2615 = vmatpush.msrb.mxu3 %v5249_v28  ;;  %v2566_v28 = vadd.f32 %v2565_v26, %v2536_v24  ;;  %v5340_v24 = vld [vmem:[%s9306_s1 + $0x11e0] sm:$0xff]  ;;  %v5309_v26 = vld [vmem:[%s9306_s1 + $0x10e8] sm:$0xff] }
 0x569   : > { %2616 = vmatpush.msrb.mxu3 %v5247_v37  ;;  %v5336_v37 = vld [vmem:[%s9306_s1 + $0x11c0] sm:$0xff] }
 0x56a   : > { %v2574_v15 = vpop.f32.mrf.mxu1 }
 0x56b   : > { %v2575_v46 = vadd.f32 %v2574_v15, %v2545_v6  ;;  %2617 = vmatpush.msrb.mxu3 %v5245_v38  ;;  %v5305_v38 = vld [vmem:[%s9306_s1 + $0x10c8] sm:$0xff]  ;;  %v5334_v15 = vld [vmem:[%s9306_s1 + $0x11b0] sm:$0xff] }
 0x56c   : > { %5203 = vmatmul.msk.f32.gmra.mxu3 %vm993_vm0, %v7664_v51  ;;  %v7828_v51 = vld [vmem:[%s9309_s4 + $0xe0] sm:$0xff]  ;;  %v7860_v6 = vld [vmem:[%s9309_s4 + $0xe8] sm:$0xff] }
 0x56d   : > { %2618 = vmatpush.msrb.mxu3 %v5243_v48  ;;  %2664 = vmatpush.msra.mxu0 %v2575_v46  ;;  %v5303_v48 = vld [vmem:[%s9306_s1 + $0x10b8] sm:$0xff]  ;;  %v5332_v46 = vld [vmem:[%s9306_s1 + $0x11a0] sm:$0xff] }
 0x56f   : > { %2619 = vmatpush.msrb.mxu3 %v5241_v41  ;;  %2665 = vmatpush.msra.mxu0 %v2572_v34  ;;  %v5301_v41 = vld [vmem:[%s9306_s1 + $0x10a8] sm:$0xff]  ;;  %v5330_v34 = vld [vmem:[%s9306_s1 + $0x1190] sm:$0xff] }
 0x571   : > { %2620 = vmatpush.msrb.mxu3 %v5239_v44  ;;  %2666 = vmatpush.msra.mxu0 %v2569_v42  ;;  %v5299_v44 = vld [vmem:[%s9306_s1 + $0x1098] sm:$0xff]  ;;  %v5328_v42 = vld [vmem:[%s9306_s1 + $0x1180] sm:$0xff] }
 0x573   : > { %2621 = vmatpush.msrb.mxu3 %v5237_v40  ;;  %2667 = vmatpush.msra.mxu0 %v2566_v28  ;;  %v5297_v40 = vld [vmem:[%s9306_s1 + $0x1088] sm:$0xff]  ;;  %v7892_v28 = vld [vmem:[%s9309_s4 + $0xf0] sm:$0xff] }
 0x574   : > { %2622 = vmatmul.f32.vlgmr.msrb.gmra.mxu3 %v6128_v56  ;;  %5272 = vmatmul.msk.f32.vlgmr.msra.gmra.mxu0 %vm993_vm0, %v7828_v51 }
 0x575   : > { %2812 = vmatpush.msra.mxu3 %v5342_v8  ;;  %2841 = vmatpush.msrb.mxu0 %v5311_v45  ;;  %v5326_v8 = vld [vmem:[%s9306_s1 + $0x1170] sm:$0xff]  ;;  %v5295_v45 = vld [vmem:[%s9306_s1 + $0x1078] sm:$0xff] }
 0x577   : > { %2813 = vmatpush.msra.mxu3 %v5340_v24  ;;  %2842 = vmatpush.msrb.mxu0 %v5309_v26  ;;  %v5324_v24 = vld [vmem:[%s9306_s1 + $0x1160] sm:$0xff]  ;;  %v5293_v26 = vld [vmem:[%s9306_s1 + $0x1068] sm:$0xff] }
 0x579   : > { %2814 = vmatpush.msra.mxu3 %v5338_v47  ;;  %2843 = vmatpush.msrb.mxu0 %v5307_v32  ;;  %v5322_v47 = vld [vmem:[%s9306_s1 + $0x1150] sm:$0xff]  ;;  %v5291_v32 = vld [vmem:[%s9306_s1 + $0x1058] sm:$0xff] }
 0x57b   : > { %2815 = vmatpush.msra.mxu3 %v5336_v37  ;;  %2844 = vmatpush.msrb.mxu0 %v5305_v38  ;;  %v5320_v37 = vld [vmem:[%s9306_s1 + $0x1140] sm:$0xff]  ;;  %v5289_v38 = vld [vmem:[%s9306_s1 + $0x1048] sm:$0xff] }
 0x57c   : > { %2625 = vmatmul.f32.gmra.mxu3 %v6148_v3  ;;  %5273 = vmatmul.msk.f32.gmra.mxu0 %vm993_vm0, %v7860_v6 }
 0x57d   : > { %2816 = vmatpush.msra.mxu3 %v5334_v15  ;;  %2845 = vmatpush.msrb.mxu0 %v5303_v48  ;;  %v7924_v15 = vld [vmem:[%s9309_s4 + $0xf8] sm:$0xff]  ;;  %v5318_v48 = vld [vmem:[%s9306_s1 + $0x1130] sm:$0xff] }
 0x57f   : > { %2817 = vmatpush.msra.mxu3 %v5332_v46  ;;  %2846 = vmatpush.msrb.mxu0 %v5301_v41  ;;  %v5287_v46 = vld [vmem:[%s9306_s1 + $0x1038] sm:$0xff]  ;;  %v5316_v41 = vld [vmem:[%s9306_s1 + $0x1120] sm:$0xff] }
 0x581   : > { %2818 = vmatpush.msra.mxu3 %v5330_v34  ;;  %2847 = vmatpush.msrb.mxu0 %v5299_v44  ;;  %v5285_v34 = vld [vmem:[%s9306_s1 + $0x1028] sm:$0xff]  ;;  %v5314_v44 = vld [vmem:[%s9306_s1 + $0x1110] sm:$0xff] }
 0x583   : > { %2819 = vmatpush.msra.mxu3 %v5328_v42  ;;  %2848 = vmatpush.msrb.mxu0 %v5297_v40  ;;  %v5283_v42 = vld [vmem:[%s9306_s1 + $0x1018] sm:$0xff]  ;;  %v5312_v40 = vld [vmem:[%s9306_s1 + $0x1100] sm:$0xff] }
 0x584   : > { %2628 = vmatmul.f32.gmra.mxu3 %v6156_v10  ;;  %5274 = vmatmul.msk.f32.gmra.mxu0 %vm993_vm0, %v7892_v28 }
 0x585   : > { %2820 = vmatpush.msra.mxu3 %v5326_v8  ;;  %2849 = vmatpush.msrb.mxu0 %v5295_v45  ;;  %v5281_v8 = vld [vmem:[%s9306_s1 + $0x1008] sm:$0xff]  ;;  %v7961_v45 = vpop.f32.mrf.mxu2 }
 0x587   : > { %2821 = vmatpush.msra.mxu3 %v5324_v24  ;;  %2850 = vmatpush.msrb.mxu0 %v5293_v26 }
 0x589   : > { %2822 = vmatpush.msra.mxu3 %v5322_v47  ;;  %2851 = vmatpush.msrb.mxu0 %v5291_v32 }
 0x58b   : > { %2823 = vmatpush.msra.mxu3 %v5320_v37  ;;  %2852 = vmatpush.msrb.mxu0 %v5289_v38 }
 0x58c   : > { %2631 = vmatmul.f32.gmra.mxu3 %v6164_v17  ;;  %5275 = vmatmul.msk.f32.gmra.mxu0 %vm993_vm0, %v7924_v15 }
 0x58d   : > { %2824 = vmatpush.msra.mxu3 %v5318_v48  ;;  %2853 = vmatpush.msrb.mxu0 %v5287_v46  ;;  %v7963_v24 = vpop.f32.mrf.mxu2 }
 0x58f   : > { %2825 = vmatpush.msra.mxu3 %v5316_v41  ;;  %2854 = vmatpush.msrb.mxu0 %v5285_v34 }
 0x591   : > { %2826 = vmatpush.msra.mxu3 %v5314_v44  ;;  %2855 = vmatpush.msrb.mxu0 %v5283_v42 }
 0x593   : > { %2827 = vmatpush.msra.mxu3 %v5312_v40  ;;  %2856 = vmatpush.msrb.mxu0 %v5281_v8 }
 0x594   : > { %2828 = vmatmul.f32.vlgmr.msra.gmra.mxu3 %v6128_v56  ;;  %2857 = vmatmul.f32.vlgmr.msrb.gmra.mxu0 %v6126_v55 }
 0x595   : > { %v7965_v26 = vpop.f32.mrf.mxu2 }
 0x59c   : > { %2831 = vmatmul.f32.gmra.mxu3 %v6148_v3  ;;  %2860 = vmatmul.f32.gmra.mxu0 %v6146_v2 }
 0x59d   : > { %v7969_v55 = vpop.f32.mrf.mxu2 }
 0x5a4   : > { %2834 = vmatmul.f32.gmra.mxu3 %v6156_v10  ;;  %2863 = vmatmul.f32.gmra.mxu0 %v6154_v9 }
 0x5a5   : > { %v2594_v37 = vpop.f32.mrf.mxu2 }
 0x5ac   : > { %2837 = vmatmul.f32.gmra.mxu3 %v6164_v17  ;;  %2866 = vmatmul.f32.gmra.mxu0 %v6162_v16 }
 0x5ad   : > { %v2597_v38 = vpop.f32.mrf.mxu2 }
 0x5b5   : > { %v2600_v16 = vpop.f32.mrf.mxu2 }
 0x5bd   : > { %v2603_v41 = vpop.f32.mrf.mxu2 }
 0x5c5   : > { %v2800_v40 = vpop.f32.mrf.mxu2 }
 0x5d7   : > { %v7967_v47 = vpop.f32.mrf.mxu3 }
 0x5d8   : > { %9333 = vst [vmem:[#allocation15_spill] sm:$0xff] %v7967_v47 }
 0x5df   : > { %v7971_v32 = vpop.f32.mrf.mxu3 }
 0x5e0   : > { %9334 = vst [vmem:[#allocation16_spill] sm:$0xff] %v7971_v32 }
 0x5e7   : > { %v7973_v2 = vpop.f32.mrf.mxu3 }
 0x5e8   : > { %9335 = vst [vmem:[#allocation17_spill] sm:$0xff] %v7973_v2 }
 0x5ef   : > { %v7975_v9 = vpop.f32.mrf.mxu3 }
 0x5f0   : > { %9336 = vst [vmem:[#allocation18_spill] sm:$0xff] %v7975_v9  ;;  %v5343_v9 = vld [vmem:[%s9306_s1 + $0x11f8] sm:$0xff] }
 0x5f7   : > { %v2623_v48 = vpop.f32.mrf.mxu3 }
 0x5f8   : > { %v2624_v43 = vadd.f32 %v2623_v48, %v2594_v37  ;;  %v5339_v37 = vld [vmem:[%s9306_s1 + $0x11d8] sm:$0xff] }
 0x5ff   : > { %v2626_v46 = vpop.f32.mrf.mxu3 }
 0x600   : > { %v2627_v47 = vadd.f32 %v2626_v46, %v2597_v38  ;;  %v5331_v38 = vld [vmem:[%s9306_s1 + $0x1198] sm:$0xff]  ;;  %v5329_v46 = vld [vmem:[%s9306_s1 + $0x1188] sm:$0xff] }
 0x607   : > { %v2629_v34 = vpop.f32.mrf.mxu3 }
 0x608   : > { %v2630_v8 = vadd.f32 %v2629_v34, %v2600_v16  ;;  %v2803_v16 = vpop.f32.mrf.mxu2 }
 0x60f   : > { %v2632_v44 = vpop.f32.mrf.mxu3 }
 0x610   : > { %v2633_v42 = vadd.f32 %v2632_v44, %v2603_v41  ;;  %v5341_v41 = vld [vmem:[%s9306_s1 + $0x11e8] sm:$0xff]  ;;  %v2806_v48 = vpop.f32.mrf.mxu2 }
 0x611   : > { %v5325_v44 = vld [vmem:[%s9306_s1 + $0x1168] sm:$0xff] }
 0x612   : > { %2693 = vmatpush.msra.mxu1 %v2633_v42  ;;  %v5323_v42 = vld [vmem:[%s9306_s1 + $0x1158] sm:$0xff] }
 0x614   : > { %2694 = vmatpush.msra.mxu1 %v2630_v8  ;;  %v5321_v8 = vld [vmem:[%s9306_s1 + $0x1148] sm:$0xff] }
 0x616   : > { %2695 = vmatpush.msra.mxu1 %v2627_v47  ;;  %v5337_v47 = vld [vmem:[%s9306_s1 + $0x11c8] sm:$0xff] }
 0x617   : > { %v2829_v32 = vpop.f32.mrf.mxu3 }
 0x618   : > { %2696 = vmatpush.msra.mxu1 %v2624_v43 }
 0x619   : > { %5276 = vmatmul.msk.f32.vlgmr.msra.gmra.mxu1 %vm993_vm0, %v7828_v51  ;;  %v5335_v51 = vld [vmem:[%s9306_s1 + $0x11b8] sm:$0xff] }
 0x61a   : > { %2870 = vmatpush.msrb.mxu1 %v5343_v9  ;;  %v5333_v9 = vld [vmem:[%s9306_s1 + $0x11a8] sm:$0xff] }
 0x61c   : > { %2871 = vmatpush.msrb.mxu1 %v5341_v41  ;;  %v2809_v41 = vpop.f32.mrf.mxu2 }
 0x61e   : > { %2872 = vmatpush.msrb.mxu1 %v5339_v37 }
 0x61f   : > { %v2832_v43 = vpop.f32.mrf.mxu3 }
 0x620   : > { %2873 = vmatpush.msrb.mxu1 %v5337_v47 }
 0x621   : > { %5277 = vmatmul.msk.f32.gmra.mxu1 %vm993_vm0, %v7860_v6  ;;  %v5327_v6 = vld [vmem:[%s9306_s1 + $0x1178] sm:$0xff] }
 0x622   : > { %2874 = vmatpush.msrb.mxu1 %v5335_v51  ;;  %v5317_v51 = vld [vmem:[%s9306_s1 + $0x1128] sm:$0xff] }
 0x624   : > { %2875 = vmatpush.msrb.mxu1 %v5333_v9  ;;  %v2985_v9 = vld [vmem:[%s9310_s5 + $0x18] sm:$0xff] }
 0x625   : > { %3003 = vperm.xlu2 %5441, %v2985_v9  }
 0x626   : > { %2876 = vmatpush.msrb.mxu1 %v5331_v38 }
 0x627   : > { %v2835_v34 = vpop.f32.mrf.mxu3 }
 0x628   : > { %2877 = vmatpush.msrb.mxu1 %v5329_v46  ;;  %v2836_v38 = vadd.f32 %v2835_v34, %v2806_v48  ;;  %v5315_v46 = vld [vmem:[%s9306_s1 + $0x1118] sm:$0xff]  ;;  %v8039_v48 = vld [vmem:[%s9309_s4 + $0x100] sm:$0xff] }
 0x629   : > { %5278 = vmatmul.msk.f32.gmra.mxu1 %vm993_vm0, %v7892_v28  ;;  %v5319_v28 = vld [vmem:[%s9306_s1 + $0x1138] sm:$0xff] }
 0x62a   : > { %2878 = vmatpush.msrb.mxu1 %v5327_v6  ;;  %v2833_v6 = vadd.f32 %v2832_v43, %v2803_v16  ;;  %v2984_v16 = vld [vmem:[%s9310_s5 + $0x10] sm:$0xff] }
 0x62c   : > { %2879 = vmatpush.msrb.mxu1 %v5325_v44  ;;  %v2830_v44 = vadd.f32 %v2829_v32, %v2800_v40  ;;  %v8050_v32 = vld [vmem:[%s9309_s4 + $0x108] sm:$0xff]  ;;  %v8058_v40 = vld [vmem:[%s9309_s4 + $0x110] sm:$0xff] }
 0x62d   : > { %2998 = vperm.xlu2 %5441, %v2984_v16   ;;  %v1097_v16 = vadd.f32 %v6562_v63, %v6578_v18  ;;  %v3047_v63 = vld [vmem:[%s9312_s7 + $0x48] sm:$0xff] }
 0x62e   : > { %2880 = vmatpush.msrb.mxu1 %v5323_v42 }
 0x62f   : > { %v2838_v37 = vpop.f32.mrf.mxu3 }
 0x630   : > { %v2839_v47 = vadd.f32 %v2838_v37, %v2809_v41  ;;  %2881 = vmatpush.msrb.mxu1 %v5321_v8 }
 0x631   : > { %5279 = vmatmul.msk.f32.gmra.mxu1 %vm993_vm0, %v7924_v15  ;;  %v5313_v15 = vld [vmem:[%s9306_s1 + $0x1108] sm:$0xff] }
 0x632   : > { %2882 = vmatpush.msrb.mxu1 %v5319_v28  ;;  %2928 = vmatpush.msrb.mxu2 %v2839_v47 }
 0x634   : > { %2883 = vmatpush.msrb.mxu1 %v5317_v51  ;;  %2929 = vmatpush.msrb.mxu2 %v2836_v38 }
 0x636   : > { %2884 = vmatpush.msrb.mxu1 %v5315_v46  ;;  %2930 = vmatpush.msrb.mxu2 %v2833_v6  ;;  %v3050_v46 = vld [vmem:[%s9312_s7 + $0x60] sm:$0xff]  ;;  %v1100_v6 = vadd.f32 %v6566_v1, %v6582_v22 }
 0x638   : > { %2885 = vmatpush.msrb.mxu1 %v5313_v15  ;;  %2931 = vmatpush.msrb.mxu2 %v2830_v44 }
 0x639   : > { %2886 = vmatmul.f32.vlgmr.msrb.gmra.mxu1 %v6128_v56  ;;  %5348 = vmatmul.msk.f32.vlgmr.msrb.gmra.mxu2 %vm993_vm0, %v8039_v48  ;;  %v8066_v56 = vld [vmem:[%s9309_s4 + $0x118] sm:$0xff] }
 0x641   : > { %2889 = vmatmul.f32.gmra.mxu1 %v6148_v3  ;;  %5349 = vmatmul.msk.f32.gmra.mxu2 %vm993_vm0, %v8050_v32  ;;  %v8071_v3 = vpop.f32.mrf.mxu0 }
 0x649   : > { %2892 = vmatmul.f32.gmra.mxu1 %v6156_v10  ;;  %5350 = vmatmul.msk.f32.gmra.mxu2 %vm993_vm0, %v8058_v40  ;;  %v2672_v43 = vpop.f32.mrf.mxu0 }
 0x651   : > { %2895 = vmatmul.f32.gmra.mxu1 %v6164_v17  ;;  %5351 = vmatmul.msk.f32.gmra.mxu2 %vm993_vm0, %v8066_v56  ;;  %v2675_v42 = vpop.f32.mrf.mxu0  ;;  %v3053_v17 = vld [vmem:[%s9312_s7 + $0x78] sm:$0xff] }
 0x652   : > { %3131 = vperm.xlu2 %5441, %v3053_v17   ;;  %v1094_v17 = vadd.f32 %v6558_v61, %v6574_v12 }
 0x654   : > { %v1390_v1 = vadd.f32 %v6977_v52, %v1094_v17 }
 0x656   : > { %v1654_v12 = vadd.f32 %v7230_v57, %v1390_v1  ;;  %v8147_v1 = vld [vmem:[%s9311_s6 + $0x70] sm:$0xff] }
 0x659   : > { %v2678_v8 = vpop.f32.mrf.mxu0 }
 0x65a   : > { %3116 = vperm.xlu2 %5441, %v3050_v46  }
 0x661   : > { %v2858_v28 = vpop.f32.mrf.mxu0 }
 0x662   : > { %3101 = vperm.xlu2 %5441, %v3047_v63   ;;  %v8161_v63 = vld [vmem:[%s9311_s6 + $0x8] sm:$0xff] }
 0x669   : > { %v2861_v51 = vpop.f32.mrf.mxu0 }
 0x671   : > { %v2864_v15 = vpop.f32.mrf.mxu0 }
 0x67f   : > { %v8100_v46 = vpop.permute.xlu2 %3003 }
 0x696   : > { %v8073_v34 = vpop.f32.mrf.mxu1 }
 0x697   : > { %9337 = vst [vmem:[#allocation19_spill] sm:$0xff] %v8073_v34  ;;  %v1103_v34 = vadd.f32 %v6570_v5, %v6588_v29 }
 0x699   : > { %v1396_v2 = vadd.f32 %v6987_v49, %v1103_v34  ;;  %v1918_v49 = vadd.f32 %v7491_v39, %v1654_v12  ;;  %v8214_v12 = vld [vmem:[%s9311_s6 + $0x38] sm:$0xff] }
 0x69b   : > { %v1660_v61 = vadd.f32 %v7241_v14, %v1396_v2  ;;  %v2182_v57 = vadd.f32 %v7750_v35, %v1918_v49  ;;  %v8249_v49 = vld [vmem:[%s9311_s6 + $0x60] sm:$0xff] }
 0x69d   : > { %v2446_v39 = vadd.f32 %v7961_v45, %v2182_v57 }
 0x69e   : > { %v8075_v10 = vpop.f32.mrf.mxu1 }
 0x69f   : > { %9338 = vst [vmem:[#allocation20_spill] sm:$0xff] %v8075_v10 }
 0x6a6   : > { %v8077_v41 = vpop.f32.mrf.mxu1 }
 0x6a7   : > { %9339 = vst [vmem:[#allocation21_spill] sm:$0xff] %v8077_v41  ;;  %v1392_v41 = vadd.f32 %v6981_v59, %v1097_v16  ;;  %v1924_v59 = vadd.f32 %v7501_v27, %v1660_v61  ;;  %v8123_v16 = vpop.permute.xlu2 %2998  ;;  %v8207_v61 = vld [vmem:[%s9311_s6 + $0x30] sm:$0xff] }
 0x6a9   : > { %v1656_v5 = vadd.f32 %v7234_v11, %v1392_v41 }
 0x6ab   : > { %v1920_v52 = vadd.f32 %v7494_v30, %v1656_v5  ;;  %v8177_v5 = vld [vmem:[%s9311_s6 + $0x10] sm:$0xff] }
 0x6ad   : > { %v2184_v11 = vadd.f32 %v7754_v25, %v1920_v52  ;;  %v3044_v25 = vld [vmem:[%s9312_s7 + $0x30] sm:$0xff]  ;;  %v8228_v52 = vld [vmem:[%s9311_s6 + $0x48] sm:$0xff] }
 0x6ae   : > { %v8079_v37 = vpop.f32.mrf.mxu1  ;;  %3086 = vperm.xlu2 %5441, %v3044_v25  }
 0x6af   : > { %9340 = vst [vmem:[#allocation22_spill] sm:$0xff] %v8079_v37  ;;  %v1394_v37 = vadd.f32 %v6985_v54, %v1100_v6  ;;  %v2448_v41 = vadd.f32 %v7963_v24, %v2184_v11  ;;  %v2710_v24 = vadd.f32 %v8071_v3, %v2446_v39  ;;  %v3041_v3 = vld [vmem:[%s9312_s7 + $0x18] sm:$0xff]  ;;  %v9341_v39 = vld [vmem:[#allocation3_spill] sm:$0xff] }
 0x6b1   : > { %v1658_v22 = vadd.f32 %v7237_v58, %v1394_v37  ;;  %v2867_v58 = vpop.f32.mrf.mxu0 }
 0x6b3   : > { %v1922_v18 = vadd.f32 %v7497_v33, %v1658_v22  ;;  %v2188_v33 = vadd.f32 %v7761_v21, %v1924_v59  ;;  %v3038_v22 = vld [vmem:[%s9312_s7] sm:$0xff]  ;;  %v8235_v59 = vld [vmem:[%s9311_s6 + $0x50] sm:$0xff] }
 0x6b5   : > { %v2186_v54 = vadd.f32 %v7757_v36, %v1922_v18  ;;  %v2452_v30 = vadd.f32 %v7969_v55, %v2188_v33  ;;  %v2712_v36 = vadd.f32 %v2672_v43, %v2448_v41  ;;  %v8128_v43 = vpop.permute.xlu0 %2993  ;;  %v8193_v18 = vld [vmem:[%s9311_s6 + $0x20] sm:$0xff]  ;;  %v1129_v33 = vadd.f32 %v6564_v0, %v6580_v19  ;;  %v9342_v0 = vld [vmem:[#allocation5_spill] sm:$0xff] }
 0x6b6   : > { %v2887_v47 = vpop.f32.mrf.mxu1  ;;  %3071 = vperm.xlu2 %5441, %v3041_v3   ;;  %v1123_v41 = vadd.f32 %v6556_v60, %v6572_v7  ;;  %v9347_v60 = vld [vmem:[#allocation10_spill] sm:$0xff] }
 0x6b7   : > { %v2450_v14 = vadd.f32 %v7965_v26, %v2186_v54  ;;  %v2716_v21 = vadd.f32 %v2678_v8, %v2452_v30  ;;  %v2888_v55 = vadd.f32 %v2887_v47, %v2858_v28  ;;  %v8242_v54 = vld [vmem:[%s9311_s6 + $0x58] sm:$0xff]  ;;  %v1395_v57 = vadd.f32 %v6979_v31, %v1129_v33 }
 0x6b8   : > { %v1391_v25 = vadd.f32 %v9341_v39, %v1123_v41 }
 0x6b9   : > { %v2714_v27 = vadd.f32 %v2675_v42, %v2450_v14  ;;  %v1126_v14 = vadd.f32 %v6560_v62, %v6576_v13  ;;  %v9344_v13 = vld [vmem:[#allocation9_spill] sm:$0xff] }
 0x6bb   : > { %v1393_v30 = vadd.f32 %v6975_v50, %v1126_v14  ;;  %v9348_v50 = vld [vmem:[#allocation13_spill] sm:$0xff]  ;;  %v9358_v14 = vld [vmem:[#allocation20_spill] sm:$0xff] }
 0x6bc   : > { %v2933_v9 = vpop.f32.mrf.mxu2 }
 0x6bd   : > { %v2974_v45 = vadd.f32 %v2933_v9, %v2710_v24  ;;  %v1657_v19 = vadd.f32 %v9342_v0, %v1393_v30 }
 0x6be   : > { %v2890_v38 = vpop.f32.mrf.mxu1  ;;  %3056 = vperm.xlu2 %5441, %v3038_v22   ;;  %v9357_v22 = vld [vmem:[#allocation15_spill] sm:$0xff] }
 0x6bf   : > { %v2891_v6 = vadd.f32 %v2890_v38, %v2861_v51  ;;  %v8133_v38 = vpop.permute.xlu1 %2988 }
 0x6c0   : > { %v3006_v28 = vadd.f32 %v8133_v38, %v2974_v45  ;;  %v9352_v45 = vld [vmem:[#allocation17_spill] sm:$0xff] }
 0x6c4   : > { %v2936_v44 = vpop.f32.mrf.mxu2 }
 0x6c5   : > { %v2976_v42 = vadd.f32 %v2936_v44, %v2712_v36  ;;  %v3014_v44 = vmax.f32 %v3006_v28, 0.0  ;;  %v9343_v36 = vld [vmem:[#allocation6_spill] sm:$0xff] }
 0x6c6   : > { %v2893_v10 = vpop.f32.mrf.mxu1  ;;  %v9355_v28 = vld [vmem:[#allocation18_spill] sm:$0xff] }
 0x6c7   : > { %v2894_v37 = vadd.f32 %v2893_v10, %v2864_v15  ;;  %v3008_v8 = vadd.f32 %v8128_v43, %v2976_v42  ;;  %v9351_v42 = vld [vmem:[#allocation14_spill] sm:$0xff] }
 0x6c9   : > { %v3016_v9 = vmax.f32 %v3008_v8, 0.0 }
 0x6cc   : > { %v2939_v29 = vpop.f32.mrf.mxu2 }
 0x6cd   : > { %v2978_v26 = vadd.f32 %v2939_v29, %v2714_v27  ;;  %v8221_v29 = vld [vmem:[%s9311_s6 + $0x40] sm:$0xff] }
 0x6ce   : > { %v2896_v34 = vpop.f32.mrf.mxu1 }
 0x6cf   : > { %v2897_v2 = vadd.f32 %v2896_v34, %v2867_v58  ;;  %v3010_v15 = vadd.f32 %v8123_v16, %v2978_v26  ;;  %v8256_v58 = vld [vmem:[%s9311_s6 + $0x68] sm:$0xff] }
 0x6d1   : > { %2957 = vmatpush.msrb.mxu3 %v2897_v2  ;;  %v3018_v47 = vmax.f32 %v3010_v15, 0.0  ;;  %v1132_v2 = vadd.f32 %v6568_v4, %v6584_v23  ;;  %v9345_v23 = vld [vmem:[#allocation4_spill] sm:$0xff] }
 0x6d2   : > { %v1655_v31 = vadd.f32 %v9345_v23, %v1391_v25 }
 0x6d3   : > { %2958 = vmatpush.msrb.mxu3 %v2894_v37  ;;  %v1397_v27 = vadd.f32 %v6983_v53, %v1132_v2  ;;  %v1659_v37 = vadd.f32 %v7245_v20, %v1395_v57  ;;  %v9349_v53 = vld [vmem:[#allocation7_spill] sm:$0xff]  ;;  %v9350_v20 = vld [vmem:[#allocation12_spill] sm:$0xff]  ;;  %v9359_v57 = vld [vmem:[#allocation22_spill] sm:$0xff] }
 0x6d4   : > { %v2942_v35 = vpop.f32.mrf.mxu2  ;;  %v1919_v24 = vadd.f32 %v9349_v53, %v1655_v31 }
 0x6d5   : > { %v2980_v10 = vadd.f32 %v2942_v35, %v2716_v21  ;;  %2959 = vmatpush.msrb.mxu3 %v2891_v6  ;;  %v1661_v62 = vadd.f32 %v9343_v36, %v1397_v27  ;;  %v1923_v21 = vadd.f32 %v9344_v13, %v1659_v37  ;;  %v9346_v6 = vld [vmem:[#allocation8_spill] sm:$0xff]  ;;  %v9360_v37 = vld [vmem:[#allocation19_spill] sm:$0xff] }
 0x6d6   : > { %v1921_v26 = vadd.f32 %v9346_v6, %v1657_v19 }
 0x6d7   : > { %v3012_v17 = vadd.f32 %v8100_v46, %v2980_v10  ;;  %2960 = vmatpush.msrb.mxu3 %v2888_v55  ;;  %v1925_v7 = vadd.f32 %v9347_v60, %v1661_v62  ;;  %v2187_v35 = vadd.f32 %v9348_v50, %v1923_v21 }
 0x6d8   : > { %5352 = vmatmul.msk.f32.vlgmr.msrb.gmra.mxu3 %vm993_vm0, %v8039_v48  ;;  %v8142_v48 = vld [vmem:[%s9311_s6] sm:$0xff]  ;;  %v2185_v55 = vadd.f32 %v9350_v20, %v1921_v26 }
 0x6d9   : > { %v3020_v51 = vmax.f32 %v3012_v17, 0.0  ;;  %v2189_v10 = vadd.f32 %v9351_v42, %v1925_v7  ;;  %v2451_v15 = vadd.f32 %v9352_v45, %v2187_v35  ;;  %v9353_v17 = vld [vmem:[#allocation11_spill] sm:$0xff] }
 0x6da   : > { %v2183_v8 = vadd.f32 %v9353_v17, %v1919_v24 }
 0x6db   : > { %3194 = vmatpush.msra.mxu0 %v3020_v51  ;;  %5424 = vmatpush.msra.mxu1 %v3020_v51  ;;  %v9354_v51 = vld [vmem:[#allocation16_spill] sm:$0xff] }
 0x6dc   : > { %v2449_v3 = vadd.f32 %v9354_v51, %v2185_v55  ;;  %v2447_v33 = vadd.f32 %v9357_v22, %v2183_v8 }
 0x6dd   : > { %3195 = vmatpush.msra.mxu0 %v3018_v47  ;;  %5425 = vmatpush.msra.mxu1 %v3018_v47  ;;  %v2453_v47 = vadd.f32 %v9355_v28, %v2189_v10 }
 0x6de   : > { %v2713_v2 = vadd.f32 %v9358_v14, %v2449_v3  ;;  %v2711_v39 = vadd.f32 %v9360_v37, %v2447_v33 }
 0x6df   : > { %3196 = vmatpush.msra.mxu0 %v3016_v9  ;;  %5426 = vmatpush.msra.mxu1 %v3016_v9  ;;  %v9356_v9 = vld [vmem:[#allocation21_spill] sm:$0xff]  ;;  %v2717_v41 = vadd.f32 %v9359_v57, %v2453_v47 }
 0x6e0   : > { %5353 = vmatmul.msk.f32.gmra.mxu3 %vm993_vm0, %v8050_v32  ;;  %v8166_v32 = vld [vmem:[%s9311_s6 + $0x78] sm:$0xff] }
 0x6e1   : > { %3197 = vmatpush.msra.mxu0 %v3014_v44  ;;  %5427 = vmatpush.msra.mxu1 %v3014_v44  ;;  %v2715_v44 = vadd.f32 %v9356_v9, %v2451_v15 }
 0x6e2   : > { %5356 = vmatmul.msk.f32.vlgmr.msra.gmra.mxu0 %vm993_vm0, %v8142_v48  ;;  %5370 = vmatmul.msk.f32.vlgmr.msra.gmra.mxu1 %vm993_vm0, %v8147_v1 }
 0x6e8   : > { %5354 = vmatmul.msk.f32.gmra.mxu3 %vm993_vm0, %v8058_v40  ;;  %v8186_v40 = vld [vmem:[%s9311_s6 + $0x18] sm:$0xff] }
 0x6ea   : > { %5357 = vmatmul.msk.f32.gmra.mxu0 %vm993_vm0, %v8161_v63  ;;  %5371 = vmatmul.msk.f32.gmra.mxu1 %vm993_vm0, %v8166_v32 }
 0x6f0   : > { %5355 = vmatmul.msk.f32.gmra.mxu3 %vm993_vm0, %v8066_v56  ;;  %v8200_v56 = vld [vmem:[%s9311_s6 + $0x28] sm:$0xff] }
 0x6f2   : > { %5358 = vmatmul.msk.f32.gmra.mxu0 %vm993_vm0, %v8177_v5 }
 0x6fa   : > { %5359 = vmatmul.msk.f32.gmra.mxu0 %vm993_vm0, %v8186_v40 }
 0x702   : > { %5360 = vmatmul.msk.f32.gmra.mxu0 %vm993_vm0, %v8193_v18 }
 0x70a   : > { %5361 = vmatmul.msk.f32.gmra.mxu0 %vm993_vm0, %v8200_v56 }
 0x712   : > { %5362 = vmatmul.msk.f32.gmra.mxu0 %vm993_vm0, %v8207_v61 }
 0x71a   : > { %5363 = vmatmul.msk.f32.gmra.mxu0 %vm993_vm0, %v8214_v12 }
 0x722   : > { %5364 = vmatmul.msk.f32.gmra.mxu0 %vm993_vm0, %v8221_v29 }
 0x72a   : > { %5365 = vmatmul.msk.f32.gmra.mxu0 %vm993_vm0, %v8228_v52 }
 0x732   : > { %5366 = vmatmul.msk.f32.gmra.mxu0 %vm993_vm0, %v8235_v59 }
 0x73a   : > { %5367 = vmatmul.msk.f32.gmra.mxu0 %vm993_vm0, %v8242_v54 }
 0x742   : > { %5368 = vmatmul.msk.f32.gmra.mxu0 %vm993_vm0, %v8249_v49 }
 0x74a   : > { %5369 = vmatmul.msk.f32.gmra.mxu0 %vm993_vm0, %v8256_v58 }
 0x75b   : > { %v2962_v34 = vpop.f32.mrf.mxu3 }
 0x75c   : > { %v2975_v19 = vadd.f32 %v2962_v34, %v2711_v39 }
 0x75e   : > { %v3007_v23 = vadd.f32 %v8133_v38, %v2975_v19 }
 0x763   : > { %v2965_v11 = vpop.f32.mrf.mxu3 }
 0x764   : > { %v2977_v25 = vadd.f32 %v2965_v11, %v2713_v2 }
 0x766   : > { %v3009_v13 = vadd.f32 %v8128_v43, %v2977_v25 }
 0x768   : > { %v3017_v6 = vmax.f32 %v3009_v13, 0.0 }
 0x76b   : > { %v2968_v4 = vpop.f32.mrf.mxu3 }
 0x76c   : > { %v2979_v30 = vadd.f32 %v2968_v4, %v2715_v44  ;;  %v3015_v4 = vmax.f32 %v3007_v23, 0.0 }
 0x76e   : > { %v3011_v36 = vadd.f32 %v8123_v16, %v2979_v30  ;;  %v8326_v16 = vpop.f32.mrf.mxu1 }
 0x770   : > { %v3019_v31 = vmax.f32 %v3011_v36, 0.0 }
 0x773   : > { %v2971_v27 = vpop.f32.mrf.mxu3 }
 0x774   : > { %v2981_v0 = vadd.f32 %v2971_v27, %v2717_v41 }
 0x776   : > { %v3013_v62 = vadd.f32 %v8100_v46, %v2981_v0  ;;  %v8322_v46 = vpop.f32.mrf.mxu0  ;;  %v8332_v38 = vpop.f32.mrf.mxu1 }
 0x778   : > { %v3021_v21 = vmax.f32 %v3013_v62, 0.0 }
 0x77a   : > { %3259 = vmatpush.msrb.mxu1 %v3021_v21 }
 0x77c   : > { %3260 = vmatpush.msrb.mxu1 %v3019_v31 }
 0x77e   : > { %3261 = vmatpush.msrb.mxu1 %v3017_v6  ;;  %v8328_v43 = vpop.f32.mrf.mxu0 }
 0x780   : > { %3262 = vmatpush.msrb.mxu1 %v3015_v4 }
 0x781   : > { %5372 = vmatmul.msk.f32.vlgmr.msrb.gmra.mxu1 %vm993_vm0, %v8142_v48 }
 0x786   : > { %v8334_v48 = vpop.f32.mrf.mxu0 }
 0x789   : > { %5373 = vmatmul.msk.f32.gmra.mxu1 %vm993_vm0, %v8161_v63 }
 0x791   : > { %5374 = vmatmul.msk.f32.gmra.mxu1 %vm993_vm0, %v8177_v5  ;;  %v8340_v5 = vpop.permute.xlu1 %3121 }
 0x799   : > { %5375 = vmatmul.msk.f32.gmra.mxu1 %vm993_vm0, %v8186_v40  ;;  %v8342_v40 = vpop.f32.mrf.mxu0 }
 0x7a1   : > { %5376 = vmatmul.msk.f32.gmra.mxu1 %vm993_vm0, %v8193_v18 }
 0x7a9   : > { %5377 = vmatmul.msk.f32.gmra.mxu1 %vm993_vm0, %v8200_v56  ;;  %v8346_v56 = vpop.permute.xlu0 %3126 }
 0x7b1   : > { %5378 = vmatmul.msk.f32.gmra.mxu1 %vm993_vm0, %v8207_v61  ;;  %v3107_v61 = vpop.permute.xlu1 %3106 }
 0x7b9   : > { %5379 = vmatmul.msk.f32.gmra.mxu1 %vm993_vm0, %v8214_v12  ;;  %v3211_v12 = vpop.f32.mrf.mxu0 }
 0x7c1   : > { %5380 = vmatmul.msk.f32.gmra.mxu1 %vm993_vm0, %v8221_v29  ;;  %v8350_v29 = vpop.permute.xlu2 %3131 }
 0x7c9   : > { %5381 = vmatmul.msk.f32.gmra.mxu1 %vm993_vm0, %v8228_v52  ;;  %v3112_v52 = vpop.permute.xlu0 %3111 }
 0x7d1   : > { %5382 = vmatmul.msk.f32.gmra.mxu1 %vm993_vm0, %v8235_v59  ;;  %v3092_v59 = vpop.permute.xlu1 %3091 }
 0x7d9   : > { %5383 = vmatmul.msk.f32.gmra.mxu1 %vm993_vm0, %v8242_v54  ;;  %v3214_v54 = vpop.f32.mrf.mxu0  ;;  %v3077_v34 = vpop.permute.xlu1 %3076 }
 0x7da   : > { %v8354_v60 = vadd.f32 %v3211_v12, %v3077_v34 }
 0x7e1   : > { %5384 = vmatmul.msk.f32.gmra.mxu1 %vm993_vm0, %v8249_v49  ;;  %v3117_v49 = vpop.permute.xlu2 %3116  ;;  %v3217_v11 = vpop.f32.mrf.mxu0 }
 0x7e9   : > { %5385 = vmatmul.msk.f32.gmra.mxu1 %vm993_vm0, %v8256_v58  ;;  %v3097_v58 = vpop.permute.xlu0 %3096  ;;  %v3102_v35 = vpop.permute.xlu2 %3101 }
 0x7ea   : > { %v3220_v42 = vpop.f32.mrf.mxu0 }
 0x7eb   : > { %v8372_v47 = vadd.f32 %v3220_v42, %v3092_v59 }
 0x7f1   : > { %5386 = vmatmul.msk.f32.gmra.mxu1 %vm993_vm0, %v8147_v1  ;;  %v3082_v53 = vpop.permute.xlu0 %3081  ;;  %v3087_v45 = vpop.permute.xlu2 %3086 }
 0x7f2   : > { %v8360_v20 = vadd.f32 %v3214_v54, %v3082_v53  ;;  %v8366_v17 = vadd.f32 %v3217_v11, %v3087_v45  ;;  %v3223_v3 = vpop.f32.mrf.mxu0 }
 0x7f3   : > { %v8378_v14 = vadd.f32 %v3223_v3, %v3097_v58 }
 0x7f9   : > { %5387 = vmatmul.msk.f32.gmra.mxu1 %vm993_vm0, %v8166_v32 }
 0x7fa   : > { %v3226_v22 = vpop.f32.mrf.mxu0 }
 0x7fb   : > { %v8384_v27 = vadd.f32 %v3226_v22, %v3102_v35 }
 0x7fe   : > { %v8338_v63 = vpop.f32.mrf.mxu1 }
 0x802   : > { %v3229_v41 = vpop.f32.mrf.mxu0 }
 0x803   : > { %v8392_v19 = vadd.f32 %v3229_v41, %v3107_v61 }
 0x806   : > { %v8344_v18 = vpop.f32.mrf.mxu1 }
 0x80a   : > { %v3232_v62 = vpop.f32.mrf.mxu0 }
 0x80b   : > { %v8400_v31 = vadd.f32 %v3232_v62, %v3112_v52 }
 0x80e   : > { %v8348_v1 = vpop.f32.mrf.mxu1 }
 0x812   : > { %v3235_v12 = vpop.f32.mrf.mxu0 }
 0x813   : > { %v8408_v54 = vadd.f32 %v3235_v12, %v3117_v49 }
 0x816   : > { %v8352_v32 = vpop.f32.mrf.mxu1 }
 0x81e   : > { %v3276_v26 = vpop.f32.mrf.mxu1 }
 0x81f   : > { %v8356_v7 = vadd.f32 %v3276_v26, %v3077_v34 }
 0x821   : > { %v3358_v50 = vadd.f32 %v8356_v7, %v8354_v60 }
 0x823   : > { %3359 = vadd.xlane.f32.xlu1 %v3358_v50 }
 0x826   : > { %v3279_v24 = vpop.f32.mrf.mxu1 }
 0x827   : > { %v8362_v55 = vadd.f32 %v3279_v24, %v3082_v53  ;;  %v8426_v24 = vadd.f32 %v8326_v16, %v8346_v56 }
 0x829   : > { %v3361_v10 = vadd.f32 %v8362_v55, %v8360_v20 }
 0x82b   : > { %3362 = vadd.xlane.f32.xlu2 %v3361_v10 }
 0x82e   : > { %v3282_v15 = vpop.f32.mrf.mxu1 }
 0x82f   : > { %v8368_v8 = vadd.f32 %v3282_v15, %v3087_v45  ;;  %v8437_v15 = vadd.f32 %v8332_v38, %v8350_v29 }
 0x831   : > { %v3364_v51 = vadd.f32 %v8368_v8, %v8366_v17 }
 0x833   : > { %3365 = vadd.xlane.f32.xlu0 %v3364_v51 }
 0x836   : > { %v3285_v28 = vpop.f32.mrf.mxu1 }
 0x837   : > { %v8374_v9 = vadd.f32 %v3285_v28, %v3092_v59  ;;  %v3067_v28 = vpop.permute.xlu0 %3066 }
 0x838   : > { %v8449_v38 = vadd.f32 %v8348_v1, %v3067_v28  ;;  %v8455_v22 = vadd.f32 %v8334_v48, %v3067_v28  ;;  %v3062_v1 = vpop.permute.xlu1 %3061 }
 0x839   : > { %v3367_v44 = vadd.f32 %v8374_v9, %v8372_v47  ;;  %v8470_v48 = vadd.f32 %v8328_v43, %v3062_v1  ;;  %v3429_v43 = vmax.f32 %v8354_v60, %v8356_v7 }
 0x83a   : > { %v3352_v41 = vadd.f32 %v8449_v38, %v8455_v22 }
 0x83b   : > { %3368 = vadd.xlane.f32.xlu1 %v3367_v44  ;;  %v3072_v44 = vpop.permute.xlu2 %3071 }
 0x83e   : > { %v3288_v33 = vpop.f32.mrf.mxu1 }
 0x83f   : > { %v8380_v2 = vadd.f32 %v3288_v33, %v3097_v58  ;;  %v8458_v33 = vadd.f32 %v8342_v40, %v3072_v44  ;;  %v3438_v40 = vmax.f32 %v8372_v47, %v8374_v9 }
 0x841   : > { %v3370_v57 = vadd.f32 %v8380_v2, %v8378_v14 }
 0x843   : > { %3371 = vadd.xlane.f32.xlu2 %v3370_v57 }
 0x846   : > { %v3291_v30 = vpop.f32.mrf.mxu1 }
 0x847   : > { %v8386_v37 = vadd.f32 %v3291_v30, %v3102_v35  ;;  %v3441_v30 = vmax.f32 %v8378_v14, %v8380_v2 }
 0x849   : > { %v3373_v39 = vadd.f32 %v8386_v37, %v8384_v27  ;;  %v3444_v25 = vmax.f32 %v8384_v27, %v8386_v37 }
 0x84b   : > { %3374 = vadd.xlane.f32.xlu0 %v3373_v39  ;;  %3445 = vmax.xlane.f32.xlu2 %v3444_v25  ;;  %v3435_v39 = vmax.f32 %v8366_v17, %v8368_v8 }
 0x84e   : > { %v3294_v0 = vpop.f32.mrf.mxu1 }
 0x84f   : > { %v8394_v36 = vadd.f32 %v3294_v0, %v3107_v61  ;;  %v3057_v0 = vpop.permute.xlu2 %3056 }
 0x850   : > { %v8479_v62 = vadd.f32 %v8338_v63, %v3057_v0 }
 0x851   : > { %v3447_v13 = vmax.f32 %v8392_v19, %v8394_v36  ;;  %v3376_v21 = vadd.f32 %v8394_v36, %v8392_v19 }
 0x853   : > { %3448 = vmax.xlane.f32.xlu0 %v3447_v13  ;;  %3377 = vadd.xlane.f32.xlu1 %v3376_v21  ;;  %v3432_v21 = vmax.f32 %v8360_v20, %v8362_v55 }
 0x856   : > { %v3297_v23 = vpop.f32.mrf.mxu1 }
 0x857   : > { %v8402_v6 = vadd.f32 %v3297_v23, %v3112_v52  ;;  %v3238_v52 = vpop.f32.mrf.mxu0 }
 0x858   : > { %v8415_v26 = vadd.f32 %v3238_v52, %v8340_v5 }
 0x859   : > { %v3379_v4 = vadd.f32 %v8402_v6, %v8400_v31  ;;  %v3450_v61 = vmax.f32 %v8400_v31, %v8402_v6 }
 0x85b   : > { %3380 = vadd.xlane.f32.xlu0 %v3379_v4  ;;  %3451 = vmax.xlane.f32.xlu1 %v3450_v61 }
 0x85e   : > { %v3300_v59 = vpop.f32.mrf.mxu1 }
 0x85f   : > { %v8410_v58 = vadd.f32 %v3300_v59, %v3117_v49 }
 0x861   : > { %v3382_v34 = vadd.f32 %v8410_v58, %v8408_v54  ;;  %v3453_v53 = vmax.f32 %v8408_v54, %v8410_v58 }
 0x863   : > { %3383 = vadd.xlane.f32.xlu2 %v3382_v34 }
 0x866   : > { %v3303_v11 = vpop.f32.mrf.mxu1 }
 0x867   : > { %v8418_v50 = vadd.f32 %v3303_v11, %v8340_v5 }
 0x869   : > { %v3456_v35 = vmax.f32 %v8415_v26, %v8418_v50  ;;  %v3385_v5 = vadd.f32 %v8418_v50, %v8415_v26 }
 0x86b   : > { %3457 = vmax.xlane.f32.xlu0 %v3456_v35  ;;  %3454 = vmax.xlane.f32.xlu2 %v3453_v53 }
 0x86e   : > { %v3306_v49 = vpop.f32.mrf.mxu1 }
 0x86f   : > { %v8429_v42 = vadd.f32 %v3306_v49, %v8346_v56  ;;  %v5559_v49 = vmov 256.0  }
 0x870   : > { %5442 = vrcp.f32 %v5559_v49 }
 0x871   : > { %v3388_v10 = vadd.f32 %v8429_v42, %v8426_v24  ;;  %v3459_v3 = vmax.f32 %v8426_v24, %v8429_v42 }
 0x873   : > { %3386 = vadd.xlane.f32.xlu2 %v3385_v5  ;;  %3389 = vadd.xlane.f32.xlu1 %v3388_v10 }
 0x876   : > { %v3309_v45 = vpop.f32.mrf.mxu1  ;;  %v5443_v10 = vpop.eup %5442 }
 0x877   : > { %v8440_v51 = vadd.f32 %v3309_v45, %v8350_v29  ;;  %v8452_v29 = vadd.f32 %v8352_v32, %v3072_v44  ;;  %v8467_v32 = vadd.f32 %v8344_v18, %v3062_v1  ;;  %v8482_v18 = vadd.f32 %v8322_v46, %v3057_v0 }
 0x878   : > { %v3423_v46 = vmax.f32 %v8455_v22, %v8449_v38  ;;  %vm3399_vm1 = vweird.f32 %v5443_v10 }
 0x879   : > { %v3391_v16 = vadd.f32 %v8440_v51, %v8437_v15  ;;  %v3462_v56 = vmax.f32 %v8437_v15, %v8440_v51  ;;  %v3355_v57 = vadd.f32 %v8452_v29, %v8458_v33  ;;  %v3349_v25 = vadd.f32 %v8467_v32, %v8470_v48 }
 0x87a   : > { %v3346_v13 = vadd.f32 %v8479_v62, %v8482_v18  ;;  %v3420_v23 = vmax.f32 %v8470_v48, %v8467_v32  ;;  %v3426_v63 = vmax.f32 %v8458_v33, %v8452_v29  ;;  %v3417_v4 = vmax.f32 %v8482_v18, %v8479_v62 }
 0x87b   : > { %3392 = vadd.xlane.f32.xlu0 %v3391_v16  ;;  %3463 = vmax.xlane.f32.xlu2 %v3462_v56  ;;  %v3395_v16 = vmul.f32 256.0, %v5443_v10 }
 0x87c   : > { %3460 = vmax.xlane.f32.xlu1 %v3459_v3 }
 0x87d   : > { %v3396_v3 = vsub.f32 1.0, %v3395_v16 }
 0x87f   : > { %v3397_v44 = vmul.f32 %v5443_v10, %v3396_v3 }
 0x883   : > { %3356 = vadd.xlane.f32.xlu0 %v3355_v57  ;;  %3353 = vadd.xlane.f32.xlu2 %v3352_v41 }
 0x884   : > { %3442 = vmax.xlane.f32.xlu1 %v3441_v30  ;;  %v3398_v30 = vadd.f32 %v5443_v10, %v3397_v44 }
 0x88b   : > { %3439 = vmax.xlane.f32.xlu0 %v3438_v40  ;;  %3436 = vmax.xlane.f32.xlu2 %v3435_v39  ;;  %v3400_v40 = vsel %vm3399_vm1, %v5443_v10, %v3398_v30 }
 0x88c   : > { %3350 = vadd.xlane.f32.xlu1 %v3349_v25 }
 0x893   : > { %3430 = vmax.xlane.f32.xlu2 %v3429_v43  ;;  %3347 = vadd.xlane.f32.xlu0 %v3346_v13 }
 0x894   : > { %3433 = vmax.xlane.f32.xlu1 %v3432_v21 }
 0x896   : > { %v3360_v59 = vpop.xlane.xlu1 %3359 }
 0x89b   : > { %3421 = vmax.xlane.f32.xlu2 %v3420_v23  ;;  %3427 = vmax.xlane.f32.xlu0 %v3426_v63 }
 0x89c   : > { %3424 = vmax.xlane.f32.xlu1 %v3423_v46 }
 0x89e   : > { %v3363_v61 = vpop.xlane.xlu2 %3362 }
 0x8a3   : > { %3418 = vmax.xlane.f32.xlu0 %v3417_v4 }
 0x8a6   : > { %v3366_v12 = vpop.xlane.xlu0 %3365 }
 0x8ae   : > { %v3369_v11 = vpop.xlane.xlu1 %3368 }
 0x8af   : > { %v3408_v44 = vmul.f32 %v3400_v40, %v3369_v11 }
 0x8b6   : > { %v3372_v34 = vpop.xlane.xlu2 %3371 }
 0x8b7   : > { %v3409_v3 = vmul.f32 %v3400_v40, %v3372_v34 }
 0x8be   : > { %v3375_v52 = vpop.xlane.xlu0 %3374  ;;  %v8498_v35 = vpop.xlane.xlu2 %3445 }
 0x8bf   : > { %v3410_v49 = vmul.f32 %v3400_v40, %v3375_v52 }
 0x8c6   : > { %v8500_v53 = vpop.xlane.xlu0 %3448  ;;  %v3378_v5 = vpop.xlane.xlu1 %3377 }
 0x8c7   : > { %v3411_v4 = vmul.f32 %v3400_v40, %v3378_v5 }
 0x8ce   : > { %v3381_v56 = vpop.xlane.xlu0 %3380  ;;  %v3452_v28 = vpop.xlane.xlu1 %3451 }
 0x8cf   : > { %v3412_v46 = vmul.f32 %v3400_v40, %v3381_v56 }
 0x8d6   : > { %v3384_v45 = vpop.xlane.xlu2 %3383 }
 0x8d7   : > { %v3413_v23 = vmul.f32 %v3400_v40, %v3384_v45  ;;  %v3405_v45 = vmul.f32 %v3400_v40, %v3360_v59 }
 0x8de   : > { %v3458_v57 = vpop.xlane.xlu0 %3457  ;;  %v3455_v41 = vpop.xlane.xlu2 %3454 }
 0x8e6   : > { %v3390_v1 = vpop.xlane.xlu1 %3389  ;;  %v3387_v0 = vpop.xlane.xlu2 %3386 }
 0x8e7   : > { %v3415_v43 = vmul.f32 %v3400_v40, %v3390_v1  ;;  %v3414_v13 = vmul.f32 %v3400_v40, %v3387_v0  ;;  %v3407_v1 = vmul.f32 %v3400_v40, %v3366_v12  ;;  %v3312_v12 = vld [vmem:[%s9313_s8] sm:$0xff] }
 0x8ee   : > { %v3393_v39 = vpop.xlane.xlu0 %3392  ;;  %v3464_v16 = vpop.xlane.xlu2 %3463 }
 0x8ef   : > { %v3416_v25 = vmul.f32 %v3400_v40, %v3393_v39  ;;  %v3461_v21 = vpop.xlane.xlu1 %3460  ;;  %v3406_v39 = vmul.f32 %v3400_v40, %v3363_v61 }
 0x8f1   : > { %3465 = vmatpush.msra.mxu2 %v3416_v25 }
 0x8f3   : > { %3466 = vmatpush.msra.mxu2 %v3415_v43 }
 0x8f5   : > { %3467 = vmatpush.msra.mxu2 %v3414_v13 }
 0x8f6   : > { %v3357_v63 = vpop.xlane.xlu0 %3356  ;;  %v3354_v25 = vpop.xlane.xlu2 %3353 }
 0x8f7   : > { %3468 = vmatpush.msra.mxu2 %v3413_v23  ;;  %v3443_v10 = vpop.xlane.xlu1 %3442  ;;  %v3404_v56 = vmul.f32 %v3400_v40, %v3357_v63  ;;  %v3403_v0 = vmul.f32 %v3400_v40, %v3354_v25  ;;  %v3314_v23 = vld [vmem:[%s9315_s10] sm:$0xff]  ;;  %v3315_v63 = vld [vmem:[%s9315_s10 + $0x8] sm:$0xff]  ;;  %v3324_v25 = vld [vmem:[%s9315_s10 + $0x50] sm:$0xff] }
 0x8f9   : > { %3469 = vmatpush.msra.mxu2 %v3412_v46  ;;  %v3316_v46 = vld [vmem:[%s9315_s10 + $0x10] sm:$0xff] }
 0x8fb   : > { %3470 = vmatpush.msra.mxu2 %v3411_v4  ;;  %v3317_v4 = vld [vmem:[%s9315_s10 + $0x18] sm:$0xff] }
 0x8fd   : > { %3471 = vmatpush.msra.mxu2 %v3410_v49 }
 0x8fe   : > { %v3440_v30 = vpop.xlane.xlu0 %3439  ;;  %v3437_v61 = vpop.xlane.xlu2 %3436 }
 0x8ff   : > { %3472 = vmatpush.msra.mxu2 %v3409_v3  ;;  %v3351_v5 = vpop.xlane.xlu1 %3350 }
 0x900   : > { %v3402_v43 = vmul.f32 %v3400_v40, %v3351_v5  ;;  %v3326_v5 = vld [vmem:[%s9315_s10 + $0x60] sm:$0xff] }
 0x901   : > { %3473 = vmatpush.msra.mxu2 %v3408_v44  ;;  %v3319_v44 = vld [vmem:[%s9315_s10 + $0x28] sm:$0xff] }
 0x903   : > { %3474 = vmatpush.msra.mxu2 %v3407_v1  ;;  %v3321_v1 = vld [vmem:[%s9315_s10 + $0x38] sm:$0xff] }
 0x905   : > { %3475 = vmatpush.msra.mxu2 %v3406_v39  ;;  %v3322_v39 = vld [vmem:[%s9315_s10 + $0x40] sm:$0xff] }
 0x906   : > { %v3348_v52 = vpop.xlane.xlu0 %3347  ;;  %v3431_v11 = vpop.xlane.xlu2 %3430 }
 0x907   : > { %3476 = vmatpush.msra.mxu2 %v3405_v45  ;;  %v3401_v34 = vmul.f32 %v3400_v40, %v3348_v52  ;;  %v3434_v59 = vpop.xlane.xlu1 %3433  ;;  %v3323_v45 = vld [vmem:[%s9315_s10 + $0x48] sm:$0xff]  ;;  %v3328_v52 = vld [vmem:[%s9315_s10 + $0x70] sm:$0xff] }
 0x909   : > { %3477 = vmatpush.msra.mxu2 %v3404_v56  ;;  %v3325_v56 = vld [vmem:[%s9315_s10 + $0x58] sm:$0xff] }
 0x90b   : > { %3478 = vmatpush.msra.mxu2 %v3403_v0  ;;  %v3327_v0 = vld [vmem:[%s9315_s10 + $0x68] sm:$0xff] }
 0x90d   : > { %3479 = vmatpush.msra.mxu2 %v3402_v43  ;;  %v3329_v43 = vld [vmem:[%s9315_s10 + $0x78] sm:$0xff] }
 0x90e   : > { %v3428_v40 = vpop.xlane.xlu0 %3427 }
 0x90f   : > { %3480 = vmatpush.msra.mxu2 %v3401_v34  ;;  %v3425_v13 = vpop.xlane.xlu1 %3424 }
 0x910   : > { %3481 = vmatmul.f32.vlgmr.msra.gmra.mxu2 %v3312_v12 }
 0x911   : > { %3600 = vmatpush.msrb.mxu2 %v3464_v16 }
 0x913   : > { %3601 = vmatpush.msrb.mxu2 %v3461_v21  ;;  %v3422_v21 = vpop.xlane.xlu2 %3421 }
 0x915   : > { %3602 = vmatpush.msrb.mxu2 %v3458_v57 }
 0x916   : > { %v3419_v57 = vpop.xlane.xlu0 %3418 }
 0x917   : > { %3603 = vmatpush.msrb.mxu2 %v3455_v41 }
 0x919   : > { %3604 = vmatpush.msrb.mxu2 %v3452_v28 }
 0x91b   : > { %3605 = vmatpush.msrb.mxu2 %v8500_v53 }
 0x91d   : > { %3606 = vmatpush.msrb.mxu2 %v8498_v35  ;;  %v3313_v35 = vld [vmem:[%s9314_s9] sm:$0xff] }
 0x91f   : > { %3607 = vmatpush.msrb.mxu2 %v3443_v10  ;;  %v3318_v10 = vld [vmem:[%s9315_s10 + $0x20] sm:$0xff] }
 0x921   : > { %3608 = vmatpush.msrb.mxu2 %v3440_v30  ;;  %v3320_v30 = vld [vmem:[%s9315_s10 + $0x30] sm:$0xff] }
 0x923   : > { %3609 = vmatpush.msrb.mxu2 %v3437_v61 }
 0x925   : > { %3610 = vmatpush.msrb.mxu2 %v3434_v59  ;;  %v3330_v59 = vld [vmem:[%s9316_s11] sm:$0xff] }
 0x927   : > { %3611 = vmatpush.msrb.mxu2 %v3431_v11 }
 0x929   : > { %3612 = vmatpush.msrb.mxu2 %v3428_v40 }
 0x92b   : > { %3613 = vmatpush.msrb.mxu2 %v3425_v13 }
 0x92d   : > { %3614 = vmatpush.msrb.mxu2 %v3422_v21 }
 0x92f   : > { %3615 = vmatpush.msrb.mxu2 %v3419_v57 }
 0x930   : > { %3616 = vmatmul.f32.vlgmr.msrb.gmra.mxu2 %v3312_v12 }
 0x993   : > { %v3482_v53 = vpop.f32.mrf.mxu2 }
 0x994   : > { %v3483_v28 = vadd.f32 %v3482_v53, %v3313_v35 }
 0x996   : > { %v3485_v41 = vmax.f32 %v3483_v28, 0.0 }
 0x998   : > { %3550 = vmatpush.msra.mxu3 %v3485_v41 }
 0x999   : > { %5388 = vmatmul.msk.f32.vlgmr.msra.gmra.mxu3 %vm3486_vm2, %v3314_v23 }
 0x9a1   : > { %5389 = vmatmul.msk.f32.gmra.mxu3 %vm3486_vm2, %v3315_v63 }
 0x9a9   : > { %5390 = vmatmul.msk.f32.gmra.mxu3 %vm3486_vm2, %v3316_v46 }
 0x9b1   : > { %5391 = vmatmul.msk.f32.gmra.mxu3 %vm3486_vm2, %v3317_v4 }
 0x9b3   : > { %v3617_v49 = vpop.f32.mrf.mxu2 }
 0x9b4   : > { %v3618_v16 = vadd.f32 %v3617_v49, %v3313_v35  ;;  %v3331_v35 = vld [vmem:[%s9316_s11 + $0x8] sm:$0xff]  ;;  %v3332_v49 = vld [vmem:[%s9316_s11 + $0x10] sm:$0xff] }
 0x9b6   : > { %v3620_v3 = vmax.f32 %v3618_v16, 0.0 }
 0x9b8   : > { %3636 = vmatpush.msra.mxu2 %v3620_v3 }
 0x9b9   : > { %5404 = vmatmul.msk.f32.vlgmr.msra.gmra.mxu2 %vm3486_vm2, %v3314_v23  ;;  %5392 = vmatmul.msk.f32.gmra.mxu3 %vm3486_vm2, %v3318_v10 }
 0x9c1   : > { %5405 = vmatmul.msk.f32.gmra.mxu2 %vm3486_vm2, %v3315_v63  ;;  %5393 = vmatmul.msk.f32.gmra.mxu3 %vm3486_vm2, %v3319_v44 }
 0x9c9   : > { %5406 = vmatmul.msk.f32.gmra.mxu2 %vm3486_vm2, %v3316_v46  ;;  %5394 = vmatmul.msk.f32.gmra.mxu3 %vm3486_vm2, %v3320_v30 }
 0x9d1   : > { %5407 = vmatmul.msk.f32.gmra.mxu2 %vm3486_vm2, %v3317_v4  ;;  %5395 = vmatmul.msk.f32.gmra.mxu3 %vm3486_vm2, %v3321_v1 }
 0x9d9   : > { %5408 = vmatmul.msk.f32.gmra.mxu2 %vm3486_vm2, %v3318_v10  ;;  %5396 = vmatmul.msk.f32.gmra.mxu3 %vm3486_vm2, %v3322_v39 }
 0x9e1   : > { %5409 = vmatmul.msk.f32.gmra.mxu2 %vm3486_vm2, %v3319_v44  ;;  %5397 = vmatmul.msk.f32.gmra.mxu3 %vm3486_vm2, %v3323_v45 }
 0x9e9   : > { %5410 = vmatmul.msk.f32.gmra.mxu2 %vm3486_vm2, %v3320_v30  ;;  %5398 = vmatmul.msk.f32.gmra.mxu3 %vm3486_vm2, %v3324_v25 }
 0x9f1   : > { %5411 = vmatmul.msk.f32.gmra.mxu2 %vm3486_vm2, %v3321_v1  ;;  %5399 = vmatmul.msk.f32.gmra.mxu3 %vm3486_vm2, %v3325_v56 }
 0x9f9   : > { %5412 = vmatmul.msk.f32.gmra.mxu2 %vm3486_vm2, %v3322_v39  ;;  %5400 = vmatmul.msk.f32.gmra.mxu3 %vm3486_vm2, %v3326_v5 }
 0xa01   : > { %5413 = vmatmul.msk.f32.gmra.mxu2 %vm3486_vm2, %v3323_v45  ;;  %5401 = vmatmul.msk.f32.gmra.mxu3 %vm3486_vm2, %v3327_v0 }
 0xa09   : > { %5414 = vmatmul.msk.f32.gmra.mxu2 %vm3486_vm2, %v3324_v25  ;;  %5402 = vmatmul.msk.f32.gmra.mxu3 %vm3486_vm2, %v3328_v52 }
 0xa11   : > { %5415 = vmatmul.msk.f32.gmra.mxu2 %vm3486_vm2, %v3325_v56  ;;  %5403 = vmatmul.msk.f32.gmra.mxu3 %vm3486_vm2, %v3329_v43  ;;  %v3333_v56 = vld [vmem:[%s9316_s11 + $0x18] sm:$0xff] }
 0xa19   : > { %5416 = vmatmul.msk.f32.gmra.mxu2 %vm3486_vm2, %v3326_v5 }
 0xa1c   : > { %v3552_v34 = vpop.f32.mrf.mxu3 }
 0xa1d   : > { %v3553_v40 = vadd.f32 %v3552_v34, %v3330_v59 }
 0xa21   : > { %5417 = vmatmul.msk.f32.gmra.mxu2 %vm3486_vm2, %v3327_v0 }
 0xa24   : > { %v3555_v12 = vpop.f32.mrf.mxu3 }
 0xa25   : > { %v3556_v23 = vadd.f32 %v3555_v12, %v3331_v35 }
 0xa29   : > { %5418 = vmatmul.msk.f32.gmra.mxu2 %vm3486_vm2, %v3328_v52 }
 0xa2c   : > { %v3558_v61 = vpop.f32.mrf.mxu3 }
 0xa2d   : > { %v3559_v44 = vadd.f32 %v3558_v61, %v3332_v49 }
 0xa31   : > { %5419 = vmatmul.msk.f32.gmra.mxu2 %vm3486_vm2, %v3329_v43 }
 0xa34   : > { %v3561_v11 = vpop.f32.mrf.mxu3 }
 0xa35   : > { %v3562_v43 = vadd.f32 %v3561_v11, %v3333_v56 }
 0xa3c   : > { %v3638_v13 = vpop.f32.mrf.mxu2  ;;  %v3564_v28 = vpop.f32.mrf.mxu3 }
 0xa3d   : > { %v3639_v21 = vadd.f32 %v3638_v13, %v3330_v59 }
 0xa3f   : > { %v3686_v57 = vadd.f32 %v3639_v21, %v3553_v40 }
 0xa41   : > { %v3702_v53 = vsub.f32 0.0, %v3686_v57 }
 0xa43   : > { %v3718_v41 = vmul.f32 1.442695, %v3702_v53 }
 0xa44   : > { %v3641_v63 = vpop.f32.mrf.mxu2  ;;  %v3567_v39 = vpop.f32.mrf.mxu3 }
 0xa45   : > { %5444 = vpow2.f32 %v3718_v41  ;;  %v3642_v46 = vadd.f32 %v3641_v63, %v3331_v35  ;;  %v3334_v35 = vld [vmem:[%s9316_s11 + $0x20] sm:$0xff] }
 0xa47   : > { %v3687_v4 = vadd.f32 %v3642_v46, %v3556_v23 }
 0xa49   : > { %v3703_v16 = vsub.f32 0.0, %v3687_v4  ;;  %v3565_v4 = vadd.f32 %v3564_v28, %v3334_v35  ;;  %v3335_v28 = vld [vmem:[%s9316_s11 + $0x28] sm:$0xff] }
 0xa4b   : > { %v5445_v3 = vpop.eup %5444  ;;  %v3720_v10 = vmul.f32 1.442695, %v3703_v16 }
 0xa4c   : > { %v3750_v30 = vadd.f32 1.0, %v5445_v3  ;;  %v3644_v1 = vpop.f32.mrf.mxu2  ;;  %v8602_v13 = vpop.f32.mrf.mxu3 }
 0xa4d   : > { %5446 = vpow2.f32 %v3720_v10  ;;  %v3645_v45 = vadd.f32 %v3644_v1, %v3332_v49 }
 0xa4e   : > { %5448 = vrcp.f32 %v3750_v30  ;;  %v3775_v53 = vand.u32 2147483647, %v3750_v30  ;;  %v3777_v41 = vand.u32 2147483648, %v3750_v30  ;;  %vm3771_vm4 = vweird.f32 %v3750_v30 }
 0xa4f   : > { %v3688_v25 = vadd.f32 %v3645_v45, %v3559_v44 }
 0xa50   : > { %vm3776_vm6 = vcmp.eq.f32.partialorder %v3775_v53, 8.507059e+37  ;;  %v3778_v44 = vor.u32 1.1754944e-38, %v3777_v41 }
 0xa51   : > { %v3704_v5 = vsub.f32 0.0, %v3688_v25 }
 0xa53   : > { %v5447_v0 = vpop.eup %5446  ;;  %v3722_v52 = vmul.f32 1.442695, %v3704_v5 }
 0xa54   : > { %v5449_v34 = vpop.eup %5448  ;;  %v3751_v12 = vadd.f32 1.0, %v5447_v0  ;;  %v3647_v59 = vpop.f32.mrf.mxu2 }
 0xa55   : > { %5450 = vpow2.f32 %v3722_v52  ;;  %v3648_v61 = vadd.f32 %v3647_v59, %v3333_v56  ;;  %v3767_v40 = vmul.f32 %v5449_v34, %v3750_v30  ;;  %vm3772_vm3 = vweird.f32 %v5449_v34 }
 0xa56   : > { %5452 = vrcp.f32 %v3751_v12  ;;  %vm3773_vm5 = vmor %vm3771_vm4, %vm3772_vm3  ;;  %v3790_v30 = vand.u32 2147483647, %v3751_v12  ;;  %v3792_v52 = vand.u32 2147483648, %v3751_v12  ;;  %vm3786_vm8 = vweird.f32 %v3751_v12 }
 0xa57   : > { %v3689_v21 = vadd.f32 %v3648_v61, %v3562_v43  ;;  %v3768_v57 = vsub.f32 1.0, %v3767_v40  ;;  %v3573_v43 = vpop.f32.mrf.mxu3 }
 0xa58   : > { %vm3791_vm10 = vcmp.eq.f32.partialorder %v3790_v30, 8.507059e+37 }
 0xa59   : > { %v3705_v23 = vsub.f32 0.0, %v3689_v21  ;;  %v3769_v63 = vmul.f32 %v5449_v34, %v3768_v57  ;;  %v3568_v57 = vadd.f32 %v3567_v39, %v3335_v28  ;;  %v3336_v39 = vld [vmem:[%s9316_s11 + $0x30] sm:$0xff] }
 0xa5b   : > { %v5451_v11 = vpop.eup %5450  ;;  %v3724_v46 = vmul.f32 1.442695, %v3705_v23  ;;  %v3770_v49 = vadd.f32 %v5449_v34, %v3769_v63  ;;  %v3793_v23 = vor.u32 1.1754944e-38, %v3792_v52 }
 0xa5c   : > { %v5453_v16 = vpop.eup %5452  ;;  %v3752_v3 = vadd.f32 1.0, %v5451_v11  ;;  %v3650_v10 = vpop.f32.mrf.mxu2 }
 0xa5d   : > { %5454 = vpow2.f32 %v3724_v46  ;;  %v3651_v1 = vadd.f32 %v3650_v10, %v3334_v35  ;;  %v3774_v45 = vsel %vm3773_vm5, %v5449_v34, %v3770_v49  ;;  %v3782_v25 = vmul.f32 %v5453_v16, %v3751_v12 }
 0xa5e   : > { %5456 = vrcp.f32 %v3752_v3  ;;  %v3779_v56 = vsel %vm3776_vm6, %v3778_v44, %v3774_v45  ;;  %vm3787_vm7 = vweird.f32 %v5453_v16  ;;  %v3805_v12 = vand.u32 2147483647, %v3752_v3 }
 0xa5f   : > { %v3690_v5 = vadd.f32 %v3651_v1, %v3565_v4  ;;  %4008 = vperm.xlu1 %5440, %v3779_v56   ;;  %v3783_v0 = vsub.f32 1.0, %v3782_v25  ;;  %vm3788_vm9 = vmor %vm3786_vm8, %vm3787_vm7  ;;  %v3807_v44 = vand.u32 2147483648, %v3752_v3  ;;  %v3576_v25 = vpop.f32.mrf.mxu3  ;;  %vm3801_vm12 = vweird.f32 %v3752_v3 }
 0xa60   : > { %vm3806_vm14 = vcmp.eq.f32.partialorder %v3805_v12, 8.507059e+37 }
 0xa61   : > { %v3706_v59 = vsub.f32 0.0, %v3690_v5  ;;  %v3784_v61 = vmul.f32 %v5453_v16, %v3783_v0 }
 0xa63   : > { %v5455_v40 = vpop.eup %5454  ;;  %v3726_v21 = vmul.f32 1.442695, %v3706_v59  ;;  %v3785_v34 = vadd.f32 %v5453_v16, %v3784_v61  ;;  %v3808_v59 = vor.u32 1.1754944e-38, %v3807_v44 }
 0xa64   : > { %v5457_v35 = vpop.eup %5456  ;;  %v3753_v53 = vadd.f32 1.0, %v5455_v40  ;;  %v3653_v41 = vpop.f32.mrf.mxu2 }
 0xa65   : > { %5458 = vpow2.f32 %v3726_v21  ;;  %v3654_v63 = vadd.f32 %v3653_v41, %v3335_v28  ;;  %v3789_v11 = vsel %vm3788_vm9, %v5453_v16, %v3785_v34  ;;  %v3797_v46 = vmul.f32 %v5457_v35, %v3752_v3 }
 0xa66   : > { %5460 = vrcp.f32 %v3753_v53  ;;  %v3794_v4 = vsel %vm3791_vm10, %v3793_v23, %v3789_v11  ;;  %vm3802_vm11 = vweird.f32 %v5457_v35  ;;  %v3571_v16 = vadd.f32 %v8602_v13, %v3336_v39  ;;  %v3337_v13 = vld [vmem:[%s9316_s11 + $0x38] sm:$0xff] }
 0xa67   : > { %v3691_v49 = vadd.f32 %v3654_v63, %v3568_v57  ;;  %4013 = vperm.xlu2 %5441, %v3794_v4   ;;  %v3798_v10 = vsub.f32 1.0, %v3797_v46  ;;  %vm3803_vm13 = vmor %vm3801_vm12, %vm3802_vm11  ;;  %v3820_v3 = vand.u32 2147483647, %v3753_v53  ;;  %v3822_v23 = vand.u32 2147483648, %v3753_v53 }
 0xa68   : > { %vm3816_vm0 = vweird.f32 %v3753_v53 }
 0xa69   : > { %v3707_v1 = vsub.f32 0.0, %v3691_v49  ;;  %v3799_v45 = vmul.f32 %v5457_v35, %v3798_v10  ;;  %v3574_v49 = vadd.f32 %v3573_v43, %v3337_v13  ;;  %vm3821_vm2 = vcmp.eq.f32.partialorder %v3820_v3, 8.507059e+37  ;;  %v3338_v43 = vld [vmem:[%s9316_s11 + $0x40] sm:$0xff] }
 0xa6a   : > { %v3823_v44 = vor.u32 1.1754944e-38, %v3822_v23 }
 0xa6b   : > { %v5459_v56 = vpop.eup %5458  ;;  %v3728_v5 = vmul.f32 1.442695, %v3707_v1  ;;  %v3800_v0 = vadd.f32 %v5457_v35, %v3799_v45  ;;  %v3579_v1 = vpop.f32.mrf.mxu3 }
 0xa6c   : > { %v5461_v28 = vpop.eup %5460  ;;  %v3754_v30 = vadd.f32 1.0, %v5459_v56  ;;  %v3656_v52 = vpop.f32.mrf.mxu2 }
 0xa6d   : > { %5462 = vpow2.f32 %v3728_v5  ;;  %v3657_v61 = vadd.f32 %v3656_v52, %v3336_v39  ;;  %v3804_v40 = vsel %vm3803_vm13, %v5457_v35, %v3800_v0  ;;  %v3812_v21 = vmul.f32 %v5461_v28, %v3753_v53 }
 0xa6e   : > { %5464 = vrcp.f32 %v3754_v30  ;;  %v3809_v57 = vsel %vm3806_vm14, %v3808_v59, %v3804_v40  ;;  %vm3817_vm15 = vweird.f32 %v5461_v28  ;;  %v3835_v53 = vand.u32 2147483647, %v3754_v30 }
 0xa6f   : > { %v3692_v34 = vadd.f32 %v3657_v61, %v3571_v16  ;;  %4018 = vperm.xlu0 %5439, %v3809_v57   ;;  %v3813_v41 = vsub.f32 1.0, %v3812_v21  ;;  %vm3818_vm1 = vmor %vm3816_vm0, %vm3817_vm15  ;;  %v3837_v59 = vand.u32 2147483648, %v3754_v30  ;;  %vm3831_vm4 = vweird.f32 %v3754_v30 }
 0xa70   : > { %vm3836_vm6 = vcmp.eq.f32.partialorder %v3835_v53, 8.507059e+37 }
 0xa71   : > { %v3708_v63 = vsub.f32 0.0, %v3692_v34  ;;  %v3814_v11 = vmul.f32 %v5461_v28, %v3813_v41  ;;  %v3577_v34 = vadd.f32 %v3576_v25, %v3338_v43  ;;  %v3838_v23 = vor.u32 1.1754944e-38, %v3837_v59  ;;  %v3339_v25 = vld [vmem:[%s9316_s11 + $0x48] sm:$0xff] }
 0xa73   : > { %v5463_v46 = vpop.eup %5462  ;;  %v3730_v4 = vmul.f32 1.442695, %v3708_v63  ;;  %v3815_v10 = vadd.f32 %v5461_v28, %v3814_v11 }
 0xa74   : > { %v5465_v35 = vpop.eup %5464  ;;  %v3755_v39 = vadd.f32 1.0, %v5463_v46  ;;  %v3659_v12 = vpop.f32.mrf.mxu2 }
 0xa75   : > { %5466 = vpow2.f32 %v3730_v4  ;;  %v3660_v45 = vadd.f32 %v3659_v12, %v3337_v13  ;;  %v3819_v56 = vsel %vm3818_vm1, %v5461_v28, %v3815_v10  ;;  %v3827_v5 = vmul.f32 %v5465_v35, %v3754_v30 }
 0xa76   : > { %5468 = vrcp.f32 %v3755_v39  ;;  %v3824_v16 = vsel %vm3821_vm2, %v3823_v44, %v3819_v56  ;;  %vm3832_vm3 = vweird.f32 %v5465_v35  ;;  %v3850_v30 = vand.u32 2147483647, %v3755_v39 }
 0xa77   : > { %v3693_v0 = vadd.f32 %v3660_v45, %v3574_v49  ;;  %4023 = vperm.xlu1 %5440, %v3824_v16   ;;  %v3828_v52 = vsub.f32 1.0, %v3827_v5  ;;  %vm3833_vm5 = vmor %vm3831_vm4, %vm3832_vm3  ;;  %v3582_v49 = vpop.f32.mrf.mxu3  ;;  %v3852_v44 = vand.u32 2147483648, %v3755_v39  ;;  %vm3846_vm8 = vweird.f32 %v3755_v39 }
 0xa78   : > { %vm3851_vm10 = vcmp.eq.f32.partialorder %v3850_v30, 8.507059e+37 }
 0xa79   : > { %v3709_v61 = vsub.f32 0.0, %v3693_v0  ;;  %v3829_v40 = vmul.f32 %v5465_v35, %v3828_v52  ;;  %v3580_v0 = vadd.f32 %v3579_v1, %v3339_v25  ;;  %v3853_v59 = vor.u32 1.1754944e-38, %v3852_v44  ;;  %v3340_v1 = vld [vmem:[%s9316_s11 + $0x50] sm:$0xff] }
 0xa7b   : > { %v5467_v21 = vpop.eup %5466  ;;  %v3732_v57 = vmul.f32 1.442695, %v3709_v61  ;;  %v3830_v41 = vadd.f32 %v5465_v35, %v3829_v40 }
 0xa7c   : > { %v5469_v28 = vpop.eup %5468  ;;  %v3756_v13 = vadd.f32 1.0, %v5467_v21  ;;  %v3662_v3 = vpop.f32.mrf.mxu2 }
 0xa7d   : > { %5470 = vpow2.f32 %v3732_v57  ;;  %v3663_v63 = vadd.f32 %v3662_v3, %v3338_v43  ;;  %v3834_v11 = vsel %vm3833_vm5, %v5465_v35, %v3830_v41  ;;  %v3842_v46 = vmul.f32 %v5469_v28, %v3755_v39 }
 0xa7e   : > { %5472 = vrcp.f32 %v3756_v13  ;;  %v3839_v4 = vsel %vm3836_vm6, %v3838_v23, %v3834_v11  ;;  %vm3847_vm7 = vweird.f32 %v5469_v28  ;;  %v3865_v39 = vand.u32 2147483647, %v3756_v13 }
 0xa7f   : > { %v3694_v10 = vadd.f32 %v3663_v63, %v3577_v34  ;;  %4028 = vperm.xlu0 %5439, %v3839_v4   ;;  %v3843_v12 = vsub.f32 1.0, %v3842_v46  ;;  %vm3848_vm9 = vmor %vm3846_vm8, %vm3847_vm7  ;;  %v3867_v3 = vand.u32 2147483648, %v3756_v13  ;;  %v3585_v23 = vpop.f32.mrf.mxu3  ;;  %vm3861_vm12 = vweird.f32 %v3756_v13 }
 0xa80   : > { %vm3866_vm14 = vcmp.eq.f32.partialorder %v3865_v39, 8.507059e+37 }
 0xa81   : > { %v3710_v45 = vsub.f32 0.0, %v3694_v10  ;;  %v3844_v56 = vmul.f32 %v5469_v28, %v3843_v12  ;;  %v3583_v10 = vadd.f32 %v3582_v49, %v3340_v1  ;;  %v3868_v44 = vor.u32 1.1754944e-38, %v3867_v3  ;;  %v3341_v49 = vld [vmem:[%s9316_s11 + $0x58] sm:$0xff] }
 0xa83   : > { %v5471_v5 = vpop.eup %5470  ;;  %v3734_v16 = vmul.f32 1.442695, %v3710_v45  ;;  %v3845_v35 = vadd.f32 %v5469_v28, %v3844_v56 }
 0xa84   : > { %v5473_v52 = vpop.eup %5472  ;;  %v3757_v43 = vadd.f32 1.0, %v5471_v5  ;;  %v3665_v53 = vpop.f32.mrf.mxu2 }
 0xa85   : > { %5474 = vpow2.f32 %v3734_v16  ;;  %v3666_v61 = vadd.f32 %v3665_v53, %v3339_v25  ;;  %v3849_v40 = vsel %vm3848_vm9, %v5469_v28, %v3845_v35  ;;  %v3857_v21 = vmul.f32 %v5473_v52, %v3756_v13 }
 0xa86   : > { %5476 = vrcp.f32 %v3757_v43  ;;  %v3854_v57 = vsel %vm3851_vm10, %v3853_v59, %v3849_v40  ;;  %vm3862_vm11 = vweird.f32 %v5473_v52  ;;  %v3880_v13 = vand.u32 2147483647, %v3757_v43 }
 0xa87   : > { %v3695_v34 = vadd.f32 %v3666_v61, %v3580_v0  ;;  %4033 = vperm.xlu2 %5441, %v3854_v57   ;;  %v3858_v41 = vsub.f32 1.0, %v3857_v21  ;;  %vm3863_vm13 = vmor %vm3861_vm12, %vm3862_vm11  ;;  %v3882_v53 = vand.u32 2147483648, %v3757_v43  ;;  %v3588_v40 = vpop.f32.mrf.mxu3  ;;  %vm3876_vm0 = vweird.f32 %v3757_v43 }
 0xa88   : > { %vm3881_vm2 = vcmp.eq.f32.partialorder %v3880_v13, 8.507059e+37 }
 0xa89   : > { %v3711_v63 = vsub.f32 0.0, %v3695_v34  ;;  %v3859_v11 = vmul.f32 %v5473_v52, %v3858_v41  ;;  %v3586_v34 = vadd.f32 %v3585_v23, %v3341_v49  ;;  %v3883_v3 = vor.u32 1.1754944e-38, %v3882_v53  ;;  %v3342_v23 = vld [vmem:[%s9316_s11 + $0x60] sm:$0xff] }
 0xa8b   : > { %v5475_v46 = vpop.eup %5474  ;;  %v3736_v4 = vmul.f32 1.442695, %v3711_v63  ;;  %v3860_v28 = vadd.f32 %v5473_v52, %v3859_v11 }
 0xa8c   : > { %v5477_v12 = vpop.eup %5476  ;;  %v3758_v25 = vadd.f32 1.0, %v5475_v46  ;;  %v3668_v30 = vpop.f32.mrf.mxu2 }
 0xa8d   : > { %5478 = vpow2.f32 %v3736_v4  ;;  %v3669_v45 = vadd.f32 %v3668_v30, %v3340_v1  ;;  %v3864_v56 = vsel %vm3863_vm13, %v5473_v52, %v3860_v28  ;;  %v3872_v5 = vmul.f32 %v5477_v12, %v3757_v43 }
 0xa8e   : > { %5480 = vrcp.f32 %v3758_v25  ;;  %v3869_v16 = vsel %vm3866_vm14, %v3868_v44, %v3864_v56  ;;  %vm3877_vm15 = vweird.f32 %v5477_v12  ;;  %v3895_v43 = vand.u32 2147483647, %v3758_v25 }
 0xa8f   : > { %v3696_v0 = vadd.f32 %v3669_v45, %v3583_v10  ;;  %4038 = vperm.xlu1 %5440, %v3869_v16   ;;  %v3873_v35 = vsub.f32 1.0, %v3872_v5  ;;  %vm3878_vm1 = vmor %vm3876_vm0, %vm3877_vm15  ;;  %v3897_v30 = vand.u32 2147483648, %v3758_v25  ;;  %v3589_v16 = vadd.f32 %v3588_v40, %v3342_v23  ;;  %v3591_v53 = vpop.f32.mrf.mxu3 }
 0xa90   : > { %vm3891_vm4 = vweird.f32 %v3758_v25  ;;  %vm3896_vm6 = vcmp.eq.f32.partialorder %v3895_v43, 8.507059e+37 }
 0xa91   : > { %v3712_v59 = vsub.f32 0.0, %v3696_v0  ;;  %v3874_v61 = vmul.f32 %v5477_v12, %v3873_v35  ;;  %v3898_v13 = vor.u32 1.1754944e-38, %v3897_v30 }
 0xa93   : > { %v5479_v21 = vpop.eup %5478  ;;  %v3738_v57 = vmul.f32 1.442695, %v3712_v59  ;;  %v3875_v52 = vadd.f32 %v5477_v12, %v3874_v61 }
 0xa94   : > { %v5481_v41 = vpop.eup %5480  ;;  %v3759_v1 = vadd.f32 1.0, %v5479_v21  ;;  %v3671_v39 = vpop.f32.mrf.mxu2 }
 0xa95   : > { %5482 = vpow2.f32 %v3738_v57  ;;  %v3672_v63 = vadd.f32 %v3671_v39, %v3341_v49  ;;  %v3879_v11 = vsel %vm3878_vm1, %v5477_v12, %v3875_v52  ;;  %v3887_v46 = vmul.f32 %v5481_v41, %v3758_v25  ;;  %v3343_v25 = vld [vmem:[%s9316_s11 + $0x68] sm:$0xff] }
 0xa96   : > { %5484 = vrcp.f32 %v3759_v1  ;;  %v3884_v4 = vsel %vm3881_vm2, %v3883_v3, %v3879_v11  ;;  %vm3892_vm3 = vweird.f32 %v5481_v41  ;;  %v3910_v40 = vand.u32 2147483647, %v3759_v1 }
 0xa97   : > { %v3697_v10 = vadd.f32 %v3672_v63, %v3586_v34  ;;  %4043 = vperm.xlu0 %5439, %v3884_v4   ;;  %v3888_v28 = vsub.f32 1.0, %v3887_v46  ;;  %vm3893_vm5 = vmor %vm3891_vm4, %vm3892_vm3  ;;  %v3912_v39 = vand.u32 2147483648, %v3759_v1  ;;  %v3592_v4 = vadd.f32 %v3591_v53, %v3343_v25 }
 0xa98   : > { %vm3906_vm8 = vweird.f32 %v3759_v1  ;;  %vm3911_vm10 = vcmp.eq.f32.partialorder %v3910_v40, 8.507059e+37 }
 0xa99   : > { %v3713_v44 = vsub.f32 0.0, %v3697_v10  ;;  %v3889_v45 = vmul.f32 %v5481_v41, %v3888_v28  ;;  %v3913_v43 = vor.u32 1.1754944e-38, %v3912_v39 }
 0xa9b   : > { %v5483_v56 = vpop.eup %5482  ;;  %v3740_v5 = vmul.f32 1.442695, %v3713_v44  ;;  %v3890_v0 = vadd.f32 %v5481_v41, %v3889_v45 }
 0xa9c   : > { %v5485_v12 = vpop.eup %5484  ;;  %v3760_v35 = vadd.f32 1.0, %v5483_v56  ;;  %v3674_v49 = vpop.f32.mrf.mxu2 }
 0xa9d   : > { %5486 = vpow2.f32 %v3740_v5  ;;  %v3675_v59 = vadd.f32 %v3674_v49, %v3342_v23  ;;  %v3894_v61 = vsel %vm3893_vm5, %v5481_v41, %v3890_v0  ;;  %v3902_v21 = vmul.f32 %v5485_v12, %v3759_v1  ;;  %v3594_v5 = vpop.f32.mrf.mxu3  ;;  %v3344_v1 = vld [vmem:[%s9316_s11 + $0x70] sm:$0xff] }
 0xa9e   : > { %5488 = vrcp.f32 %v3760_v35  ;;  %v3899_v57 = vsel %vm3896_vm6, %v3898_v13, %v3894_v61  ;;  %vm3907_vm7 = vweird.f32 %v5485_v12  ;;  %v3925_v49 = vand.u32 2147483647, %v3760_v35 }
 0xa9f   : > { %v3698_v34 = vadd.f32 %v3675_v59, %v3589_v16  ;;  %4048 = vperm.xlu2 %5441, %v3899_v57   ;;  %v3903_v52 = vsub.f32 1.0, %v3902_v21  ;;  %vm3908_vm9 = vmor %vm3906_vm8, %vm3907_vm7  ;;  %v3927_v13 = vand.u32 2147483648, %v3760_v35  ;;  %v3595_v57 = vadd.f32 %v3594_v5, %v3344_v1 }
 0xaa0   : > { %vm3921_vm12 = vweird.f32 %v3760_v35  ;;  %vm3926_vm14 = vcmp.eq.f32.partialorder %v3925_v49, 8.507059e+37 }
 0xaa1   : > { %v3714_v3 = vsub.f32 0.0, %v3698_v34  ;;  %v3904_v63 = vmul.f32 %v5485_v12, %v3903_v52  ;;  %v3928_v40 = vor.u32 1.1754944e-38, %v3927_v13 }
 0xaa3   : > { %v5487_v11 = vpop.eup %5486  ;;  %v3742_v46 = vmul.f32 1.442695, %v3714_v3  ;;  %v3905_v10 = vadd.f32 %v5485_v12, %v3904_v63 }
 0xaa4   : > { %v5489_v41 = vpop.eup %5488  ;;  %v3761_v28 = vadd.f32 1.0, %v5487_v11  ;;  %v3677_v23 = vpop.f32.mrf.mxu2 }
 0xaa5   : > { %5490 = vpow2.f32 %v3742_v46  ;;  %v3678_v30 = vadd.f32 %v3677_v23, %v3343_v25  ;;  %v3909_v44 = vsel %vm3908_vm9, %v5485_v12, %v3905_v10  ;;  %v3917_v45 = vmul.f32 %v5489_v41, %v3760_v35  ;;  %v3345_v10 = vld [vmem:[%s9316_s11 + $0x78] sm:$0xff]  ;;  %v3597_v35 = vpop.f32.mrf.mxu3 }
 0xaa6   : > { %5492 = vrcp.f32 %v3761_v28  ;;  %v3914_v56 = vsel %vm3911_vm10, %v3913_v43, %v3909_v44  ;;  %vm3922_vm11 = vweird.f32 %v5489_v41  ;;  %v3940_v23 = vand.u32 2147483647, %v3761_v28 }
 0xaa7   : > { %v3699_v16 = vadd.f32 %v3678_v30, %v3592_v4  ;;  %4053 = vperm.xlu1 %5440, %v3914_v56   ;;  %v3918_v0 = vsub.f32 1.0, %v3917_v45  ;;  %vm3923_vm13 = vmor %vm3921_vm12, %vm3922_vm11  ;;  %v3942_v43 = vand.u32 2147483648, %v3761_v28  ;;  %v3598_v5 = vadd.f32 %v3597_v35, %v3345_v10 }
 0xaa8   : > { %vm3936_vm0 = vweird.f32 %v3761_v28  ;;  %vm3941_vm2 = vcmp.eq.f32.partialorder %v3940_v23, 8.507059e+37 }
 0xaa9   : > { %v3715_v53 = vsub.f32 0.0, %v3699_v16  ;;  %v3919_v59 = vmul.f32 %v5489_v41, %v3918_v0  ;;  %v3943_v49 = vor.u32 1.1754944e-38, %v3942_v43 }
 0xaab   : > { %v5491_v61 = vpop.eup %5490  ;;  %v3744_v21 = vmul.f32 1.442695, %v3715_v53  ;;  %v3920_v12 = vadd.f32 %v5489_v41, %v3919_v59 }
 0xaac   : > { %v5493_v34 = vpop.eup %5492  ;;  %v3762_v52 = vadd.f32 1.0, %v5491_v61  ;;  %v3680_v25 = vpop.f32.mrf.mxu2 }
 0xaad   : > { %5494 = vpow2.f32 %v3744_v21  ;;  %v3681_v39 = vadd.f32 %v3680_v25, %v3344_v1  ;;  %v3924_v3 = vsel %vm3923_vm13, %v5489_v41, %v3920_v12  ;;  %v3932_v63 = vmul.f32 %v5493_v34, %v3761_v28 }
 0xaae   : > { %5496 = vrcp.f32 %v3762_v52  ;;  %v3929_v11 = vsel %vm3926_vm14, %v3928_v40, %v3924_v3  ;;  %vm3937_vm15 = vweird.f32 %v5493_v34  ;;  %v3957_v12 = vand.u32 2147483648, %v3762_v52 }
 0xaaf   : > { %v3700_v46 = vadd.f32 %v3681_v39, %v3595_v57  ;;  %4058 = vperm.xlu0 %5439, %v3929_v11   ;;  %v3933_v4 = vsub.f32 1.0, %v3932_v63  ;;  %vm3938_vm1 = vmor %vm3936_vm0, %vm3937_vm15  ;;  %v3955_v28 = vand.u32 2147483647, %v3762_v52  ;;  %vm3951_vm4 = vweird.f32 %v3762_v52 }
 0xab1   : > { %v3716_v30 = vsub.f32 0.0, %v3700_v46  ;;  %v3934_v44 = vmul.f32 %v5493_v34, %v3933_v4  ;;  %v3958_v4 = vor.u32 1.1754944e-38, %v3957_v12  ;;  %vm3956_vm6 = vcmp.eq.f32.partialorder %v3955_v28, 8.507059e+37  ;;  %v4499_v12 = vld [vmem:[#allocation2] sm:$0x1] }
 0xab3   : > { %v5495_v45 = vpop.eup %5494  ;;  %v3746_v56 = vmul.f32 1.442695, %v3716_v30  ;;  %v3935_v41 = vadd.f32 %v5493_v34, %v3934_v44 }
 0xab4   : > { %v5497_v16 = vpop.eup %5496  ;;  %v3763_v0 = vadd.f32 1.0, %v5495_v45  ;;  %v3683_v1 = vpop.f32.mrf.mxu2 }
 0xab5   : > { %5498 = vpow2.f32 %v3746_v56  ;;  %v3684_v13 = vadd.f32 %v3683_v1, %v3345_v10  ;;  %v3939_v53 = vsel %vm3938_vm1, %v5493_v34, %v3935_v41  ;;  %v3947_v59 = vmul.f32 %v5497_v16, %v3762_v52 }
 0xab6   : > { %5500 = vrcp.f32 %v3763_v0  ;;  %v3944_v61 = vsel %vm3941_vm2, %v3943_v49, %v3939_v53  ;;  %vm3952_vm3 = vweird.f32 %v5497_v16  ;;  %v3972_v43 = vand.u32 2147483648, %v3763_v0 }
 0xab7   : > { %v3701_v21 = vadd.f32 %v3684_v13, %v3598_v5  ;;  %4063 = vperm.xlu2 %5441, %v3944_v61   ;;  %v3948_v57 = vsub.f32 1.0, %v3947_v59  ;;  %vm3953_vm5 = vmor %vm3951_vm4, %vm3952_vm3  ;;  %v3970_v44 = vand.u32 2147483647, %v3763_v0  ;;  %vm3966_vm8 = vweird.f32 %v3763_v0 }
 0xab8   : > { %v3973_v41 = vor.u32 1.1754944e-38, %v3972_v43 }
 0xab9   : > { %v3717_v25 = vsub.f32 0.0, %v3701_v21  ;;  %v3949_v40 = vmul.f32 %v5497_v16, %v3948_v57  ;;  %vm3971_vm10 = vcmp.eq.f32.partialorder %v3970_v44, 8.507059e+37  ;;  %v4242_v44 = vld [vmem:[%s9317_s12 + $0xf8] sm:$0xff] }
 0xaba   : > { %4459 = vmatpush.msrb.mxu2 %v4242_v44  ;;  %v4290_v44 = vld [vmem:[%s9318_s13 + $0x78] sm:$0xff] }
 0xabb   : > { %v5499_v39 = vpop.eup %5498  ;;  %v3748_v3 = vmul.f32 1.442695, %v3717_v25  ;;  %v3950_v63 = vadd.f32 %v5497_v16, %v3949_v40 }
 0xabc   : > { %v5501_v11 = vpop.eup %5500  ;;  %v3764_v46 = vadd.f32 1.0, %v5499_v39 }
 0xabd   : > { %5502 = vpow2.f32 %v3748_v3  ;;  %v3954_v34 = vsel %vm3953_vm5, %v5497_v16, %v3950_v63  ;;  %v3962_v10 = vmul.f32 %v5501_v11, %v3763_v0  ;;  %vm3967_vm7 = vweird.f32 %v5501_v11 }
 0xabe   : > { %5504 = vrcp.f32 %v3764_v46  ;;  %v3959_v35 = vsel %vm3956_vm6, %v3958_v4, %v3954_v34  ;;  %vm3968_vm9 = vmor %vm3966_vm8, %vm3967_vm7  ;;  %v3987_v53 = vand.u32 2147483648, %v3764_v46  ;;  %v3985_v61 = vand.u32 2147483647, %v3764_v46 }
 0xabf   : > { %4068 = vperm.xlu1 %5440, %v3959_v35   ;;  %v3963_v23 = vsub.f32 1.0, %v3962_v10  ;;  %vm3981_vm12 = vweird.f32 %v3764_v46  ;;  %v4306_v10 = vld [vmem:[%s9318_s13 + $0xf8] sm:$0xff]  ;;  %v4337_v35 = vld [vmem:[%s9318_s13 + $0x1f0] sm:$0xff] }
 0xac0   : > { %v3988_v0 = vor.u32 1.1754944e-38, %v3987_v53  ;;  %vm3986_vm14 = vcmp.eq.f32.partialorder %v3985_v61, 8.507059e+37  ;;  %4379 = vmatpush.msrb.mxu3 %v4306_v10  ;;  %4359 = vmatpush.msra.mxu1 %v4337_v35  ;;  %v4297_v53 = vld [vmem:[%s9318_s13 + $0xb0] sm:$0xff]  ;;  %v4236_v61 = vld [vmem:[%s9317_s12 + $0xc8] sm:$0xff]  ;;  %v4287_v10 = vld [vmem:[%s9318_s13 + $0x60] sm:$0xff] }
 0xac1   : > { %v3964_v30 = vmul.f32 %v5501_v11, %v3963_v23  ;;  %v4323_v35 = vld [vmem:[%s9318_s13 + $0x180] sm:$0xff] }
 0xac3   : > { %v5503_v45 = vpop.eup %5502  ;;  %v3965_v56 = vadd.f32 %v5501_v11, %v3964_v30  ;;  %v4303_v30 = vld [vmem:[%s9318_s13 + $0xe0] sm:$0xff] }
 0xac4   : > { %v5505_v52 = vpop.eup %5504  ;;  %v3765_v5 = vadd.f32 1.0, %v5503_v45  ;;  %v4304_v45 = vld [vmem:[%s9318_s13 + $0xe8] sm:$0xff] }
 0xac5   : > { %v3969_v1 = vsel %vm3968_vm9, %v5501_v11, %v3965_v56  ;;  %v3977_v16 = vmul.f32 %v5505_v52, %v3764_v46  ;;  %vm3982_vm11 = vweird.f32 %v5505_v52  ;;  %v4305_v46 = vld [vmem:[%s9318_s13 + $0xf0] sm:$0xff]  ;;  %v4335_v56 = vld [vmem:[%s9318_s13 + $0x1e0] sm:$0xff]  ;;  %4380 = vmatpush.msrb.mxu3 %v4304_v45 }
 0xac6   : > { %5506 = vrcp.f32 %v3765_v5  ;;  %v3974_v49 = vsel %vm3971_vm10, %v3973_v41, %v3969_v1  ;;  %vm3983_vm13 = vmor %vm3981_vm12, %vm3982_vm11  ;;  %v4002_v3 = vand.u32 2147483648, %v3765_v5  ;;  %v4000_v11 = vand.u32 2147483647, %v3765_v5  ;;  %4339 = vmatpush.msrb.mxu0 %v4305_v46  ;;  %4360 = vmatpush.msra.mxu1 %v4335_v56  ;;  %v4302_v41 = vld [vmem:[%s9318_s13 + $0xd8] sm:$0xff]  ;;  %v4299_v1 = vld [vmem:[%s9318_s13 + $0xc0] sm:$0xff] }
 0xac7   : > { %4073 = vperm.xlu0 %5439, %v3974_v49   ;;  %v3978_v13 = vsub.f32 1.0, %v3977_v16  ;;  %vm3996_vm0 = vweird.f32 %v3765_v5  ;;  %4381 = vmatpush.msrb.mxu3 %v4302_v41  ;;  %v4333_v16 = vld [vmem:[%s9318_s13 + $0x1d0] sm:$0xff]  ;;  %v4238_v49 = vld [vmem:[%s9317_s12 + $0xd8] sm:$0xff]  ;;  %v4292_v46 = vld [vmem:[%s9318_s13 + $0x88] sm:$0xff] }
 0xac8   : > { %v4003_v34 = vor.u32 1.1754944e-38, %v4002_v3  ;;  %vm4001_vm2 = vcmp.eq.f32.partialorder %v4000_v11, 8.507059e+37  ;;  %4340 = vmatpush.msrb.mxu0 %v4303_v30  ;;  %4361 = vmatpush.msra.mxu1 %v4333_v16  ;;  %v4291_v3 = vld [vmem:[%s9318_s13 + $0x80] sm:$0xff]  ;;  %v4325_v11 = vld [vmem:[%s9318_s13 + $0x190] sm:$0xff]  ;;  %v4228_v30 = vld [vmem:[%s9317_s12 + $0x88] sm:$0xff] }
 0xac9   : > { %v3979_v59 = vmul.f32 %v5505_v52, %v3978_v13  ;;  %v4300_v13 = vld [vmem:[%s9318_s13 + $0xc8] sm:$0xff]  ;;  %v4281_v45 = vld [vmem:[%s9318_s13 + $0x30] sm:$0xff] }
 0xaca   : > { %4382 = vmatpush.msrb.mxu3 %v4300_v13  ;;  %v4321_v56 = vld [vmem:[%s9318_s13 + $0x170] sm:$0xff]  ;;  %v4288_v41 = vld [vmem:[%s9318_s13 + $0x68] sm:$0xff] }
 0xacb   : > { %v3980_v21 = vadd.f32 %v5505_v52, %v3979_v59  ;;  %v4331_v59 = vld [vmem:[%s9318_s13 + $0x1c0] sm:$0xff]  ;;  %v4317_v16 = vld [vmem:[%s9318_s13 + $0x150] sm:$0xff] }
 0xacc   : > { %v5507_v57 = vpop.eup %5506  ;;  %4362 = vmatpush.msra.mxu1 %v4331_v59  ;;  %v4275_v59 = vld [vmem:[%s9318_s13] sm:$0xff] }
 0xacd   : > { %v3984_v25 = vsel %vm3983_vm13, %v5505_v52, %v3980_v21  ;;  %v3992_v40 = vmul.f32 %v5507_v57, %v3765_v5  ;;  %vm3997_vm15 = vweird.f32 %v5507_v57  ;;  %v4301_v52 = vld [vmem:[%s9318_s13 + $0xd0] sm:$0xff]  ;;  %v4240_v5 = vld [vmem:[%s9317_s12 + $0xe8] sm:$0xff]  ;;  %v4298_v21 = vld [vmem:[%s9318_s13 + $0xb8] sm:$0xff] }
 0xace   : > { %v3989_v28 = vsel %vm3986_vm14, %v3988_v0, %v3984_v25  ;;  %vm3998_vm1 = vmor %vm3996_vm0, %vm3997_vm15  ;;  %4341 = vmatpush.msrb.mxu0 %v4301_v52  ;;  %4460 = vmatpush.msrb.mxu2 %v4240_v5  ;;  %v4234_v0 = vld [vmem:[%s9317_s12 + $0xb8] sm:$0xff]  ;;  %v4296_v25 = vld [vmem:[%s9318_s13 + $0xa8] sm:$0xff] }
 0xacf   : > { %4502 = vperm.xlu0 %5439, %v4499_v12   ;;  %4078 = vperm.xlu2 %5441, %v3989_v28   ;;  %v3993_v39 = vsub.f32 1.0, %v3992_v40  ;;  %v4329_v12 = vld [vmem:[%s9318_s13 + $0x1b0] sm:$0xff]  ;;  %v4327_v28 = vld [vmem:[%s9318_s13 + $0x1a0] sm:$0xff] }
 0xad0   : > { %4342 = vmatpush.msrb.mxu0 %v4299_v1  ;;  %4461 = vmatpush.msrb.mxu2 %v4238_v49  ;;  %v4293_v40 = vld [vmem:[%s9318_s13 + $0x90] sm:$0xff]  ;;  %v4279_v52 = vld [vmem:[%s9318_s13 + $0x20] sm:$0xff]  ;;  %v4286_v49 = vld [vmem:[%s9318_s13 + $0x58] sm:$0xff] }
 0xad1   : > { %v3994_v63 = vmul.f32 %v5507_v57, %v3993_v39  ;;  %4383 = vmatpush.msrb.mxu3 %v4298_v21  ;;  %4363 = vmatpush.msra.mxu1 %v4329_v12  ;;  %v4232_v39 = vld [vmem:[%s9317_s12 + $0xa8] sm:$0xff]  ;;  %v4319_v5 = vld [vmem:[%s9318_s13 + $0x160] sm:$0xff]  ;;  %v4277_v1 = vld [vmem:[%s9318_s13 + $0x10] sm:$0xff]  ;;  %v4009_v13 = vpop.permute.xlu1 %4008 }
 0xad2   : > { %4343 = vmatpush.msrb.mxu0 %v4297_v53  ;;  %4462 = vmatpush.msrb.mxu2 %v4236_v61  ;;  %v4226_v53 = vld [vmem:[%s9317_s12 + $0x78] sm:$0xff]  ;;  %v4315_v61 = vld [vmem:[%s9318_s13 + $0x140] sm:$0xff]  ;;  %v4284_v21 = vld [vmem:[%s9318_s13 + $0x48] sm:$0xff] }
 0xad3   : > { %v3995_v4 = vadd.f32 %v5507_v57, %v3994_v63  ;;  %4384 = vmatpush.msrb.mxu3 %v4296_v25  ;;  %4364 = vmatpush.msra.mxu1 %v4327_v28  ;;  %v4294_v63 = vld [vmem:[%s9318_s13 + $0x98] sm:$0xff]  ;;  %v4280_v28 = vld [vmem:[%s9318_s13 + $0x28] sm:$0xff] }
 0xad4   : > { %4463 = vmatpush.msrb.mxu2 %v4234_v0  ;;  %v4313_v0 = vld [vmem:[%s9318_s13 + $0x130] sm:$0xff]  ;;  %v4282_v25 = vld [vmem:[%s9318_s13 + $0x38] sm:$0xff] }
 0xad5   : > { %v3999_v23 = vsel %vm3998_vm1, %v5507_v57, %v3995_v4  ;;  %v4295_v57 = vld [vmem:[%s9318_s13 + $0xa0] sm:$0xff]  ;;  %4385 = vmatpush.msrb.mxu3 %v4294_v63  ;;  %4365 = vmatpush.msra.mxu1 %v4325_v11  ;;  %v4230_v4 = vld [vmem:[%s9317_s12 + $0x98] sm:$0xff]  ;;  %v4014_v63 = vpop.permute.xlu2 %4013  ;;  %v4309_v11 = vld [vmem:[%s9318_s13 + $0x110] sm:$0xff] }
 0xad6   : > { %v4004_v43 = vsel %vm4001_vm2, %v4003_v34, %v3999_v23  ;;  %4344 = vmatpush.msrb.mxu0 %v4295_v57  ;;  %4464 = vmatpush.msrb.mxu2 %v4232_v39  ;;  %v4289_v34 = vld [vmem:[%s9318_s13 + $0x70] sm:$0xff]  ;;  %v4338_v57 = vld [vmem:[%s9318_s13 + $0x1f8] sm:$0xff]  ;;  %v4311_v39 = vld [vmem:[%s9318_s13 + $0x120] sm:$0xff] }
 0xad7   : > { %4083 = vperm.xlu1 %5440, %v4004_v43   ;;  %4386 = vmatpush.msrb.mxu3 %v4292_v46  ;;  %v4285_v23 = vld [vmem:[%s9318_s13 + $0x50] sm:$0xff]  ;;  %v4283_v43 = vld [vmem:[%s9318_s13 + $0x40] sm:$0xff]  ;;  %v8819_v46 = vmul.f32 %v4009_v13, %v8482_v18 }
 0xad8   : > { %4345 = vmatpush.msrb.mxu0 %v4293_v40  ;;  %4465 = vmatpush.msrb.mxu2 %v4230_v4  ;;  %v4336_v40 = vld [vmem:[%s9318_s13 + $0x1e8] sm:$0xff]  ;;  %v4278_v4 = vld [vmem:[%s9318_s13 + $0x18] sm:$0xff]  ;;  %v4307_v18 = vld [vmem:[%s9318_s13 + $0x100] sm:$0xff] }
 0xad9   : > { %4366 = vmatpush.msra.mxu1 %v4323_v35  ;;  %4387 = vmatpush.msrb.mxu3 %v4290_v44  ;;  %v4276_v35 = vld [vmem:[%s9318_s13 + $0x8] sm:$0xff]  ;;  %v8837_v44 = vmul.f32 %v4014_v63, %v8470_v48 }
 0xada   : > { %4346 = vmatpush.msrb.mxu0 %v4291_v3  ;;  %4466 = vmatpush.msrb.mxu2 %v4228_v30  ;;  %v4334_v3 = vld [vmem:[%s9318_s13 + $0x1d8] sm:$0xff]  ;;  %v4273_v30 = vld [vmem:[%s9317_s12 + $0x1f0] sm:$0xff] }
 0xadb   : > { %4367 = vmatpush.msra.mxu1 %v4321_v56  ;;  %4388 = vmatpush.msrb.mxu3 %v4288_v41  ;;  %v4241_v56 = vld [vmem:[%s9317_s12 + $0xf0] sm:$0xff]  ;;  %v4160_v41 = vadd.f32 %v8837_v44, %v8819_v46 }
 0xadc   : > { %4347 = vmatpush.msrb.mxu0 %v4289_v34  ;;  %4467 = vmatpush.msrb.mxu2 %v4226_v53  ;;  %v4224_v34 = vld [vmem:[%s9317_s12 + $0x68] sm:$0xff] }
 0xadd   : > { %4368 = vmatpush.msra.mxu1 %v4319_v5  ;;  %4389 = vmatpush.msrb.mxu3 %v4286_v49 }
 0xade   : > { %4348 = vmatpush.msrb.mxu0 %v4287_v10  ;;  %v4332_v10 = vld [vmem:[%s9318_s13 + $0x1c8] sm:$0xff]  ;;  %4468 = vmatpush.msrb.mxu2 %v4224_v34 }
 0xadf   : > { %4369 = vmatpush.msra.mxu1 %v4317_v16  ;;  %4390 = vmatpush.msrb.mxu3 %v4284_v21 }
 0xae0   : > { %4349 = vmatpush.msrb.mxu0 %v4285_v23  ;;  %v8828_v23 = vmul.f32 %v4009_v13, %v8479_v62  ;;  %v4330_v62 = vld [vmem:[%s9318_s13 + $0x1b8] sm:$0xff] }
 0xae1   : > { %v4019_v12 = vpop.permute.xlu0 %4018  ;;  %4370 = vmatpush.msra.mxu1 %v4315_v61  ;;  %4391 = vmatpush.msrb.mxu3 %v4282_v25  ;;  %v4034_v25 = vpop.permute.xlu2 %4033 }
 0xae2   : > { %4350 = vmatpush.msrb.mxu0 %v4283_v43  ;;  %v8852_v5 = vmul.f32 %v4019_v12, %v8449_v38  ;;  %v4328_v38 = vld [vmem:[%s9318_s13 + $0x1a8] sm:$0xff]  ;;  %v8913_v34 = vmul.f32 %v4034_v25, %v8360_v20  ;;  %v4231_v20 = vld [vmem:[%s9317_s12 + $0xa0] sm:$0xff] }
 0xae3   : > { %4371 = vmatpush.msra.mxu1 %v4313_v0  ;;  %4392 = vmatpush.msrb.mxu3 %v4280_v28  ;;  %v4267_v0 = vld [vmem:[%s9317_s12 + $0x1c0] sm:$0xff] }
 0xae4   : > { %4351 = vmatpush.msrb.mxu0 %v4281_v45  ;;  %v8840_v45 = vmul.f32 %v4019_v12, %v8455_v22  ;;  %v4271_v22 = vld [vmem:[%s9317_s12 + $0x1e0] sm:$0xff] }
 0xae5   : > { %4372 = vmatpush.msra.mxu1 %v4311_v39  ;;  %4393 = vmatpush.msrb.mxu3 %v4278_v4  ;;  %v4235_v12 = vld [vmem:[%s9317_s12 + $0xc0] sm:$0xff]  ;;  %v4322_v39 = vld [vmem:[%s9318_s13 + $0x178] sm:$0xff] }
 0xae6   : > { %4352 = vmatpush.msrb.mxu0 %v4279_v52  ;;  %v8849_v52 = vmul.f32 %v4014_v63, %v8467_v32  ;;  %v4239_v32 = vld [vmem:[%s9317_s12 + $0xe0] sm:$0xff]  ;;  %v4161_v13 = vadd.f32 %v4160_v41, %v8840_v45  ;;  %v4265_v63 = vld [vmem:[%s9317_s12 + $0x1b0] sm:$0xff] }
 0xae7   : > { %4373 = vmatpush.msra.mxu1 %v4309_v11  ;;  %4394 = vmatpush.msrb.mxu3 %v4276_v35  ;;  %v4320_v35 = vld [vmem:[%s9318_s13 + $0x168] sm:$0xff] }
 0xae8   : > { %4353 = vmatpush.msrb.mxu0 %v4277_v1  ;;  %v4181_v16 = vadd.f32 %v8849_v52, %v8828_v23 }
 0xae9   : > { %v4024_v43 = vpop.permute.xlu1 %4023  ;;  %4374 = vmatpush.msra.mxu1 %v4307_v18  ;;  %4439 = vmatpush.msra.mxu3 %v4273_v30  ;;  %v8925_v18 = vmul.f32 %v4034_v25, %v8362_v55  ;;  %v4318_v55 = vld [vmem:[%s9318_s13 + $0x158] sm:$0xff] }
 0xaea   : > { %4354 = vmatpush.msrb.mxu0 %v4275_v59  ;;  %v8860_v1 = vmul.f32 %v4024_v43, %v8458_v33  ;;  %v8871_v49 = vmul.f32 %v4024_v43, %v8452_v29  ;;  %v4269_v33 = vld [vmem:[%s9317_s12 + $0x1d0] sm:$0xff]  ;;  %v4326_v59 = vld [vmem:[%s9318_s13 + $0x198] sm:$0xff]  ;;  %v4182_v61 = vadd.f32 %v4181_v16, %v8852_v5  ;;  %v4263_v43 = vld [vmem:[%s9317_s12 + $0x1a0] sm:$0xff] }
 0xaeb   : > { %4419 = vmatpush.msrb.mxu1 %v4241_v56  ;;  %4440 = vmatpush.msra.mxu3 %v4271_v22  ;;  %v4237_v29 = vld [vmem:[%s9317_s12 + $0xd0] sm:$0xff]  ;;  %v4222_v56 = vld [vmem:[%s9317_s12 + $0x58] sm:$0xff] }
 0xaec   : > { %4399 = vmatpush.msra.mxu0 %v4338_v57  ;;  %v4162_v57 = vadd.f32 %v4161_v13, %v8860_v1  ;;  %4469 = vmatpush.msrb.mxu2 %v4222_v56  ;;  %v4261_v22 = vld [vmem:[%s9317_s12 + $0x190] sm:$0xff]  ;;  %v4259_v13 = vld [vmem:[%s9317_s12 + $0x180] sm:$0xff] }
 0xaed   : > { %4420 = vmatpush.msrb.mxu1 %v4239_v32  ;;  %4441 = vmatpush.msra.mxu3 %v4269_v33  ;;  %v4227_v33 = vld [vmem:[%s9317_s12 + $0x80] sm:$0xff]  ;;  %v4221_v56 = vld [vmem:[%s9317_s12 + $0x50] sm:$0xff] }
 0xaee   : > { %4400 = vmatpush.msra.mxu0 %v4336_v40 }
 0xaef   : > { %4421 = vmatpush.msrb.mxu1 %v4237_v29  ;;  %4442 = vmatpush.msra.mxu3 %v4267_v0  ;;  %v4218_v0 = vld [vmem:[%s9317_s12 + $0x38] sm:$0xff] }
 0xaf0   : > { %4401 = vmatpush.msra.mxu0 %v4334_v3  ;;  %v4233_v3 = vld [vmem:[%s9317_s12 + $0xb0] sm:$0xff] }
 0xaf1   : > { %v4029_v48 = vpop.permute.xlu0 %4028  ;;  %4422 = vmatpush.msrb.mxu1 %v4235_v12  ;;  %4443 = vmatpush.msra.mxu3 %v4265_v63  ;;  %v4225_v12 = vld [vmem:[%s9317_s12 + $0x70] sm:$0xff]  ;;  %v4223_v63 = vld [vmem:[%s9317_s12 + $0x60] sm:$0xff] }
 0xaf2   : > { %4402 = vmatpush.msra.mxu0 %v4332_v10  ;;  %v8878_v53 = vmul.f32 %v4029_v48, %v8354_v60  ;;  %v8888_v21 = vmul.f32 %v4029_v48, %v8356_v7  ;;  %v4324_v60 = vld [vmem:[%s9318_s13 + $0x188] sm:$0xff]  ;;  %v4183_v7 = vadd.f32 %v4182_v61, %v8871_v49  ;;  %v4314_v61 = vld [vmem:[%s9318_s13 + $0x138] sm:$0xff] }
 0xaf3   : > { %4423 = vmatpush.msrb.mxu1 %v4233_v3  ;;  %4444 = vmatpush.msra.mxu3 %v4263_v43 }
 0xaf4   : > { %4403 = vmatpush.msra.mxu0 %v4330_v62  ;;  %v4163_v28 = vadd.f32 %v4162_v57, %v8878_v53  ;;  %v4184_v11 = vadd.f32 %v4183_v7, %v8888_v21  ;;  %v4257_v57 = vld [vmem:[%s9317_s12 + $0x170] sm:$0xff] }
 0xaf5   : > { %4424 = vmatpush.msrb.mxu1 %v4231_v20  ;;  %4445 = vmatpush.msra.mxu3 %v4261_v22 }
 0xaf6   : > { %4404 = vmatpush.msra.mxu0 %v4328_v38  ;;  %v4220_v38 = vld [vmem:[%s9317_s12 + $0x48] sm:$0xff] }
 0xaf7   : > { %4470 = vmatpush.msrb.mxu2 %v4220_v38  ;;  %4446 = vmatpush.msra.mxu3 %v4259_v13  ;;  %v4219_v38 = vld [vmem:[%s9317_s12 + $0x40] sm:$0xff] }
 0xaf8   : > { %4405 = vmatpush.msra.mxu0 %v4326_v59 }
 0xaf9   : > { %v4049_v32 = vpop.permute.xlu2 %4048  ;;  %4471 = vmatpush.msrb.mxu2 %v4218_v0  ;;  %4447 = vmatpush.msra.mxu3 %v4257_v57  ;;  %v4249_v0 = vld [vmem:[%s9317_s12 + $0x130] sm:$0xff] }
 0xafa   : > { %4406 = vmatpush.msra.mxu0 %v4324_v60  ;;  %v8982_v25 = vmul.f32 %v4049_v32, %v8378_v14 }
 0xafc   : > { %4407 = vmatpush.msra.mxu0 %v4322_v39  ;;  %v8991_v39 = vmul.f32 %v4049_v32, %v8380_v2  ;;  %v4119_v2 = vmax.f32 %v8837_v44, %v8860_v1 }
 0xafe   : > { %4408 = vmatpush.msra.mxu0 %v4320_v35  ;;  %v4214_v35 = vld [vmem:[%s9317_s12 + $0x18] sm:$0xff] }
 0xb00   : > { %4409 = vmatpush.msra.mxu0 %v4318_v55  ;;  %v4253_v55 = vld [vmem:[%s9317_s12 + $0x150] sm:$0xff] }
 0xb01   : > { %v4039_v40 = vpop.permute.xlu1 %4038 }
 0xb02   : > { %v8916_v10 = vmul.f32 %v4039_v40, %v8366_v17  ;;  %v8928_v30 = vmul.f32 %v4039_v40, %v8368_v8  ;;  %v4164_v17 = vadd.f32 %v4163_v28, %v8913_v34  ;;  %v4185_v8 = vadd.f32 %v4184_v11, %v8925_v18  ;;  %v4312_v40 = vld [vmem:[%s9318_s13 + $0x128] sm:$0xff]  ;;  %v4255_v28 = vld [vmem:[%s9317_s12 + $0x160] sm:$0xff] }
 0xb03   : > { %v4216_v11 = vld [vmem:[%s9317_s12 + $0x28] sm:$0xff]  ;;  %4448 = vmatpush.msra.mxu3 %v4255_v28 }
 0xb04   : > { %v4165_v41 = vadd.f32 %v4164_v17, %v8916_v10  ;;  %v4186_v16 = vadd.f32 %v4185_v8, %v8928_v30  ;;  %4472 = vmatpush.msrb.mxu2 %v4216_v11  ;;  %v4118_v8 = vmax.f32 %v8819_v46, %v8840_v45 }
 0xb05   : > { %4449 = vmatpush.msra.mxu3 %v4253_v55  ;;  %v4213_v55 = vld [vmem:[%s9317_s12 + $0x10] sm:$0xff] }
 0xb06   : > { %4473 = vmatpush.msrb.mxu2 %v4214_v35  ;;  %v4120_v32 = vmax.f32 %v4118_v8, %v8878_v53  ;;  %v4247_v35 = vld [vmem:[%s9317_s12 + $0x120] sm:$0xff]  ;;  %v4245_v8 = vld [vmem:[%s9317_s12 + $0x110] sm:$0xff] }
 0xb09   : > { %v4044_v4 = vpop.permute.xlu0 %4043 }
 0xb0a   : > { %v8935_v62 = vmul.f32 %v4044_v4, %v8372_v47  ;;  %v8945_v48 = vmul.f32 %v4044_v4, %v8374_v9  ;;  %v4229_v47 = vld [vmem:[%s9317_s12 + $0x90] sm:$0xff]  ;;  %v4316_v9 = vld [vmem:[%s9318_s13 + $0x148] sm:$0xff] }
 0xb0b   : > { %4425 = vmatpush.msrb.mxu1 %v4229_v47  ;;  %4410 = vmatpush.msra.mxu0 %v4316_v9  ;;  %v4212_v47 = vld [vmem:[%s9317_s12 + $0x8] sm:$0xff]  ;;  %v4251_v9 = vld [vmem:[%s9317_s12 + $0x140] sm:$0xff] }
 0xb0c   : > { %v4166_v59 = vadd.f32 %v4165_v41, %v8935_v62  ;;  %v4187_v60 = vadd.f32 %v4186_v16, %v8945_v48  ;;  %4474 = vmatpush.msrb.mxu2 %v4212_v47  ;;  %4450 = vmatpush.msra.mxu3 %v4251_v9 }
 0xb0d   : > { %4426 = vmatpush.msrb.mxu1 %v4227_v33  ;;  %4411 = vmatpush.msra.mxu0 %v4314_v61  ;;  %v4121_v33 = vmax.f32 %v4119_v2, %v8913_v34 }
 0xb0e   : > { %v4167_v4 = vadd.f32 %v4166_v59, %v8982_v25  ;;  %v4188_v43 = vadd.f32 %v4187_v60, %v8991_v39  ;;  %v5560_v60 = vmov 128.0   ;;  %4451 = vmatpush.msra.mxu3 %v4249_v0 }
 0xb0f   : > { %4427 = vmatpush.msrb.mxu1 %v4225_v12  ;;  %4412 = vmatpush.msra.mxu0 %v4312_v40  ;;  %5508 = vrcp.f32 %v5560_v60  ;;  %v4217_v12 = vld [vmem:[%s9317_s12 + $0x30] sm:$0xff]  ;;  %v4123_v28 = vmax.f32 %v4121_v33, %v8935_v62 }
 0xb10   : > { %4452 = vmatpush.msra.mxu3 %v4247_v35 }
 0xb11   : > { %4428 = vmatpush.msrb.mxu1 %v4223_v63  ;;  %v4064_v13 = vpop.permute.xlu2 %4063 }
 0xb12   : > { %v9063_v11 = vmul.f32 %v4064_v13, %v8400_v31  ;;  %v9066_v2 = vmul.f32 %v4064_v13, %v8402_v6  ;;  %4453 = vmatpush.msra.mxu3 %v4245_v8 }
 0xb13   : > { %4429 = vmatpush.msrb.mxu1 %v4221_v56 }
 0xb15   : > { %4430 = vmatpush.msrb.mxu1 %v4219_v38  ;;  %v4243_v38 = vld [vmem:[%s9317_s12 + $0x100] sm:$0xff] }
 0xb16   : > { %4454 = vmatpush.msra.mxu3 %v4243_v38 }
 0xb17   : > { %4431 = vmatpush.msrb.mxu1 %v4217_v12 }
 0xb19   : > { %v4054_v29 = vpop.permute.xlu1 %4053 }
 0xb1a   : > { %v8994_v3 = vmul.f32 %v4054_v29, %v8384_v27  ;;  %v8997_v14 = vmul.f32 %v4054_v29, %v8386_v37  ;;  %v4140_v27 = vmax.f32 %v8849_v52, %v8871_v49  ;;  %v4310_v37 = vld [vmem:[%s9318_s13 + $0x118] sm:$0xff] }
 0xb1b   : > { %4413 = vmatpush.msra.mxu0 %v4310_v37  ;;  %v4215_v37 = vld [vmem:[%s9317_s12 + $0x20] sm:$0xff] }
 0xb1c   : > { %v4168_v22 = vadd.f32 %v4167_v4, %v8994_v3  ;;  %v4189_v41 = vadd.f32 %v4188_v43, %v8997_v14  ;;  %v4142_v29 = vmax.f32 %v4140_v27, %v8925_v18  ;;  %v4125_v43 = vmax.f32 %v4123_v28, %v8994_v3  ;;  %4432 = vmatpush.msrb.mxu1 %v4215_v37 }
 0xb1e   : > { %v4144_v31 = vmax.f32 %v4142_v29, %v8945_v48  ;;  %4433 = vmatpush.msrb.mxu1 %v4213_v55  ;;  %v4127_v33 = vmax.f32 %v4125_v43, %v9063_v11 }
 0xb21   : > { %v4059_v7 = vpop.permute.xlu0 %4058 }
 0xb22   : > { %v9018_v20 = vmul.f32 %v4059_v7, %v8392_v19  ;;  %v9021_v17 = vmul.f32 %v4059_v7, %v8394_v36  ;;  %v4139_v19 = vmax.f32 %v8828_v23, %v8852_v5  ;;  %v4308_v36 = vld [vmem:[%s9318_s13 + $0x108] sm:$0xff]  ;;  %v4122_v7 = vmax.f32 %v4120_v32, %v8916_v10 }
 0xb23   : > { %4414 = vmatpush.msra.mxu0 %v4308_v36 }
 0xb24   : > { %v4141_v16 = vmax.f32 %v4139_v19, %v8888_v21  ;;  %v4169_v61 = vadd.f32 %v4168_v22, %v9018_v20  ;;  %v4190_v57 = vadd.f32 %v4189_v41, %v9021_v17  ;;  %v4146_v19 = vmax.f32 %v4144_v31, %v8997_v14  ;;  %v4211_v41 = vld [vmem:[%s9317_s12] sm:$0xff] }
 0xb25   : > { %v4124_v36 = vmax.f32 %v4122_v7, %v8982_v25  ;;  %4434 = vmatpush.msrb.mxu1 %v4211_v41 }
 0xb26   : > { %v4143_v40 = vmax.f32 %v4141_v16, %v8928_v30  ;;  %v4170_v6 = vadd.f32 %v4169_v61, %v9063_v11 }
 0xb27   : > { %v4126_v9 = vmax.f32 %v4124_v36, %v9018_v20 }
 0xb28   : > { %v4145_v47 = vmax.f32 %v4143_v40, %v8991_v39 }
 0xb29   : > { %v4079_v16 = vpop.permute.xlu2 %4078 }
 0xb2a   : > { %v4147_v32 = vmax.f32 %v4145_v47, %v9021_v17  ;;  %v9116_v12 = vmul.f32 %v4079_v16, %v8426_v24  ;;  %v9119_v0 = vmul.f32 %v4079_v16, %v8429_v42 }
 0xb31   : > { %v4069_v59 = vpop.permute.xlu1 %4068 }
 0xb32   : > { %v9069_v27 = vmul.f32 %v4069_v59, %v8408_v54  ;;  %v9072_v4 = vmul.f32 %v4069_v59, %v8410_v58  ;;  %v4191_v54 = vadd.f32 %v4190_v57, %v9066_v2  ;;  %v4148_v57 = vmax.f32 %v4146_v19, %v9066_v2 }
 0xb34   : > { %v4192_v22 = vadd.f32 %v4191_v54, %v9072_v4  ;;  %v4128_v29 = vmax.f32 %v4126_v9, %v9069_v27  ;;  %v4149_v61 = vmax.f32 %v4147_v32, %v9072_v4 }
 0xb36   : > { %v4130_v24 = vmax.f32 %v4128_v29, %v9116_v12  ;;  %v4151_v42 = vmax.f32 %v4149_v61, %v9119_v0 }
 0xb39   : > { %v4074_v63 = vpop.permute.xlu0 %4073 }
 0xb3a   : > { %v9085_v58 = vmul.f32 %v4074_v63, %v8415_v26  ;;  %v9088_v56 = vmul.f32 %v4074_v63, %v8418_v50  ;;  %v5509_v26 = vpop.eup %5508  ;;  %v4171_v50 = vadd.f32 %v4170_v6, %v9069_v27 }
 0xb3b   : > { %v4203_v60 = vmul.f32 128.0, %v5509_v26  ;;  %vm4207_vm3 = vweird.f32 %v5509_v26 }
 0xb3c   : > { %v4172_v13 = vadd.f32 %v4171_v50, %v9085_v58  ;;  %v4193_v59 = vadd.f32 %v4192_v22, %v9088_v56  ;;  %v4129_v7 = vmax.f32 %v4127_v33, %v9085_v58  ;;  %v4150_v40 = vmax.f32 %v4148_v57, %v9088_v56 }
 0xb3d   : > { %v4204_v43 = vsub.f32 1.0, %v4203_v60 }
 0xb3e   : > { %v4173_v63 = vadd.f32 %v4172_v13, %v9116_v12  ;;  %v4194_v37 = vadd.f32 %v4193_v59, %v9119_v0 }
 0xb3f   : > { %v4205_v50 = vmul.f32 %v5509_v26, %v4204_v43 }
 0xb41   : > { %v4206_v13 = vadd.f32 %v5509_v26, %v4205_v50  ;;  %v4264_v50 = vld [vmem:[%s9317_s12 + $0x1a8] sm:$0xff] }
 0xb49   : > { %v4084_v28 = vpop.permute.xlu1 %4083 }
 0xb4a   : > { %v9126_v35 = vmul.f32 %v4084_v28, %v8437_v15  ;;  %v9129_v31 = vmul.f32 %v4084_v28, %v8440_v51  ;;  %v4208_v28 = vsel %vm4207_vm3, %v5509_v26, %v4206_v13  ;;  %v4246_v13 = vld [vmem:[%s9317_s12 + $0x118] sm:$0xff] }
 0xb4c   : > { %v4131_v6 = vmax.f32 %v4129_v7, %v9126_v35  ;;  %v4152_v54 = vmax.f32 %v4150_v40, %v9129_v31  ;;  %v4174_v55 = vadd.f32 %v4173_v63, %v9126_v35  ;;  %v4195_v8 = vadd.f32 %v4194_v37, %v9129_v31 }
 0xb4e   : > { %v4132_v19 = vmax.f32 %v4130_v24, %v4131_v6  ;;  %v4153_v36 = vmax.f32 %v4151_v42, %v4152_v54  ;;  %v4175_v15 = vrot.slane %v4174_v55, 4  ;;  %v4196_v47 = vrot.slane %v4195_v8, 4 }
 0xb50   : > { %v4133_v51 = vrot.slane %v4132_v19, 4  ;;  %v4154_v22 = vrot.slane %v4153_v36, 4  ;;  %v4176_v41 = vadd.f32 %v4175_v15, %v4174_v55  ;;  %v4197_v38 = vadd.f32 %v4196_v47, %v4195_v8  ;;  %v4274_v55 = vld [vmem:[%s9317_s12 + $0x1f8] sm:$0xff]  ;;  %v4272_v8 = vld [vmem:[%s9317_s12 + $0x1e8] sm:$0xff] }
 0xb51   : > { %v4266_v47 = vld [vmem:[%s9317_s12 + $0x1b8] sm:$0xff] }
 0xb52   : > { %v4134_v9 = vmax.f32 %v4132_v19, %v4133_v51  ;;  %v4177_v32 = vrot.slane %v4176_v41, 2  ;;  %v4198_v16 = vrot.slane %v4197_v38, 2  ;;  %v4155_v33 = vmax.f32 %v4153_v36, %v4154_v22  ;;  %v4270_v19 = vld [vmem:[%s9317_s12 + $0x1d8] sm:$0xff]  ;;  %v4268_v36 = vld [vmem:[%s9317_s12 + $0x1c8] sm:$0xff] }
 0xb53   : > { %v4262_v51 = vld [vmem:[%s9317_s12 + $0x198] sm:$0xff]  ;;  %v4260_v22 = vld [vmem:[%s9317_s12 + $0x188] sm:$0xff] }
 0xb54   : > { %v4135_v59 = vrot.slane %v4134_v9, 2  ;;  %v4178_v29 = vadd.f32 %v4177_v32, %v4176_v41  ;;  %v4199_v61 = vadd.f32 %v4198_v16, %v4197_v38  ;;  %v4156_v40 = vrot.slane %v4155_v33, 2  ;;  %v4258_v41 = vld [vmem:[%s9317_s12 + $0x178] sm:$0xff]  ;;  %v4256_v38 = vld [vmem:[%s9317_s12 + $0x168] sm:$0xff] }
 0xb55   : > { %v4252_v32 = vld [vmem:[%s9317_s12 + $0x148] sm:$0xff]  ;;  %v4250_v16 = vld [vmem:[%s9317_s12 + $0x138] sm:$0xff] }
 0xb56   : > { %v4136_v57 = vmax.f32 %v4134_v9, %v4135_v59  ;;  %v4179_v60 = vrot.slane %v4178_v29, 1  ;;  %v4200_v7 = vrot.slane %v4199_v61, 1  ;;  %v4157_v54 = vmax.f32 %v4155_v33, %v4156_v40  ;;  %v4254_v9 = vld [vmem:[%s9317_s12 + $0x158] sm:$0xff]  ;;  %v4248_v33 = vld [vmem:[%s9317_s12 + $0x128] sm:$0xff]  ;;  %v4503_v40 = vpop.permute.xlu0 %4502 }
 0xb57   : > { %v4244_v59 = vld [vmem:[%s9317_s12 + $0x108] sm:$0xff] }
 0xb58   : > { %v4137_v63 = vrot.slane %v4136_v57, 1  ;;  %v4180_v37 = vadd.f32 %v4179_v60, %v4178_v29  ;;  %v4201_v24 = vadd.f32 %v4200_v7, %v4199_v61  ;;  %v4158_v26 = vrot.slane %v4157_v54, 1 }
 0xb5a   : > { %v4209_v42 = vmul.f32 %v4208_v28, %v4180_v37  ;;  %v4210_v43 = vmul.f32 %v4208_v28, %v4201_v24  ;;  %v4138_v6 = vmax.f32 %v4136_v57, %v4137_v63  ;;  %v4159_v15 = vmax.f32 %v4157_v54, %v4158_v26 }
 0xb5b   : > { %v4505_v37 = vperm.slane %v4503_v40, 0 }
 0xb5c   : > { %4355 = vmatmul.f32.vlgmr.msrb.gmra.mxu0 %v4209_v42  ;;  %4375 = vmatmul.f32.vlgmr.msra.gmra.mxu1 %v4210_v43 }
 0xb5d   : > { %4395 = vmatmul.f32.vlgmr.msrb.gmra.mxu3 %v4209_v42  ;;  %4475 = vmatmul.f32.vlgmr.msrb.gmra.mxu2 %v4138_v6 }
 0xb5e   : > { %4479 = vmatpush.msrb.mxu0 %v4274_v55 }
 0xb60   : > { %4480 = vmatpush.msrb.mxu0 %v4272_v8 }
 0xb62   : > { %4481 = vmatpush.msrb.mxu0 %v4270_v19 }
 0xb64   : > { %4482 = vmatpush.msrb.mxu0 %v4268_v36  ;;  %4435 = vmatmul.f32.vlgmr.msrb.gmra.mxu1 %v4138_v6 }
 0xb65   : > { %4415 = vmatmul.f32.vlgmr.msra.gmra.mxu0 %v4210_v43  ;;  %4455 = vmatmul.f32.vlgmr.msra.gmra.mxu3 %v4159_v15 }
 0xb66   : > { %4483 = vmatpush.msrb.mxu0 %v4266_v47 }
 0xb68   : > { %4484 = vmatpush.msrb.mxu0 %v4264_v50 }
 0xb6a   : > { %4485 = vmatpush.msrb.mxu0 %v4262_v51 }
 0xb6c   : > { %4486 = vmatpush.msrb.mxu0 %v4260_v22 }
 0xb6e   : > { %4487 = vmatpush.msrb.mxu0 %v4258_v41 }
 0xb70   : > { %4488 = vmatpush.msrb.mxu0 %v4256_v38 }
 0xb72   : > { %4489 = vmatpush.msrb.mxu0 %v4254_v9 }
 0xb74   : > { %4490 = vmatpush.msrb.mxu0 %v4252_v32 }
 0xb76   : > { %4491 = vmatpush.msrb.mxu0 %v4250_v16 }
 0xb78   : > { %4492 = vmatpush.msrb.mxu0 %v4248_v33 }
 0xb7a   : > { %4493 = vmatpush.msrb.mxu0 %v4246_v13 }
 0xb7c   : > { %4494 = vmatpush.msrb.mxu0 %v4244_v59 }
 0xb7d   : > { %4495 = vmatmul.f32.vlgmr.msrb.gmra.mxu0 %v4159_v15 }
 0xbd9   : > { %v4376_v29 = vpop.f32.mrf.mxu1  ;;  %v4356_v57 = vpop.f32.mrf.mxu0 }
 0xbda   : > { %v4377_v7 = vadd.f32 %v4376_v29, %v4356_v57 }
 0xbe0   : > { %v4396_v61 = vpop.f32.mrf.mxu3  ;;  %v4476_v26 = vpop.f32.mrf.mxu2 }
 0xbe1   : > { %v4436_v60 = vpop.f32.mrf.mxu1 }
 0xbe2   : > { %v4437_v28 = vadd.f32 %v4436_v60, %v4377_v7  ;;  %v4416_v54 = vpop.f32.mrf.mxu0 }
 0xbe3   : > { %v4417_v55 = vadd.f32 %v4416_v54, %v4396_v61 }
 0xbe5   : > { %v4477_v36 = vadd.f32 %v4476_v26, %v4417_v55  ;;  %v5520_v55 = vld [vmem:[%s5666_s28 + $0x20] sm:$0xff] }
 0xbe8   : > { %v4456_v63 = vpop.f32.mrf.mxu3 }
 0xbe9   : > { %v4457_v24 = vadd.f32 %v4456_v63, %v4437_v28 }
 0xbeb   : > { %v4506_v42 = vadd.f32 %v4505_v37, %v4457_v24 }
 0xbed   : > { %v4508_v43 = vsub.f32 0.0, %v4506_v42 }
 0xbef   : > { %v4510_v6 = vmul.f32 1.442695, %v4508_v43 }
 0xbf1   : > { %5510 = vpow2.f32 %v4510_v6  ;;  %v5518_v6 = vld [vmem:[%s5666_s28] sm:$0xff] }
 0xbf7   : > { %v5511_v8 = vpop.eup %5510 }
 0xbf8   : > { %v4514_v19 = vadd.f32 1.0, %v5511_v8 }
 0xbfa   : > { %5512 = vrcp.f32 %v4514_v19  ;;  %v4496_v15 = vpop.f32.mrf.mxu0  ;;  %v4527_v32 = vand.u32 2147483648, %v4514_v19  ;;  %v4525_v33 = vand.u32 2147483647, %v4514_v19  ;;  %vm4521_vm5 = vweird.f32 %v4514_v19 }
 0xbfb   : > { %v4497_v47 = vadd.f32 %v4496_v15, %v4477_v36  ;;  %v5523_v15 = vld [vmem:[%s5666_s28 + $0x50] sm:$0xff] }
 0xbfc   : > { %v4528_v59 = vor.u32 1.1754944e-38, %v4527_v32  ;;  %vm4526_vm7 = vcmp.eq.f32.partialorder %v4525_v33, 8.507059e+37 }
 0xbfd   : > { %v4507_v50 = vadd.f32 %v4505_v37, %v4497_v47  ;;  %v5524_v47 = vld [vmem:[%s5666_s28 + $0x60] sm:$0xff] }
 0xbff   : > { %v4509_v51 = vsub.f32 0.0, %v4507_v50 }
 0xc00   : > { %v5513_v22 = vpop.eup %5512 }
 0xc01   : > { %v4517_v41 = vmul.f32 %v5513_v22, %v4514_v19  ;;  %v4512_v38 = vmul.f32 1.442695, %v4509_v51  ;;  %vm4522_vm4 = vweird.f32 %v5513_v22 }
 0xc02   : > { %vm4523_vm6 = vmor %vm4521_vm5, %vm4522_vm4 }
 0xc03   : > { %v4518_v9 = vsub.f32 1.0, %v4517_v41  ;;  %5514 = vpow2.f32 %v4512_v38 }
 0xc05   : > { %v4519_v16 = vmul.f32 %v5513_v22, %v4518_v9  ;;  %v5525_v9 = vld [vmem:[%s5666_s28 + $0x70] sm:$0xff] }
 0xc07   : > { %v4520_v13 = vadd.f32 %v5513_v22, %v4519_v16  ;;  %v5526_v16 = vld [vmem:[%s5666_s28 + $0x80] sm:$0xff] }
 0xc09   : > { %v5515_v29 = vpop.eup %5514  ;;  %v4524_v61 = vsel %vm4523_vm6, %v5513_v22, %v4520_v13 }
 0xc0a   : > { %v4529_v57 = vsel %vm4526_vm7, %v4528_v59, %v4524_v61  ;;  %v9185_v7 = vadd.f32 1.0, %v5515_v29  ;;  %v5527_v29 = vld [vmem:[%s5666_s28 + $0x90] sm:$0xff] }
 0xc0b   : > { %v4546_v60 = vperm.slane %v4529_v57, 0 }
 0xc0c   : > { %5516 = vrcp.f32 %v9185_v7  ;;  %vm4536_vm9 = vweird.f32 %v9185_v7 }
 0xc0d   : > { %v4548_v40 = vmul.f32 %v4546_v60, %v8819_v46  ;;  %v4550_v28 = vmul.f32 %v4546_v60, %v8837_v44  ;;  %v4552_v63 = vmul.f32 %v4546_v60, %v8840_v45  ;;  %v4554_v37 = vmul.f32 %v4546_v60, %v8860_v1  ;;  %v5519_v46 = vld [vmem:[%s5666_s28 + $0x10] sm:$0xff] }
 0xc0e   : > { %v4556_v24 = vmul.f32 %v4546_v60, %v8878_v53  ;;  %v4558_v42 = vmul.f32 %v4546_v60, %v8913_v34  ;;  %v4560_v43 = vmul.f32 %v4546_v60, %v8916_v10  ;;  %v4562_v8 = vmul.f32 %v4546_v60, %v8935_v62  ;;  %v5521_v1 = vld [vmem:[%s5666_s28 + $0x30] sm:$0xff]  ;;  %v5522_v34 = vld [vmem:[%s5666_s28 + $0x40] sm:$0xff] }
 0xc0f   : > { %v4580_v54 = vadd.f32 %v5518_v6, %v4548_v40  ;;  %v4582_v44 = vadd.f32 %v5519_v46, %v4550_v28  ;;  %v4584_v45 = vadd.f32 %v5520_v55, %v4552_v63  ;;  %v4586_v26 = vadd.f32 %v5521_v1, %v4554_v37  ;;  %v5528_v40 = vld [vmem:[%s5666_s28 + $0xa0] sm:$0xff]  ;;  %v5531_v46 = vld [vmem:[%s5666_s28 + $0xd0] sm:$0xff] }
 0xc10   : > { %v4564_v53 = vmul.f32 %v4546_v60, %v8982_v25  ;;  %v4588_v19 = vadd.f32 %v5522_v34, %v4556_v24  ;;  %v4566_v10 = vmul.f32 %v4546_v60, %v8994_v3  ;;  %v4568_v36 = vmul.f32 %v4546_v60, %v9018_v20 }
 0xc11   : > { %v4590_v62 = vadd.f32 %v5523_v15, %v4558_v42  ;;  %v4592_v50 = vadd.f32 %v5524_v47, %v4560_v43  ;;  %v4612_v25 = vmax.f32 %v4580_v54, 0.0  ;;  %v4614_v51 = vmax.f32 %v4582_v44, 0.0  ;;  %v5530_v43 = vld [vmem:[%s5666_s28 + $0xc0] sm:$0xff] }
 0xc12   : > { %v4616_v22 = vmax.f32 %v4584_v45, 0.0  ;;  %v9213_v41 = vpop.eup %5516  ;;  %v4570_v38 = vmul.f32 %v4546_v60, %v9063_v11  ;;  %v4594_v32 = vadd.f32 %v5525_v9, %v4562_v8  ;;  %v4618_v3 = vmax.f32 %v4586_v26, 0.0  ;;  %v5532_v45 = vld [vmem:[%s5666_s28 + $0xe0] sm:$0xff] }
 0xc13   : > { %v4572_v20 = vmul.f32 %v4546_v60, %v9069_v27  ;;  %v4596_v33 = vadd.f32 %v5526_v16, %v4564_v53  ;;  %v4620_v13 = vmax.f32 %v4588_v19, 0.0  ;;  %4644 = vst [vmem:[%s9207_s16] sm:$0xff] %v4612_v25  ;;  %v4574_v59 = vmul.f32 %v4546_v60, %v9085_v58  ;;  %v5529_v58 = vld [vmem:[%s5666_s28 + $0xb0] sm:$0xff]  ;;  %v5534_v16 = vld [vmem:[%s5666_s28 + $0x8] sm:$0xff] }
 0xc14   : > { %v4598_v61 = vadd.f32 %v5527_v29, %v4566_v10  ;;  %v4622_v57 = vmax.f32 %v4590_v62, 0.0  ;;  %4646 = vst [vmem:[%s9207_s16 + $0x10] sm:$0xff] %v4614_v51  ;;  %v4576_v11 = vmul.f32 %v4546_v60, %v9116_v12  ;;  %v4600_v28 = vadd.f32 %v5528_v40, %v4568_v36  ;;  %v5533_v53 = vld [vmem:[%s5666_s28 + $0xf0] sm:$0xff]  ;;  %v5537_v29 = vld [vmem:[%s5666_s28 + $0x38] sm:$0xff] }
 0xc15   : > { %v4624_v27 = vmax.f32 %v4592_v50, 0.0  ;;  %4648 = vst [vmem:[%s9207_s16 + $0x20] sm:$0xff] %v4616_v22  ;;  %v4532_v63 = vmul.f32 %v9213_v41, %v9185_v7  ;;  %v4578_v37 = vmul.f32 %v4546_v60, %v9126_v35  ;;  %v4602_v24 = vadd.f32 %v5529_v58, %v4570_v38  ;;  %v5541_v58 = vld [vmem:[%s5666_s28 + $0x78] sm:$0xff] }
 0xc16   : > { %v4626_v42 = vmax.f32 %v4594_v32, 0.0  ;;  %4650 = vst [vmem:[%s9207_s16 + $0x30] sm:$0xff] %v4618_v3  ;;  %v4604_v6 = vadd.f32 %v5530_v43, %v4572_v20  ;;  %v4628_v12 = vmax.f32 %v4596_v33, 0.0  ;;  %v4606_v44 = vadd.f32 %v5531_v46, %v4574_v59  ;;  %v5536_v59 = vld [vmem:[%s5666_s28 + $0x28] sm:$0xff] }
 0xc17   : > { %4652 = vst [vmem:[%s9207_s16 + $0x40] sm:$0xff] %v4620_v13  ;;  %v4533_v54 = vsub.f32 1.0, %v4532_v63  ;;  %v4630_v55 = vmax.f32 %v4598_v61, 0.0  ;;  %v4540_v35 = vand.u32 2147483647, %v9185_v7  ;;  %v4542_v60 = vand.u32 2147483648, %v9185_v7 }
 0xc18   : > { %4654 = vst [vmem:[%s9207_s16 + $0x50] sm:$0xff] %v4622_v57  ;;  %v4608_v8 = vadd.f32 %v5532_v45, %v4576_v11  ;;  %v4632_v1 = vmax.f32 %v4600_v28, 0.0  ;;  %vm4537_vm8 = vweird.f32 %v9213_v41  ;;  %v4610_v34 = vadd.f32 %v5533_v53, %v4578_v37  ;;  %v5535_v13 = vld [vmem:[%s5666_s28 + $0x18] sm:$0xff]  ;;  %v5540_v28 = vld [vmem:[%s5666_s28 + $0x68] sm:$0xff] }
 0xc19   : > { %4656 = vst [vmem:[%s9207_s16 + $0x60] sm:$0xff] %v4624_v27  ;;  %v4534_v26 = vmul.f32 %v9213_v41, %v4533_v54  ;;  %v4634_v19 = vmax.f32 %v4602_v24, 0.0  ;;  %v4636_v10 = vmax.f32 %v4604_v6, 0.0  ;;  %v4638_v15 = vmax.f32 %v4606_v44, 0.0  ;;  %vm4538_vm10 = vmor %vm4536_vm9, %vm4537_vm8  ;;  %v5539_v11 = vld [vmem:[%s5666_s28 + $0x58] sm:$0xff] }
 0xc1a   : > { %4658 = vst [vmem:[%s9207_s16 + $0x70] sm:$0xff] %v4626_v42  ;;  %v4543_v62 = vor.u32 1.1754944e-38, %v4542_v60  ;;  %v4640_v47 = vmax.f32 %v4608_v8, 0.0  ;;  %vm4541_vm11 = vcmp.eq.f32.partialorder %v4540_v35, 8.507059e+37  ;;  %v4642_v25 = vmax.f32 %v4610_v34, 0.0  ;;  %v5543_v54 = vld [vmem:[%s5666_s28 + $0x98] sm:$0xff] }
 0xc1b   : > { %4660 = vst [vmem:[%s9207_s16 + $0x80] sm:$0xff] %v4628_v12  ;;  %v4535_v36 = vadd.f32 %v9213_v41, %v4534_v26  ;;  %v5545_v45 = vld [vmem:[%s5666_s28 + $0xb8] sm:$0xff] }
 0xc1c   : > { %4662 = vst [vmem:[%s9207_s16 + $0x90] sm:$0xff] %v4630_v55  ;;  %v5544_v55 = vld [vmem:[%s5666_s28 + $0xa8] sm:$0xff] }
 0xc1d   : > { %4664 = vst [vmem:[%s9207_s16 + $0xa0] sm:$0xff] %v4632_v1  ;;  %v4539_v50 = vsel %vm4538_vm10, %v9213_v41, %v4535_v36  ;;  %v5546_v1 = vld [vmem:[%s5666_s28 + $0xc8] sm:$0xff] }
 0xc1e   : > { %4666 = vst [vmem:[%s9207_s16 + $0xb0] sm:$0xff] %v4634_v19  ;;  %v4544_v51 = vsel %vm4541_vm11, %v4543_v62, %v4539_v50 }
 0xc1f   : > { %4668 = vst [vmem:[%s9207_s16 + $0xc0] sm:$0xff] %v4636_v10  ;;  %v4547_v22 = vperm.slane %v4544_v51, 0 }
 0xc20   : > { %4670 = vst [vmem:[%s9207_s16 + $0xd0] sm:$0xff] %v4638_v15  ;;  %v5549_v15 = vld [vmem:[%s5666_s28 + $0xf8] sm:$0xff] }
 0xc21   : > { %4672 = vst [vmem:[%s9207_s16 + $0xe0] sm:$0xff] %v4640_v47  ;;  %v4549_v7 = vmul.f32 %v4547_v22, %v8828_v23  ;;  %v4551_v38 = vmul.f32 %v4547_v22, %v8849_v52  ;;  %v4553_v9 = vmul.f32 %v4547_v22, %v8852_v5  ;;  %v4555_v41 = vmul.f32 %v4547_v22, %v8871_v49 }
 0xc22   : > { %4674 = vst [vmem:[%s9207_s16 + $0xf0] sm:$0xff] %v4642_v25  ;;  %v4557_v32 = vmul.f32 %v4547_v22, %v8888_v21  ;;  %v4559_v3 = vmul.f32 %v4547_v22, %v8925_v18  ;;  %v4561_v20 = vmul.f32 %v4547_v22, %v8928_v30  ;;  %v4563_v5 = vmul.f32 %v4547_v22, %v8945_v48  ;;  %v5538_v21 = vld [vmem:[%s5666_s28 + $0x48] sm:$0xff] }
 0xc23   : > { %v4581_v33 = vadd.f32 %v5534_v16, %v4549_v7  ;;  %v4583_v23 = vadd.f32 %v5535_v13, %v4551_v38  ;;  %v4585_v52 = vadd.f32 %v5536_v59, %v4553_v9  ;;  %v4587_v61 = vadd.f32 %v5537_v29, %v4555_v41 }
 0xc24   : > { %v4565_v49 = vmul.f32 %v4547_v22, %v8991_v39  ;;  %v4589_v18 = vadd.f32 %v5538_v21, %v4557_v32  ;;  %v4567_v57 = vmul.f32 %v4547_v22, %v8997_v14  ;;  %v4569_v30 = vmul.f32 %v4547_v22, %v9021_v17  ;;  %v5542_v17 = vld [vmem:[%s5666_s28 + $0x88] sm:$0xff] }
 0xc25   : > { %v4591_v40 = vadd.f32 %v5539_v11, %v4559_v3  ;;  %v4593_v27 = vadd.f32 %v5540_v28, %v4561_v20  ;;  %v4613_v63 = vmax.f32 %v4581_v33, 0.0  ;;  %v4615_v48 = vmax.f32 %v4583_v23, 0.0 }
 0xc26   : > { %v4617_v37 = vmax.f32 %v4585_v52, 0.0  ;;  %v4571_v39 = vmul.f32 %v4547_v22, %v9066_v2  ;;  %v4595_v24 = vadd.f32 %v5541_v58, %v4563_v5  ;;  %v4619_v42 = vmax.f32 %v4587_v61, 0.0 }
 0xc27   : > { %v4573_v14 = vmul.f32 %v4547_v22, %v9072_v4  ;;  %v4597_v43 = vadd.f32 %v5542_v17, %v4565_v49  ;;  %v4621_v6 = vmax.f32 %v4589_v18, 0.0  ;;  %4645 = vst [vmem:[%s9207_s16 + $0x8] sm:$0xff] %v4613_v63  ;;  %v4575_v12 = vmul.f32 %v4547_v22, %v9088_v56 }
 0xc28   : > { %v4599_v46 = vadd.f32 %v5543_v54, %v4567_v57  ;;  %v4623_v44 = vmax.f32 %v4591_v40, 0.0  ;;  %4647 = vst [vmem:[%s9207_s16 + $0x18] sm:$0xff] %v4615_v48  ;;  %v4577_v2 = vmul.f32 %v4547_v22, %v9119_v0  ;;  %v4601_v4 = vadd.f32 %v5544_v55, %v4569_v30  ;;  %v5547_v0 = vld [vmem:[%s5666_s28 + $0xd8] sm:$0xff] }
 0xc29   : > { %v4625_v35 = vmax.f32 %v4593_v27, 0.0  ;;  %4649 = vst [vmem:[%s9207_s16 + $0x28] sm:$0xff] %v4617_v37  ;;  %v4579_v60 = vmul.f32 %v4547_v22, %v9129_v31  ;;  %v4603_v56 = vadd.f32 %v5545_v45, %v4571_v39  ;;  %v4627_v8 = vmax.f32 %v4595_v24, 0.0  ;;  %v5548_v31 = vld [vmem:[%s5666_s28 + $0xe8] sm:$0xff] }
 0xc2a   : > { %4651 = vst [vmem:[%s9207_s16 + $0x38] sm:$0xff] %v4619_v42  ;;  %v4605_v26 = vadd.f32 %v5546_v1, %v4573_v14  ;;  %v4629_v53 = vmax.f32 %v4597_v43, 0.0  ;;  %v4607_v34 = vadd.f32 %v5547_v0, %v4575_v12  ;;  %v4631_v19 = vmax.f32 %v4599_v46, 0.0 }
 0xc2b   : > { %4653 = vst [vmem:[%s9207_s16 + $0x48] sm:$0xff] %v4621_v6  ;;  %v4609_v10 = vadd.f32 %v5548_v31, %v4577_v2  ;;  %v4633_v36 = vmax.f32 %v4601_v4, 0.0  ;;  %v4611_v62 = vadd.f32 %v5549_v15, %v4579_v60  ;;  %v4635_v47 = vmax.f32 %v4603_v56, 0.0 }
 0xc2c   : > { %4655 = vst [vmem:[%s9207_s16 + $0x58] sm:$0xff] %v4623_v44  ;;  %v4637_v50 = vmax.f32 %v4605_v26, 0.0  ;;  %v4639_v25 = vmax.f32 %v4607_v34, 0.0 }
 0xc2d   : > { %4657 = vst [vmem:[%s9207_s16 + $0x68] sm:$0xff] %v4625_v35  ;;  %v4641_v51 = vmax.f32 %v4609_v10, 0.0  ;;  %v4643_v22 = vmax.f32 %v4611_v62, 0.0 }
 0xc2e   : > { %4659 = vst [vmem:[%s9207_s16 + $0x78] sm:$0xff] %v4627_v8 }
 0xc2f   : > { %4661 = vst [vmem:[%s9207_s16 + $0x88] sm:$0xff] %v4629_v53 }
 0xc30   : > { %4663 = vst [vmem:[%s9207_s16 + $0x98] sm:$0xff] %v4631_v19 }
 0xc31   : > { %4665 = vst [vmem:[%s9207_s16 + $0xa8] sm:$0xff] %v4633_v36 }
 0xc32   : > { %4667 = vst [vmem:[%s9207_s16 + $0xb8] sm:$0xff] %v4635_v47 }
 0xc33   : > { %4669 = vst [vmem:[%s9207_s16 + $0xc8] sm:$0xff] %v4637_v50 }
 0xc34   : > { %4671 = vst [vmem:[%s9207_s16 + $0xd8] sm:$0xff] %v4639_v25 }
 0xc35   : > { %4673 = vst [vmem:[%s9207_s16 + $0xe8] sm:$0xff] %v4641_v51 }
 0xc36   : > { %4675 = vst [vmem:[%s9207_s16 + $0xf8] sm:$0xff] %v4643_v22 }
 0xc37 PF: > { %s27_s20 = sadd.s32 1, %s5556_s20  }
 0xc38   : > { %p24_p4 = scmp.ge.s32.totalorder %s27_s20, 4  }
 0xc3a   :  { %26 = sbr.rel (!%p24_p4) target bundleno = 3 (0x3), region = 126 }

</bundles_post_ra>
